<compile_context>
chip_gen: v6e
topology: v6e:2x2x1
jax: 0.10.0
libtpu: 0.0.40
codegen_flags: <defaults>
</compile_context>

<pallas_src>
import math
import numpy as np
import jax
import jax.numpy as jnp
from jax.experimental import pallas as pl
from jax.experimental.pallas import tpu as pltpu


def _make_kernel(num_layers: int, ensemble_size: int):
    """Lane-dense ensemble MLP + mean/std epilogue, single gridless invocation."""
    E = ensemble_size
    num_hidden = num_layers - 1

    def kernel(*refs):
        it = iter(refs)
        sau_ref = next(it)                               # (B, D)
        w0_ref = next(it)                                # (D, E*H) lane-dense layer 0
        wh_ref = next(it) if num_hidden > 0 else None    # (num_hidden, E*H, E*H) block-diag
        b_ref = next(it)                                 # (num_layers, E*H) packed biases
        red_ref = next(it)                               # (E*H, H)  group-sum (0/1)
        tile_ref = next(it)                              # (H, E*H)  group-broadcast (0/1)
        out_ref = next(it)                               # (B, 2*H) = [mean | std]

        prec = jax.lax.Precision.HIGHEST

        # Layer 0: one lane-dense MXU sequence for all E members.
        q = jnp.dot(sau_ref[...], w0_ref[...],
                    preferred_element_type=jnp.float32, precision=prec)
        q = jnp.maximum(q + b_ref[0:1, :], 0.0)          # bias row broadcasts over B

        # Hidden layers: block-diagonal weights keep the network lane-dense
        # (one matmul per layer instead of E separately-scheduled tiny ones).
        for k in range(num_hidden):
            q = jnp.dot(q, wh_ref[k],
                        preferred_element_type=jnp.float32, precision=prec)
            q = jnp.maximum(q + b_ref[k + 1:k + 2, :], 0.0)

        # Epilogue: mean / unbiased std over ensemble groups of the (B, E*H)
        # layout via small matmul reductions (no lane-splitting reshape).
        red = red_ref[...]
        mean = jnp.dot(q, red, preferred_element_type=jnp.float32,
                       precision=prec) / E                              # (B, H)
        diff = q - jnp.dot(mean, tile_ref[...],
                           preferred_element_type=jnp.float32, precision=prec)
        # TODO(synk): E == 1 divides by zero here (torch's q.std(0) gives NaN).
        var = jnp.dot(diff * diff, red, preferred_element_type=jnp.float32,
                      precision=prec) / (E - 1)                         # (B, H)
        out_ref[...] = jnp.concatenate([mean, jnp.sqrt(var)], axis=-1)  # one store

    return kernel


def critic_ensemble_forward(state, action, uncertain, weights, biases):
    """Pallas implementation of Critic_ensemble.forward -> (mean, std).

    weights[k]: (E, d_in, d_out), biases[k]: (E, d_out) for the `depth` layers
    actually used by forward() (the final H->1 layer is unused by forward()).
    """
    sau = jnp.concatenate([state, action, uncertain], axis=-1).astype(jnp.float32)
    B, D = sau.shape
    E, _, H = (int(s) for s in weights[0].shape)
    EH = E * H
    num_layers = len(weights)
    num_hidden = num_layers - 1

    # Layer 0 flattened lane-dense: (E, D, H) -> (D, E*H), columns indexed e*H + h.
    w0 = jnp.transpose(weights[0].astype(jnp.float32), (1, 0, 2)).reshape(D, EH)

    # Hidden layers as one stacked block-diagonal array (num_hidden, E*H, E*H).
    # TODO(synk): for large num_neurons (e.g. the module default 512 -> E*H=5120)
    # block-diag weights no longer fit VMEM; fall back to an E-batched einsum
    # path with a grid over E / B tiles in that regime.
    wh = None
    if num_hidden:
        eye_e = jnp.eye(E, dtype=jnp.float32)
        wh = jnp.stack([
            jnp.einsum("ef,eij->eifj", eye_e, w.astype(jnp.float32)).reshape(EH, EH)
            for w in weights[1:]
        ])

    # All biases packed into one (num_layers, E*H) array (single contiguous DMA).
    b_stack = jnp.stack([b.astype(jnp.float32).reshape(EH) for b in biases])

    # Reduction helpers: group-sum (E*H, H) and group-broadcast (H, E*H) matrices.
    eye_h = jnp.eye(H, dtype=jnp.float32)
    red = jnp.tile(eye_h, (E, 1))        # red[e*H+h, h] = 1
    tile_mat = jnp.tile(eye_h, (1, E))   # tile_mat[h, e*H+h] = 1

    operands = [sau, w0] + ([wh] if num_hidden else []) + [b_stack, red, tile_mat]
    vspec = pl.BlockSpec(memory_space=pltpu.MemorySpace.VMEM)

    out = pl.pallas_call(
        _make_kernel(num_layers, E),
        out_shape=jax.ShapeDtypeStruct((B, 2 * H), jnp.float32),
        in_specs=[vspec] * len(operands),
        out_specs=vspec,
    )(*operands)
    return out[:, :H], out[:, H:]


def init_ensemble_fc(key, in_features, out_features, ensemble_size):
    """Deterministic init mirroring EnsembleFC.reset_parameters()."""
    wkey, bkey = jax.random.split(key)
    # kaiming_uniform_(a=sqrt(5)) with fan_in = weight.size(-2):
    #   gain = sqrt(2/(1+5)); bound = sqrt(3)*gain/sqrt(fan_in) = 1/sqrt(fan_in)
    w_bound = 1.0 / math.sqrt(in_features)
    w = jax.random.uniform(wkey, (ensemble_size, in_features, out_features),
                           jnp.float32, -w_bound, w_bound)
    b_bound = 1.0 / math.sqrt(in_features)
    b = jax.random.uniform(bkey, (ensemble_size, out_features),
                           jnp.float32, -b_bound, b_bound)
    return w, b


if __name__ == "__main__":
    # Small shapes consistent with the module.
    state_dim, action_dim = 6, 3
    depth, num_neurons, ensemble_size, batch = 2, 32, 10, 8
    D = state_dim + action_dim + 1

    key = jax.random.PRNGKey(0)
    keys = jax.random.split(key, depth + 4)

    # layers[0]: D->H, layers[1..depth-1]: H->H, layers[depth]: H->1 (unused in forward)
    layer_dims = ([(D, num_neurons)]
                  + [(num_neurons, num_neurons)] * (depth - 1)
                  + [(num_neurons, 1)])
    weights, biases = [], []
    for i, (din, dout) in enumerate(layer_dims):
        w, b = init_ensemble_fc(keys[i], din, dout, ensemble_size)
        weights.append(w)
        biases.append(b)

    state = jax.random.normal(keys[depth + 1], (batch, state_dim), jnp.float32)
    action = jax.random.normal(keys[depth + 2], (batch, action_dim), jnp.float32)
    uncertain = jax.random.normal(keys[depth + 3], (batch, 1), jnp.float32)

    # Only the first `depth` layers participate in forward() (matches PyTorch code).
    used_w = weights[:depth]
    used_b = biases[:depth]

    mean, std = critic_ensemble_forward(state, action, uncertain, used_w, used_b)
    jax.block_until_ready((mean, std))

    # Exact float64 host reference of the PyTorch forward().
    sau64 = np.concatenate([np.asarray(state), np.asarray(action),
                            np.asarray(uncertain)], axis=-1).astype(np.float64)
    q = np.broadcast_to(sau64[None], (ensemble_size, batch, D)).astype(np.float64)
    for w, b in zip(used_w, used_b):
        w64 = np.asarray(w, dtype=np.float64)
        b64 = np.asarray(b, dtype=np.float64)
        q = np.maximum(np.einsum("ebd,edh->ebh", q, w64) + b64[:, None, :], 0.0)
    ref_mean = q.mean(0)
    ref_std = q.std(0, ddof=1)

    assert mean.shape == (batch, num_neurons) and std.shape == (batch, num_neurons)
    assert np.allclose(np.asarray(mean), ref_mean, atol=1e-5, rtol=1e-4)
    assert np.allclose(np.asarray(std), ref_std, atol=1e-5, rtol=1e-4)
    print("KERNEL_OK")
</pallas_src>

<mosaic_0001>
module attributes {stable_mosaic.version = 11 : i64} {
  func.func @kernel(%arg0: memref<8x10xf32, #tpu.memory_space<vmem>>, %arg1: memref<10x320xf32, #tpu.memory_space<vmem>>, %arg2: memref<1x320x320xf32, #tpu.memory_space<vmem>>, %arg3: memref<2x320xf32, #tpu.memory_space<vmem>>, %arg4: memref<320x32xf32, #tpu.memory_space<vmem>>, %arg5: memref<32x320xf32, #tpu.memory_space<vmem>>, %arg6: memref<8x64xf32, #tpu.memory_space<vmem>>) attributes {dimension_semantics = [], scalar_prefetch = 0 : i64, scratch_operands = 0 : i64, tpu.core_type = #tpu.core_type<tc>} {
    %c0 = arith.constant 0 : index
    %c0_0 = arith.constant 0 : index
    %0 = vector.load %arg0[%c0, %c0_0] : memref<8x10xf32, #tpu.memory_space<vmem>>, vector<8x10xf32>
    %c0_1 = arith.constant 0 : index
    %c0_2 = arith.constant 0 : index
    %1 = vector.load %arg1[%c0_1, %c0_2] : memref<10x320xf32, #tpu.memory_space<vmem>>, vector<10x320xf32>
    %cst = arith.constant dense<0.000000e+00> : vector<8x320xf32>
    %2 = tpu.matmul %0, %1, %cst {dimension_numbers = #tpu.dot_dimension_numbers<[1], [0], [0], [1], [0, 0, 1, 1], [], []>, precision = #tpu.contract_precision<fp32>} : vector<8x10xf32>, vector<10x320xf32>, vector<8x320xf32> -> vector<8x320xf32>
    %c0_3 = arith.constant 0 : index
    %c0_4 = arith.constant 0 : index
    %3 = vector.load %arg3[%c0_3, %c0_4] : memref<2x320xf32, #tpu.memory_space<vmem>>, vector<1x320xf32>
    %4 = vector.broadcast %3 : vector<1x320xf32> to vector<8x320xf32>
    %5 = arith.addf %2, %4 : vector<8x320xf32>
    %cst_5 = arith.constant 0.000000e+00 : f32
    %6 = vector.broadcast %cst_5 : f32 to vector<8x320xf32>
    %7 = arith.maximumf %5, %6 : vector<8x320xf32>
    %c0_6 = arith.constant 0 : index
    %c0_7 = arith.constant 0 : index
    %c0_8 = arith.constant 0 : index
    %8 = vector.load %arg2[%c0_6, %c0_7, %c0_8] : memref<1x320x320xf32, #tpu.memory_space<vmem>>, vector<1x320x320xf32>
    %9 = vector.shape_cast %8 : vector<1x320x320xf32> to vector<320x320xf32>
    %cst_9 = arith.constant dense<0.000000e+00> : vector<8x320xf32>
    %10 = tpu.matmul %7, %9, %cst_9 {dimension_numbers = #tpu.dot_dimension_numbers<[1], [0], [0], [1], [0, 0, 1, 1], [], []>, precision = #tpu.contract_precision<fp32>} : vector<8x320xf32>, vector<320x320xf32>, vector<8x320xf32> -> vector<8x320xf32>
    %c1 = arith.constant 1 : index
    %c0_10 = arith.constant 0 : index
    %11 = vector.load %arg3[%c1, %c0_10] : memref<2x320xf32, #tpu.memory_space<vmem>>, vector<1x320xf32>
    %12 = vector.broadcast %11 : vector<1x320xf32> to vector<8x320xf32>
    %13 = arith.addf %10, %12 : vector<8x320xf32>
    %cst_11 = arith.constant 0.000000e+00 : f32
    %14 = vector.broadcast %cst_11 : f32 to vector<8x320xf32>
    %15 = arith.maximumf %13, %14 : vector<8x320xf32>
    %c0_12 = arith.constant 0 : index
    %c0_13 = arith.constant 0 : index
    %16 = vector.load %arg4[%c0_12, %c0_13] : memref<320x32xf32, #tpu.memory_space<vmem>>, vector<320x32xf32>
    %cst_14 = arith.constant dense<0.000000e+00> : vector<8x32xf32>
    %17 = tpu.matmul %15, %16, %cst_14 {dimension_numbers = #tpu.dot_dimension_numbers<[1], [0], [0], [1], [0, 0, 1, 1], [], []>, precision = #tpu.contract_precision<fp32>} : vector<8x320xf32>, vector<320x32xf32>, vector<8x32xf32> -> vector<8x32xf32>
    %cst_15 = arith.constant 1.000000e+01 : f32
    %18 = vector.broadcast %cst_15 : f32 to vector<8x32xf32>
    %19 = arith.divf %17, %18 : vector<8x32xf32>
    %c0_16 = arith.constant 0 : index
    %c0_17 = arith.constant 0 : index
    %20 = vector.load %arg5[%c0_16, %c0_17] : memref<32x320xf32, #tpu.memory_space<vmem>>, vector<32x320xf32>
    %cst_18 = arith.constant dense<0.000000e+00> : vector<8x320xf32>
    %21 = tpu.matmul %19, %20, %cst_18 {dimension_numbers = #tpu.dot_dimension_numbers<[1], [0], [0], [1], [0, 0, 1, 1], [], []>, precision = #tpu.contract_precision<fp32>} : vector<8x32xf32>, vector<32x320xf32>, vector<8x320xf32> -> vector<8x320xf32>
    %22 = arith.subf %15, %21 : vector<8x320xf32>
    %23 = arith.mulf %22, %22 : vector<8x320xf32>
    %cst_19 = arith.constant dense<0.000000e+00> : vector<8x32xf32>
    %24 = tpu.matmul %23, %16, %cst_19 {dimension_numbers = #tpu.dot_dimension_numbers<[1], [0], [0], [1], [0, 0, 1, 1], [], []>, precision = #tpu.contract_precision<fp32>} : vector<8x320xf32>, vector<320x32xf32>, vector<8x32xf32> -> vector<8x32xf32>
    %cst_20 = arith.constant 9.000000e+00 : f32
    %25 = vector.broadcast %cst_20 : f32 to vector<8x32xf32>
    %26 = arith.divf %24, %25 : vector<8x32xf32>
    %27 = math.sqrt %26 : vector<8x32xf32>
    %28 = tpu.concatenate %19, %27 in 1 : vector<8x32xf32>, vector<8x32xf32> -> vector<8x64xf32>
    %c0_21 = arith.constant 0 : index
    %c0_22 = arith.constant 0 : index
    %29 = vector.load %arg6[%c0_21, %c0_22] : memref<8x64xf32, #tpu.memory_space<vmem>>, vector<8x64xf32>
    tpu.vector_store %arg6[%c0_21, %c0_22], %28 {strides = array<i32>} : memref<8x64xf32, #tpu.memory_space<vmem>>, vector<8x64xf32>,
    return
  }
}

</mosaic_0001>

<bundles_post_ra>
// kernel: tpu_custom_call.1
= control target key start
LH: loop header
LB: loop body
LE: loop exit
PB: predicated region body
PF: predicated region fallthrough
CT: control target
= control target key end

     0   :  { %11 = vsyncpa [#allocation3], 0  ;;  %s13762_s0 = inlined_call_operand.vmem [shape: f32[8,10], index: 0, kind: input, shape index: {}]   ;;  %s13763_s1 = inlined_call_operand.vmem [shape: f32[10,320], index: 1, kind: input, shape index: {}]   ;;  %s13764_s2 = inlined_call_operand.hbm [shape: f32[1,320,320], index: 2, kind: input, shape index: {}]   ;;  %s13765_s3 = inlined_call_operand.vmem [shape: f32[2,320], index: 3, kind: input, shape index: {}]   ;;  %s13766_s4 = inlined_call_operand.vmem [shape: f32[320,32], index: 4, kind: input, shape index: {}]   ;;  %s13767_s5 = inlined_call_operand.vmem [shape: f32[32,320], index: 5, kind: input, shape index: {}]   ;;  %s13768_s6 = inlined_call_operand.hbm [shape: f32[8,64], index: 6, kind: output, shape index: {}]  }
   0x1   :  { %12 = vsyncpa [#allocation4], 0  ;;  %s9775_s21 = smov [#allocation2]  }
   0x2   :  { %s22_s22 = sshll.u32 %s9775_s21, 4  ;;  %s23_s22 = int_to_ptr.vmem [resolvable:$true] %s22_s22 }
   0x3   :  { %s9739_s23 = scalar_lea.vmem %s23_s22, 15360  ;;  %p9744_p1 = scmp.lt.s32.totalorder %s23_s22, %s23_s22 }
   0x4   :  { %p9740_p0 = scmp.ne.s32.totalorder %s23_s22, %s9739_s23  ;;  %p9745_p2 = scmp.lt.s32.totalorder %s9739_s23, %s9739_s23 }
   0x6   :  { %p9746_p3 = por %p9745_p2, %p9744_p1 }
   0x8   :  { %p9747_p4 = pnand %p9746_p3, %p9740_p0 }
   0xa   :  { %9750 = shalt.err (!%p9747_p4)
}
   0xb   :  { %s9776_s24 = smov 384   ;;  %s9777_s25 = smov 24  }
   0xc   :  { %28 = dma.hbm_to_vmem [thread:$0]  %s13764_s2, 15360, %s23_s22, [#allocation3], %s9776_s24, %s9776_s24, %s9777_s25  }
   0xd   :  { %9771 = dma.done.wait [#allocation3], 15360  }
   0xe   :  { %9772 = vsyncadd [#allocation3], 4294951936  ;;  %v13793_v0 = vmov 0.0   ;;  %vm66_vm0 = vcmask 1041408   ;;  %v43_v1 = vld [vmem:[%s13763_s1 + $0x20] sm:$0x3] }
   0xf   :  { %144 = vmatprep.mubr.f32.mxu0 %v13793_v0  ;;  %240 = vmatprep.mubr.f32.mxu1 %v13793_v0  ;;  %v42_v2 = vld [vmem:[%s13763_s1 + $0x18] sm:$0x3]  ;;  %vm62_vm1 = vcmask 80896   ;;  %v71_v3 = vsel %vm66_vm0, %v43_v1, 0  ;;  %v40_v5 = vld [vmem:[%s13763_s1 + $0x8] sm:$0xff]  ;;  %v39_v6 = vld [vmem:[%s13763_s1] sm:$0xff] }
  0x10   :  { %v68_v4 = vsel %vm66_vm0, %v42_v2, 0  ;;  %v38_v7 = vld [vmem:[%s13762_s0] sm:$0xff]  ;;  %v44_v8 = vld [vmem:[%s13763_s1 + $0x28] sm:$0x3]  ;;  %v9842_v9 = vand.u32 4294901760, %v71_v3  ;;  %v9846_v11 = vand.u32 4294901760, %v40_v5 }
  0x11   :  { %v9844_v10 = vand.u32 4294901760, %v68_v4  ;;  %v9848_v12 = vand.u32 4294901760, %v39_v6  ;;  %v64_v13 = vsel %vm62_vm1, %v38_v7, 0  ;;  %v74_v18 = vsel %vm66_vm0, %v44_v8, 0  ;;  %v41_v24 = vld [vmem:[%s13763_s1 + $0x10] sm:$0xff]  ;;  %v1074_v39 = vld [vmem:[#allocation2 + $0x168] sm:$0xff] }
  0x12   :  { %105 = vmatprep.subr.mxu0 %v9842_v9  ;;  %v9852_v14 = vsub.f32 %v71_v3, %v9842_v9  ;;  %v9854_v15 = vand.u32 4294901760, %v64_v13  ;;  %v9860_v17 = vsub.f32 %v40_v5, %v9846_v11  ;;  %v9888_v30 = vand.u32 4294901760, %v74_v18  ;;  %v1075_v37 = vld [vmem:[#allocation2 + $0x170] sm:$0xff]  ;;  %v1072_v41 = vld [vmem:[#allocation2 + $0x158] sm:$0xff]  ;;  %v1069_v45 = vld [vmem:[#allocation2 + $0x140] sm:$0xff]  ;;  %s9781_s1 = smov [#allocation5]  }
  0x13   :  { %v9857_v16 = vsub.f32 %v68_v4, %v9844_v10  ;;  %107 = vmatpush1.msra.mxu0 %v9844_v10  ;;  %v9865_v19 = vsub.f32 %v39_v6, %v9848_v12  ;;  %v9893_v32 = vand.u32 4294901760, %v41_v24  ;;  %v1071_v42 = vld [vmem:[#allocation2 + $0x150] sm:$0xff]  ;;  %v9902_v44 = vand.u32 4294901760, %v1075_v37  ;;  %v1068_v46 = vld [vmem:[#allocation2 + $0x138] sm:$0xff]  ;;  %v1066_v49 = vld [vmem:[#allocation2 + $0x128] sm:$0xff]  ;;  %s8421_s16 = sshll.u32 %s9781_s1, 4  ;;  %s8422_s16 = int_to_ptr.vmem [resolvable:$true] %s8421_s16 }
  0x14   :  { %109 = vmatprep.subr.mxu0 %v9846_v11  ;;  %v186_v20 = vand.u32 4294901760, %v9852_v14  ;;  %v9870_v21 = vsub.f32 %v64_v13, %v9854_v15  ;;  %v198_v23 = vand.u32 4294901760, %v9860_v17  ;;  %v9900_v43 = vsub.f32 %v74_v18, %v9888_v30  ;;  %v1065_v52 = vld [vmem:[#allocation2 + $0x120] sm:$0xff]  ;;  %v1063_v61 = vld [vmem:[#allocation2 + $0x110] sm:$0xff]  ;;  %v1062_v3 = vld [vmem:[#allocation2 + $0x108] sm:$0xff]  ;;  %s9751_s17 = scalar_lea.vmem %s8422_s16, 128  ;;  %p9756_p6 = scmp.lt.s32.totalorder %s8422_s16, %s8422_s16 }
  0x15   :  { %v192_v22 = vand.u32 4294901760, %v9857_v16  ;;  %111 = vmatpush1.msra.mxu0 %v9848_v12  ;;  %v204_v25 = vand.u32 4294901760, %v9865_v19  ;;  %14346 = vst [vmem:[#allocation8_spill] sm:$0xff] %v9902_v44  ;;  %v9906_v47 = vsub.f32 %v41_v24, %v9893_v32  ;;  %v9908_v48 = vand.u32 4294901760, %v1074_v39  ;;  %v1059_v24 = vld [vmem:[#allocation2 + $0xf0] sm:$0xff]  ;;  %p9752_p5 = scmp.ne.s32.totalorder %s8422_s16, %s9751_s17  ;;  %p9757_p7 = scmp.lt.s32.totalorder %s9751_s17, %s9751_s17 }
  0x16   :  { %v187_v26 = vsub.f32 %v9852_v14, %v186_v20  ;;  %v9881_v27 = vand.u32 4294901760, %v9870_v21  ;;  %278 = vmatprep.subr.mxu0 %v9852_v14  ;;  %v199_v29 = vsub.f32 %v9860_v17, %v198_v23  ;;  %v9911_v50 = vand.u32 4294901760, %v1072_v41 }
  0x17   :  { %v193_v28 = vsub.f32 %v9857_v16, %v192_v22  ;;  %v205_v31 = vsub.f32 %v9865_v19, %v204_v25  ;;  %14347 = vst [vmem:[#allocation9_spill] sm:$0xff] %v9908_v48  ;;  %v9913_v51 = vand.u32 4294901760, %v1071_v42  ;;  %v9917_v53 = vand.u32 4294901760, %v1069_v45  ;;  %p9758_p8 = por %p9757_p7, %p9756_p6 }
  0x18   :  { %v188_v33 = vand.u32 4294901760, %v187_v26  ;;  %v148_v34 = vsub.f32 %v9870_v21, %v9881_v27  ;;  %v200_v36 = vand.u32 4294901760, %v199_v29  ;;  %14348 = vst [vmem:[#allocation10_spill] sm:$0xff] %v9911_v50  ;;  %v9919_v54 = vand.u32 4294901760, %v1068_v46 }
  0x19   :  { %v194_v35 = vand.u32 4294901760, %v193_v28  ;;  %v206_v38 = vand.u32 4294901760, %v205_v31  ;;  %14349 = vst [vmem:[#allocation11_spill] sm:$0xff] %v9913_v51  ;;  %14350 = vst [vmem:[#allocation12_spill] sm:$0xff] %v9917_v53  ;;  %v13778_v55 = vand.u32 4294901760, %v9900_v43  ;;  %v9925_v56 = vsub.f32 %v1075_v37, %v9902_v44  ;;  %v1057_v28 = vld [vmem:[#allocation2 + $0xe0] sm:$0xff]  ;;  %p9759_p9 = pnand %p9758_p8, %p9752_p5 }
  0x1a   :  { %189 = vmatprep.subr.mxu1 %v188_v33  ;;  %v9897_v40 = vand.u32 4294901760, %v148_v34  ;;  %14351 = vst [vmem:[#allocation13_spill] sm:$0xff] %v9919_v54  ;;  %v9927_v57 = vand.u32 4294901760, %v1066_v49  ;;  %v13777_v58 = vand.u32 4294901760, %v9906_v47  ;;  %v9933_v59 = vsub.f32 %v1074_v39, %v9908_v48  ;;  %v1056_v34 = vld [vmem:[#allocation2 + $0xd8] sm:$0xff] }
  0x1b   :  { %195 = vmatpush1.msra.mxu1 %v194_v35  ;;  %14352 = vst [vmem:[#allocation14_spill] sm:$0xff] %v9925_v56  ;;  %v9935_v60 = vand.u32 4294901760, %v1065_v52  ;;  %v9939_v62 = vsub.f32 %v1072_v41, %v9911_v50  ;;  %v9942_v63 = vsub.f32 %v1071_v42, %v9913_v51  ;;  %v9946_v1 = vsub.f32 %v1069_v45, %v9917_v53  ;;  %v1054_v35 = vld [vmem:[#allocation2 + $0xc8] sm:$0xff] }
  0x1c   :  { %150 = vmatmul.mubr.f32.vlgmr.msra.gmra.mxu0 %v9897_v40  ;;  %201 = vmatprep.subr.mxu1 %v200_v36  ;;  %14353 = vst [vmem:[#allocation15_spill] sm:$0xff] %v9927_v57  ;;  %14354 = vst [vmem:[#allocation16_spill] sm:$0xff] %v9933_v59  ;;  %v9949_v2 = vsub.f32 %v1068_v46, %v9919_v54  ;;  %v676_v4 = vsub.f32 %v9900_v43, %v13778_v55  ;;  %v13776_v5 = vand.u32 4294901760, %v9925_v56  ;;  %vm9779_vm2 = vmmov 0  }
  0x1d   :  { %281 = vmatpush1.msra.mxu0 %v9857_v16  ;;  %207 = vmatpush1.msra.mxu1 %v206_v38  ;;  %14355 = vst [vmem:[#allocation17_spill] sm:$0xff] %v9935_v60  ;;  %14356 = vst [vmem:[#allocation18_spill] sm:$0xff] %v9939_v62  ;;  %v9958_v6 = vsub.f32 %v1066_v49, %v9927_v57  ;;  %v9960_v7 = vand.u32 4294901760, %v1063_v61  ;;  %v683_v8 = vsub.f32 %v9906_v47, %v13777_v58  ;;  %v1045_v58 = vld [vmem:[#allocation2 + $0x80] sm:$0xff]  ;;  %vm1167_vm3 = vcmask 523264  }
  0x1e   :  { %284 = vmatprep.subr.mxu0 %v9860_v17  ;;  %242 = vmatmul.mubr.f32.vlgmr.msra.gmra.mxu1 %v9854_v15  ;;  %14357 = vst [vmem:[#allocation19_spill] sm:$0xff] %v9942_v63  ;;  %14358 = vst [vmem:[#allocation20_spill] sm:$0xff] %v9946_v1  ;;  %v13775_v13 = vand.u32 4294901760, %v9933_v59  ;;  %v9970_v14 = vsub.f32 %v1065_v52, %v9935_v60  ;;  %v13773_v16 = vand.u32 4294901760, %v9939_v62  ;;  %v13772_v17 = vand.u32 4294901760, %v9942_v63  ;;  %v1053_v52 = vld [vmem:[#allocation2 + $0xc0] sm:$0xff] }
  0x1f   :  { %287 = vmatpush1.msra.mxu0 %v9865_v19  ;;  %320 = vmatprep.mubr.f32.mxu0 %v13793_v0  ;;  %14359 = vst [vmem:[#allocation21_spill] sm:$0xff] %v9949_v2  ;;  %14360 = vst [vmem:[#allocation22_spill] sm:$0xff] %v9958_v6  ;;  %v9977_v18 = vand.u32 4294901760, %v1062_v3  ;;  %v677_v19 = vand.u32 4294901760, %v676_v4  ;;  %v13769_v26 = vand.u32 4294901760, %v9958_v6  ;;  %v684_v29 = vand.u32 4294901760, %v683_v8 }
  0x20   :  { %358 = vmatprep.subr.mxu1 %v9842_v9  ;;  %323 = vmatmul.mubr.f32.vlgmr.msra.gmra.mxu0 %v9870_v21  ;;  %14361 = vst [vmem:[#allocation23_spill] sm:$0xff] %v9960_v7  ;;  %14362 = vst [vmem:[#allocation24_spill] sm:$0xff] %v9970_v14  ;;  %v13774_v31 = vand.u32 4294901760, %v9970_v14  ;;  %v10014_v36 = vsub.f32 %v9942_v63, %v13772_v17  ;;  %v10019_v38 = vand.u32 4294901760, %v1059_v24  ;;  %v10033_v41 = vand.u32 4294901760, %v1057_v28  ;;  %v1051_v17 = vld [vmem:[#allocation2 + $0xb0] sm:$0xff] }
  0x21   :  { %360 = vmatpush1.msra.mxu1 %v9844_v10  ;;  %438 = vmatprep.subr.mxu0 %v186_v20  ;;  %v1060_v20 = vld [vmem:[#allocation2 + $0xf8] sm:$0xff]  ;;  %v10017_v37 = vsub.f32 %v1062_v3, %v9977_v18  ;;  %v10040_v42 = vsub.f32 %v9958_v6, %v13769_v26  ;;  %v10043_v46 = vand.u32 4294901760, %v1056_v34  ;;  %v10045_v49 = vand.u32 4294901760, %v1054_v35  ;;  %v1047_v26 = vld [vmem:[#allocation2 + $0x90] sm:$0xff] }
  0x22   :  { %362 = vmatprep.subr.mxu1 %v9846_v11  ;;  %442 = vmatpush1.msra.mxu0 %v192_v22  ;;  %v13771_v22 = vand.u32 4294901760, %v9946_v1  ;;  %v10002_v33 = vand.u32 4294901760, %v1060_v20  ;;  %14366 = vst [vmem:[#allocation28_spill] sm:$0xff] %v10019_v38  ;;  %v10054_v4 = vsub.f32 %v9970_v14, %v13774_v31  ;;  %v10071_v31 = vsub.f32 %v1057_v28, %v10033_v41 }
  0x23   :  { %364 = vmatpush1.msra.mxu1 %v9848_v12  ;;  %397 = vmatprep.mubr.f32.mxu1 %v13793_v0  ;;  %14365 = vst [vmem:[#allocation27_spill] sm:$0xff] %v10017_v37  ;;  %v10088_v28 = vsub.f32 %v1054_v35, %v10045_v49  ;;  %v10094_v55 = vand.u32 4294901760, %v1051_v17  ;;  %vm5960_vm4 = vcmask 261120  }
  0x24   :  { %446 = vmatprep.subr.mxu0 %v198_v23  ;;  %401 = vmatmul.mubr.f32.vlgmr.msra.gmra.mxu1 %v9881_v27  ;;  %v13770_v23 = vand.u32 4294901760, %v9949_v2  ;;  %14364 = vst [vmem:[#allocation26_spill] sm:$0xff] %v10002_v33  ;;  %v10057_v8 = vsub.f32 %v1060_v20, %v10002_v33  ;;  %14369 = vst [vmem:[#allocation31_spill] sm:$0xff] %v10071_v31 }
  0x25   :  { %450 = vmatpush1.msra.mxu0 %v204_v25  ;;  %483 = vmatprep.mubr.f32.mxu0 %v13793_v0  ;;  %v9988_v25 = vsub.f32 %v9925_v56, %v13776_v5  ;;  %v1048_v5 = vld [vmem:[#allocation2 + $0x98] sm:$0xff]  ;;  %14372 = vst [vmem:[#allocation34_spill] sm:$0xff] %v10088_v28  ;;  %14373 = vst [vmem:[#allocation35_spill] sm:$0xff] %v10094_v55 }
  0x26   :  { %520 = vmatprep.subr.mxu1 %v9842_v9  ;;  %485 = vmatmul.mubr.f32.vlgmr.msra.gmra.mxu0 %v9854_v15  ;;  %v9992_v9 = vsub.f32 %v1063_v61, %v9960_v7  ;;  %v10031_v39 = vsub.f32 %v9949_v2, %v13770_v23  ;;  %14367 = vst [vmem:[#allocation29_spill] sm:$0xff] %v10057_v8  ;;  %v13788_v23 = vand.u32 4294901760, %v10017_v37  ;;  %v1042_v61 = vld [vmem:[#allocation2 + $0x68] sm:$0xff]  ;;  %v10106_v3 = vand.u32 4294901760, %v1048_v5 }
  0x27   :  { %522 = vmatpush1.msra.mxu1 %v9844_v10  ;;  %559 = vmatprep.mubr.f32.mxu1 %v13793_v0  ;;  %v9999_v10 = vsub.f32 %v9933_v59, %v13775_v13  ;;  %v10073_v13 = vand.u32 4294901760, %v1053_v52  ;;  %v10117_v2 = vand.u32 4294901760, %v1045_v58  ;;  %v14383_v14 = vand.u32 4294901760, %v10057_v8 }
  0x28   :  { %14363 = vst [vmem:[#allocation25_spill] sm:$0xff] %v9992_v9  ;;  %524 = vmatprep.subr.mxu1 %v9846_v11  ;;  %9271 = vmatprep.subr.mxu0 %v13793_v0  ;;  %v10009_v11 = vsub.f32 %v9939_v62, %v13773_v16  ;;  %v13779_v45 = vand.u32 4294901760, %v9992_v9  ;;  %v1050_v16 = vld [vmem:[#allocation2 + $0xa8] sm:$0xff]  ;;  %v10103_v35 = vsub.f32 %v10017_v37, %v13788_v23  ;;  %14375 = vst [vmem:[#allocation37_spill] sm:$0xff] %v10106_v3 }
  0x29   :  { %526 = vmatpush1.msra.mxu1 %v9848_v12  ;;  %9272 = vmatpush3.msra.mxu0 %v9888_v30  ;;  %v10026_v12 = vsub.f32 %v9946_v1, %v13771_v22  ;;  %v10064_v22 = vsub.f32 %v1059_v24, %v10019_v38  ;;  %14370 = vst [vmem:[#allocation32_spill] sm:$0xff] %v10073_v13  ;;  %v10108_v24 = vand.u32 4294901760, %v1047_v26  ;;  %14378 = vst [vmem:[#allocation40_spill] sm:$0xff] %v10117_v2 }
  0x2a   :  { %561 = vmatmul.mubr.f32.vlgmr.msra.gmra.mxu1 %v9854_v15  ;;  %9278 = vmatprep.subr.mxu1 %v13793_v0  ;;  %v10082_v20 = vsub.f32 %v9992_v9, %v13779_v45  ;;  %v10096_v45 = vand.u32 4294901760, %v1050_v16  ;;  %v1039_v9 = vld [vmem:[#allocation2 + $0x50] sm:$0xff]  ;;  %v10115_v6 = vsub.f32 %v1053_v52, %v10073_v13  ;;  %v10125_v1 = vand.u32 4294901760, %v1042_v61 }
  0x2b   :  { %9279 = vmatpush3.msra.mxu1 %v677_v19  ;;  %9282 = vmatprep.mubr.msk.f32.mxu1 %vm9779_vm2, %v13793_v0  ;;  %14368 = vst [vmem:[#allocation30_spill] sm:$0xff] %v10064_v22  ;;  %v1044_v19 = vld [vmem:[#allocation2 + $0x78] sm:$0xff]  ;;  %14376 = vst [vmem:[#allocation38_spill] sm:$0xff] %v10108_v24  ;;  %v14382_v52 = vmov 0.0   ;;  %v10134_v63 = vsub.f32 %v10057_v8, %v14383_v14  ;;  %v10137_v62 = vsub.f32 %v1051_v17, %v10094_v55  ;;  %v10142_v37 = vand.u32 4294901760, %v1039_v9  ;;  %v1038_v8 = vld [vmem:[#allocation2 + $0x48] sm:$0xff] }
  0x2c   :  { %9280 = vmatprep.subr.mxu1 %v13793_v0  ;;  %9273 = vmatprep.subr.mxu0 %v13793_v0  ;;  %14374 = vst [vmem:[#allocation36_spill] sm:$0xff] %v10096_v45  ;;  %14377 = vst [vmem:[#allocation39_spill] sm:$0xff] %v10115_v6  ;;  %v10119_v23 = vand.u32 4294901760, %v1044_v19  ;;  %v10153_v14 = vsub.f32 %v1048_v5, %v10106_v3  ;;  %v10156_v17 = vsub.f32 %v1047_v26, %v10108_v24 }
  0x2d   :  { %9281 = vmatpush3.msra.mxu1 %v684_v29  ;;  %9274 = vmatpush3.msra.mxu0 %v9893_v32  ;;  %v10085_v29 = vsub.f32 %v1056_v34, %v10043_v46  ;;  %v1041_v34 = vld [vmem:[#allocation2 + $0x60] sm:$0xff]  ;;  %14380 = vst [vmem:[#allocation42_spill] sm:$0xff] %v10125_v1  ;;  %14384 = vst [vmem:[#allocation44_spill] sm:$0xff] %v10137_v62 }
  0x2e   :  { %9292 = vmatprep.subr.mxu1 %v13793_v0  ;;  %9283 = vmatmul.mubr.f32.vlgmr.msra.gmra.mxu1 %v9854_v15  ;;  %14379 = vst [vmem:[#allocation41_spill] sm:$0xff] %v10119_v23  ;;  %14386 = vst [vmem:[#allocation46_spill] sm:$0xff] %v10142_v37  ;;  %v10171_v5 = vsub.f32 %v1044_v19, %v10119_v23  ;;  %v14397_v19 = vand.u32 4294901760, %v10088_v28 }
  0x2f   :  { %9293 = vmatpush3.msra.mxu1 %v9888_v30  ;;  %9275 = vmatprep.mubr.msk.f32.mxu0 %vm9779_vm2, %v13793_v0  ;;  %14371 = vst [vmem:[#allocation33_spill] sm:$0xff] %v10085_v29  ;;  %14388 = vst [vmem:[#allocation47_spill] sm:$0xff] %v10153_v14 }
  0x30   :  { %9294 = vmatprep.subr.mxu1 %v13793_v0  ;;  %9276 = vmatmul.mubr.f32.vlgmr.msra.gmra.mxu0 %v9897_v40  ;;  %v14387_v40 = vand.u32 4294901760, %v10064_v22  ;;  %14389 = vst [vmem:[#allocation48_spill] sm:$0xff] %v10156_v17  ;;  %14392 = vst [vmem:[#allocation50_spill] sm:$0xff] %v10171_v5  ;;  %v10194_v26 = vsub.f32 %v10088_v28, %v14397_v19  ;;  %v1036_v28 = vld [vmem:[#allocation2 + $0x38] sm:$0xff]  ;;  %v14403_v19 = vand.u32 4294901760, %v10009_v11  ;;  %v14406_v11 = vand.u32 4294901760, %v10137_v62 }
  0x31   :  { %9295 = vmatpush3.msra.mxu1 %v9893_v32  ;;  %9285 = vmatprep.subr.mxu0 %v13793_v0 }
  0x32   :  { %9296 = vmatprep.mubr.msk.f32.mxu1 %vm9779_vm2, %v13793_v0  ;;  %9306 = vmatprep.subr.mxu1 %v13793_v0  ;;  %v10127_v0 = vand.u32 4294901760, %v1041_v34  ;;  %v10150_v59 = vsub.f32 %v10064_v22, %v14387_v40  ;;  %v10168_v40 = vsub.f32 %v1045_v58, %v10117_v2  ;;  %v14444_v56 = vand.u32 4294901760, %v10194_v26 }
  0x33   :  { %9286 = vmatpush3.msra.mxu0 %v9900_v43  ;;  %9297 = vmatmul.mubr.f32.vlgmr.msra.gmra.mxu1 %v9881_v27  ;;  %v10140_v27 = vsub.f32 %v1050_v16, %v10096_v45  ;;  %v14390_v16 = vand.u32 4294901760, %v10071_v31 }
  0x34   :  { %14381 = vst [vmem:[#allocation43_spill] sm:$0xff] %v10127_v0  ;;  %9307 = vmatpush3.msra.mxu1 %v9888_v30  ;;  %9287 = vmatprep.subr.mxu0 %v14382_v52  ;;  %14391 = vst [vmem:[#allocation49_spill] sm:$0xff] %v10168_v40  ;;  %v10185_v58 = vsub.f32 %v1041_v34, %v10127_v0  ;;  %v14399_v34 = vand.u32 4294901760, %v9900_v43 }
  0x35   :  { %14385 = vst [vmem:[#allocation45_spill] sm:$0xff] %v10140_v27  ;;  %9308 = vmatprep.subr.mxu1 %v14382_v52  ;;  %9288 = vmatpush3.msra.mxu0 %v9906_v47  ;;  %v10164_v30 = vsub.f32 %v10071_v31, %v14390_v16  ;;  %v10182_v16 = vsub.f32 %v1042_v61, %v10125_v1  ;;  %v1035_v31 = vld [vmem:[#allocation2 + $0x30] sm:$0xff] }
  0x36   :  { %9289 = vmatprep.mubr.msk.f32.mxu0 %vm9779_vm2, %v14382_v52  ;;  %9309 = vmatpush3.msra.mxu1 %v9893_v32  ;;  %v14393_v32 = vand.u32 4294901760, %v10085_v29  ;;  %14395 = vst [vmem:[#allocation52_spill] sm:$0xff] %v10185_v58  ;;  %v10259_v61 = vand.u32 4294901760, %v1035_v31 }
  0x37   :  { %9290 = vmatmul.mubr.f32.vlgmr.msra.gmra.mxu0 %v9870_v21  ;;  %9299 = vmatprep.subr.mxu0 %v14382_v52  ;;  %14394 = vst [vmem:[#allocation51_spill] sm:$0xff] %v10182_v16  ;;  %v14396_v21 = vand.u32 4294901760, %v9988_v25  ;;  %v14405_v25 = vand.u32 4294901760, %v10014_v36  ;;  %v14409_v36 = vand.u32 4294901760, %v10026_v12 }
  0x38   :  { %v10179_v22 = vsub.f32 %v10085_v29, %v14393_v32  ;;  %9310 = vmatprep.mubr.msk.f32.mxu1 %vm9779_vm2, %v14382_v52  ;;  %v10199_v29 = vsub.f32 %v1039_v9, %v10142_v37  ;;  %9300 = vmatpush3.msra.mxu0 %v14399_v34  ;;  %v14400_v32 = vand.u32 4294901760, %v9999_v10  ;;  %v14401_v9 = vand.u32 4294901760, %v10115_v6  ;;  %v1033_v34 = vld [vmem:[#allocation2 + $0x20] sm:$0xff]  ;;  %14412 = vst [vmem:[#allocation56_spill] sm:$0xff] %v10259_v61 }
  0x39   :  { %1321 = vmatprep.subr.mxu1 %v14396_v21  ;;  %9311 = vmatmul.mubr.f32.vlgmr.msra.gmra.mxu1 %v9854_v15  ;;  %v10218_v21 = vand.u32 4294901760, %v1038_v8  ;;  %v14404_v10 = vand.u32 4294901760, %v9906_v47  ;;  %v10235_v47 = vsub.f32 %v10137_v62, %v14406_v11  ;;  %v14410_v11 = vand.u32 4294901760, %v10153_v14  ;;  %v1119_v62 = vld [vmem:[#allocation2 + $0x2d0] sm:$0xff] }
  0x3a   :  { %14398 = vst [vmem:[#allocation53_spill] sm:$0xff] %v10199_v29  ;;  %1327 = vmatpush1.msra.mxu1 %v14400_v32  ;;  %9301 = vmatprep.subr.mxu0 %v14382_v52  ;;  %v10214_v43 = vsub.f32 %v10115_v6, %v14401_v9  ;;  %v10243_v32 = vand.u32 4294901760, %v1036_v28  ;;  %v1032_v6 = vld [vmem:[#allocation2 + $0x18] sm:$0xff] }
  0x3b   :  { %14402 = vst [vmem:[#allocation54_spill] sm:$0xff] %v10218_v21  ;;  %1333 = vmatprep.subr.mxu1 %v14403_v19  ;;  %9302 = vmatpush3.msra.mxu0 %v14404_v10  ;;  %v14407_v19 = vand.u32 4294901760, %v10140_v27  ;;  %v10252_v9 = vsub.f32 %v10153_v14, %v14410_v11  ;;  %v14422_v14 = vand.u32 4294901760, %v10054_v4  ;;  %v1117_v4 = vld [vmem:[#allocation2 + $0x2c0] sm:$0xff] }
  0x3c   :  { %9303 = vmatprep.mubr.msk.f32.mxu0 %vm9779_vm2, %v14382_v52  ;;  %1339 = vmatpush1.msra.mxu1 %v14405_v25  ;;  %14408 = vst [vmem:[#allocation55_spill] sm:$0xff] %v10243_v32  ;;  %v10277_v25 = vand.u32 4294901760, %v1033_v34 }
  0x3d   :  { %v10240_v10 = vsub.f32 %v10140_v27, %v14407_v19  ;;  %9304 = vmatmul.mubr.f32.vlgmr.msra.gmra.mxu0 %v9854_v15  ;;  %1345 = vmatprep.subr.mxu1 %v14409_v36  ;;  %v14411_v19 = vand.u32 4294901760, %v10156_v17  ;;  %v14413_v27 = vand.u32 4294901760, %v10031_v39  ;;  %v14414_v15 = vand.u32 4294901760, %v10168_v40 }
  0x3e   :  { %1172 = vmatprep.subr.mxu0 %v9902_v44  ;;  %v14415_v36 = vand.u32 4294901760, %v10171_v5  ;;  %14417 = vst [vmem:[#allocation58_spill] sm:$0xff] %v10277_v25  ;;  %v14418_v39 = vand.u32 4294901760, %v10040_v42  ;;  %v1416_v42 = vand.u32 4294901760, %v10235_v47  ;;  %v10314_v47 = vsub.f32 %v1035_v31, %v10259_v61  ;;  %v1120_v31 = vld [vmem:[#allocation2 + $0x2d8] sm:$0xff] }
  0x3f   :  { %v10257_v52 = vsub.f32 %v10156_v17, %v14411_v19  ;;  %1351 = vmatpush1.msra.mxu1 %v14413_v27  ;;  %v10267_v12 = vsub.f32 %v10168_v40, %v14414_v15  ;;  %v10275_v19 = vsub.f32 %v1038_v8, %v10218_v21  ;;  %v1030_v17 = vld [vmem:[#allocation2 + $0x8] sm:$0xff]  ;;  %1174 = vmatpush1.msra.mxu0 %v9908_v48  ;;  %v1410_v27 = vand.u32 4294901760, %v10214_v43 }
  0x40   :  { %v10272_v11 = vsub.f32 %v10171_v5, %v14415_v36  ;;  %1357 = vmatprep.subr.mxu1 %v14418_v39  ;;  %v14419_v15 = vand.u32 4294901760, %v10182_v16  ;;  %v14420_v36 = vand.u32 4294901760, %v10185_v58  ;;  %v10293_v5 = vand.u32 4294901760, %v1032_v6  ;;  %1176 = vmatprep.subr.mxu0 %v9911_v50  ;;  %14426 = vst [vmem:[#allocation61_spill] sm:$0xff] %v10314_v47 }
  0x41   :  { %14416 = vst [vmem:[#allocation57_spill] sm:$0xff] %v10275_v19  ;;  %1363 = vmatpush1.msra.mxu1 %v14422_v14  ;;  %v14423_v39 = vand.u32 4294901760, %v10199_v29  ;;  %1178 = vmatpush1.msra.mxu0 %v9913_v51  ;;  %v10316_v43 = vand.u32 4294901760, %v1030_v17  ;;  %v10325_v14 = vsub.f32 %v1033_v34, %v10277_v25  ;;  %v14430_v51 = vand.u32 4294901760, %v10134_v63  ;;  %v1111_v63 = vld [vmem:[#allocation2 + $0x290] sm:$0xff] }
  0x42   :  { %v10286_v40 = vsub.f32 %v10182_v16, %v14419_v15  ;;  %v10291_v8 = vsub.f32 %v10185_v58, %v14420_v36  ;;  %14421 = vst [vmem:[#allocation59_spill] sm:$0xff] %v10293_v5  ;;  %v10306_v16 = vsub.f32 %v1036_v28, %v10243_v32  ;;  %v1029_v36 = vld [vmem:[#allocation2] sm:$0xff]  ;;  %v14425_v58 = vand.u32 4294901760, %v10082_v20  ;;  %1180 = vmatprep.subr.mxu0 %v9917_v53  ;;  %v1116_v53 = vld [vmem:[#allocation2 + $0x2b8] sm:$0xff] }
  0x43   :  { %v10303_v15 = vsub.f32 %v10199_v29, %v14423_v39  ;;  %14427 = vst [vmem:[#allocation62_spill] sm:$0xff] %v10316_v43  ;;  %v1123_v39 = vld [vmem:[#allocation2 + $0x2f0] sm:$0xff]  ;;  %v1122_v29 = vld [vmem:[#allocation2 + $0x2e8] sm:$0xff]  ;;  %v14428_v28 = vand.u32 4294901760, %v10103_v35  ;;  %14429 = vst [vmem:[#allocation63_spill] sm:$0xff] %v10325_v14  ;;  %1182 = vmatpush1.msra.mxu0 %v9919_v54  ;;  %v10333_v20 = vsub.f32 %v1032_v6, %v10293_v5  ;;  %v14433_v34 = vand.u32 4294901760, %v10150_v59 }
  0x44   :  { %14424 = vst [vmem:[#allocation60_spill] sm:$0xff] %v10306_v16  ;;  %1369 = vmatprep.subr.mxu1 %v14425_v58  ;;  %v10335_v58 = vand.u32 4294901760, %v1029_v36  ;;  %1184 = vmatprep.subr.mxu0 %v9927_v57  ;;  %v10342_v54 = vand.u32 4294901760, %v1123_v39  ;;  %v10344_v35 = vand.u32 4294901760, %v1122_v29  ;;  %v1113_v6 = vld [vmem:[#allocation2 + $0x2a0] sm:$0xff]  ;;  %v14436_v50 = vand.u32 4294901760, %v10164_v30 }
  0x45   :  { %1375 = vmatpush1.msra.mxu1 %v14428_v28  ;;  %14431 = vst [vmem:[#allocation64_spill] sm:$0xff] %v10333_v20  ;;  %v1114_v28 = vld [vmem:[#allocation2 + $0x2a8] sm:$0xff]  ;;  %1186 = vmatpush1.msra.mxu0 %v9935_v60  ;;  %v10353_v57 = vand.u32 4294901760, %v1120_v31  ;;  %v14440_v48 = vand.u32 4294901760, %v10179_v22  ;;  %v14441_v30 = vand.u32 4294901760, %v10275_v19  ;;  %v10366_v60 = vand.u32 4294901760, %v1117_v4 }
  0x46   :  { %1381 = vmatprep.subr.mxu1 %v14430_v51  ;;  %14432 = vst [vmem:[#allocation65_spill] sm:$0xff] %v10335_v58  ;;  %14434 = vst [vmem:[#allocation66_spill] sm:$0xff] %v10342_v54  ;;  %v10355_v51 = vand.u32 4294901760, %v1119_v62  ;;  %1188 = vmatprep.subr.mxu0 %v9960_v7  ;;  %v10375_v22 = vsub.f32 %v1029_v36, %v10335_v58  ;;  %v10377_v7 = vand.u32 4294901760, %v1114_v28  ;;  %v14448_v59 = vand.u32 4294901760, %v10306_v16 }
  0x47   :  { %1387 = vmatpush1.msra.mxu1 %v14433_v34  ;;  %14435 = vst [vmem:[#allocation67_spill] sm:$0xff] %v10344_v35  ;;  %v10351_v34 = vsub.f32 %v1030_v17, %v10316_v43  ;;  %14438 = vst [vmem:[#allocation69_spill] sm:$0xff] %v10353_v57  ;;  %v10368_v17 = vand.u32 4294901760, %v1116_v53  ;;  %1190 = vmatpush1.msra.mxu0 %v9977_v18  ;;  %v10391_v26 = vsub.f32 %v1122_v29, %v10344_v35  ;;  %v1110_v29 = vld [vmem:[#allocation2 + $0x288] sm:$0xff] }
  0x48   :  { %1393 = vmatprep.subr.mxu1 %v14436_v50  ;;  %14439 = vst [vmem:[#allocation70_spill] sm:$0xff] %v10355_v51  ;;  %v10363_v50 = vsub.f32 %v10275_v19, %v14441_v30  ;;  %14442 = vst [vmem:[#allocation71_spill] sm:$0xff] %v10366_v60  ;;  %v10379_v30 = vand.u32 4294901760, %v1113_v6  ;;  %1192 = vmatprep.subr.mxu0 %v10002_v33  ;;  %v10385_v19 = vsub.f32 %v10306_v16, %v14448_v59 }
  0x49   :  { %14437 = vst [vmem:[#allocation68_spill] sm:$0xff] %v10351_v34  ;;  %1399 = vmatpush1.msra.mxu1 %v14440_v48  ;;  %14443 = vst [vmem:[#allocation72_spill] sm:$0xff] %v10368_v17  ;;  %v10393_v36 = vand.u32 4294901760, %v1111_v63  ;;  %1194 = vmatpush1.msra.mxu0 %v10019_v38  ;;  %v10403_v59 = vsub.f32 %v1120_v31, %v10353_v57  ;;  %v14455_v16 = vand.u32 4294901760, %v10240_v10  ;;  %v14456_v38 = vand.u32 4294901760, %v10325_v14 }
  0x4a   :  { %1405 = vmatprep.subr.mxu1 %v14444_v56  ;;  %14445 = vst [vmem:[#allocation73_spill] sm:$0xff] %v10375_v22  ;;  %14446 = vst [vmem:[#allocation74_spill] sm:$0xff] %v10377_v7  ;;  %v10388_v56 = vsub.f32 %v1123_v39, %v10342_v54  ;;  %v10406_v39 = vsub.f32 %v1119_v62, %v10355_v51  ;;  %1196 = vmatprep.subr.mxu0 %v10033_v41  ;;  %v1108_v62 = vld [vmem:[#allocation2 + $0x278] sm:$0xff] }
  0x4b   :  { %14447 = vst [vmem:[#allocation75_spill] sm:$0xff] %v10379_v30  ;;  %1411 = vmatpush1.msra.mxu1 %v1410_v27  ;;  %14450 = vst [vmem:[#allocation77_spill] sm:$0xff] %v10391_v26  ;;  %v14452_v27 = vand.u32 4294901760, %v10314_v47  ;;  %v10418_v33 = vsub.f32 %v1117_v4, %v10366_v60  ;;  %v10421_v31 = vsub.f32 %v1116_v53, %v10368_v17  ;;  %1198 = vmatpush1.msra.mxu0 %v10043_v46  ;;  %v1107_v53 = vld [vmem:[#allocation2 + $0x270] sm:$0xff] }
  0x4c   :  { %14449 = vst [vmem:[#allocation76_spill] sm:$0xff] %v10388_v56  ;;  %14451 = vst [vmem:[#allocation78_spill] sm:$0xff] %v10393_v36  ;;  %1417 = vmatprep.subr.mxu1 %v1416_v42  ;;  %v1470_v42 = vand.u32 4294901760, %v10363_v50  ;;  %v10433_v50 = vsub.f32 %v1114_v28, %v10377_v7  ;;  %v10436_v4 = vsub.f32 %v1113_v6, %v10379_v30  ;;  %1200 = vmatprep.subr.mxu0 %v10045_v49 }
  0x4d   :  { %v10399_v48 = vsub.f32 %v10314_v47, %v14452_v27  ;;  %14453 = vst [vmem:[#allocation79_spill] sm:$0xff] %v10403_v59  ;;  %14454 = vst [vmem:[#allocation80_spill] sm:$0xff] %v10406_v39  ;;  %1423 = vmatpush1.msra.mxu1 %v14455_v16  ;;  %v10415_v27 = vsub.f32 %v10325_v14, %v14456_v38  ;;  %v14459_v47 = vand.u32 4294901760, %v10252_v9  ;;  %v14460_v16 = vand.u32 4294901760, %v10333_v20 }
  0x4e   :  { %14457 = vst [vmem:[#allocation81_spill] sm:$0xff] %v10418_v33  ;;  %14458 = vst [vmem:[#allocation82_spill] sm:$0xff] %v10421_v31  ;;  %v14463_v14 = vand.u32 4294901760, %v10257_v52  ;;  %v10446_v38 = vand.u32 4294901760, %v1110_v29  ;;  %v14466_v28 = vand.u32 4294901760, %v10267_v12  ;;  %1202 = vmatpush1.msra.mxu0 %v10073_v13  ;;  %v14467_v6 = vand.u32 4294901760, %v10351_v34 }
  0x4f   :  { %1429 = vmatprep.subr.mxu1 %v14459_v47  ;;  %v10429_v10 = vsub.f32 %v10333_v20, %v14460_v16  ;;  %14461 = vst [vmem:[#allocation83_spill] sm:$0xff] %v10433_v50  ;;  %14462 = vst [vmem:[#allocation84_spill] sm:$0xff] %v10436_v4  ;;  %v10444_v16 = vsub.f32 %v1111_v63, %v10393_v36  ;;  %v10456_v20 = vand.u32 4294901760, %v1108_v62  ;;  %v14469_v63 = vand.u32 4294901760, %v10272_v11 }
  0x50   :  { %1435 = vmatpush1.msra.mxu1 %v14463_v14  ;;  %14465 = vst [vmem:[#allocation86_spill] sm:$0xff] %v10446_v38  ;;  %v1499_v52 = vsub.f32 %v10351_v34, %v14467_v6  ;;  %1204 = vmatprep.subr.mxu0 %v10094_v55  ;;  %v1476_v12 = vand.u32 4294901760, %v10385_v19  ;;  %v10464_v13 = vand.u32 4294901760, %v1107_v53  ;;  %v14471_v6 = vand.u32 4294901760, %v10286_v40  ;;  %v1093_v34 = vld [vmem:[#allocation2 + $0x200] sm:$0xff] }
  0x51   :  { %14464 = vst [vmem:[#allocation85_spill] sm:$0xff] %v10444_v16  ;;  %1441 = vmatprep.subr.mxu1 %v14466_v28  ;;  %14468 = vst [vmem:[#allocation87_spill] sm:$0xff] %v10456_v20  ;;  %1206 = vmatpush1.msra.mxu0 %v10096_v45  ;;  %v1482_v9 = vand.u32 4294901760, %v10399_v48  ;;  %v14472_v11 = vand.u32 4294901760, %v10375_v22  ;;  %v14473_v28 = vand.u32 4294901760, %v10291_v8  ;;  %v14474_v40 = vand.u32 4294901760, %v10388_v56 }
  0x52   :  { %1447 = vmatpush1.msra.mxu1 %v14469_v63  ;;  %14470 = vst [vmem:[#allocation88_spill] sm:$0xff] %v10464_v13  ;;  %1208 = vmatprep.subr.mxu0 %v10106_v3  ;;  %v14475_v47 = vand.u32 4294901760, %v10391_v26  ;;  %v10488_v14 = vsub.f32 %v1110_v29, %v10446_v38  ;;  %v14477_v19 = vand.u32 4294901760, %v10303_v15  ;;  %v1488_v8 = vand.u32 4294901760, %v10415_v27 }
  0x53   :  { %1453 = vmatprep.subr.mxu1 %v14471_v6  ;;  %v1505_v63 = vsub.f32 %v10375_v22, %v14472_v11  ;;  %v1511_v6 = vsub.f32 %v10388_v56, %v14474_v40  ;;  %1210 = vmatpush1.msra.mxu0 %v10108_v24  ;;  %v10505_v29 = vsub.f32 %v1108_v62, %v10456_v20  ;;  %v1494_v15 = vand.u32 4294901760, %v10429_v10 }
  0x54   :  { %1459 = vmatpush1.msra.mxu1 %v14473_v28  ;;  %v10484_v48 = vsub.f32 %v10391_v26, %v14475_v47  ;;  %14476 = vst [vmem:[#allocation89_spill] sm:$0xff] %v10488_v14  ;;  %v14478_v28 = vand.u32 4294901760, %v10403_v59  ;;  %v14479_v47 = vand.u32 4294901760, %v10406_v39  ;;  %1212 = vmatprep.subr.mxu0 %v10117_v2  ;;  %v14481_v27 = vand.u32 4294901760, %v10418_v33 }
  0x55   :  { %1465 = vmatprep.subr.mxu1 %v14477_v19  ;;  %14480 = vst [vmem:[#allocation90_spill] sm:$0xff] %v10505_v29  ;;  %1214 = vmatpush1.msra.mxu0 %v10119_v23  ;;  %v1506_v62 = vand.u32 4294901760, %v1505_v63  ;;  %v14484_v10 = vand.u32 4294901760, %v10433_v50 }
  0x56   :  { %v10497_v40 = vsub.f32 %v10403_v59, %v14478_v28  ;;  %v10502_v26 = vsub.f32 %v10406_v39, %v14479_v47  ;;  %1471 = vmatpush1.msra.mxu1 %v1470_v42  ;;  %v10512_v19 = vsub.f32 %v10418_v33, %v14481_v27  ;;  %v14482_v28 = vand.u32 4294901760, %v10421_v31  ;;  %1216 = vmatprep.subr.mxu0 %v10125_v1 }
  0x57   :  { %v10520_v47 = vsub.f32 %v1107_v53, %v10464_v13  ;;  %1477 = vmatprep.subr.mxu1 %v1476_v12  ;;  %v1500_v42 = vand.u32 4294901760, %v1499_v52  ;;  %v10526_v39 = vsub.f32 %v10433_v50, %v14484_v10  ;;  %v14485_v27 = vand.u32 4294901760, %v10436_v4  ;;  %v1105_v10 = vld [vmem:[#allocation2 + $0x260] sm:$0xff]  ;;  %1218 = vmatpush1.msra.mxu0 %v10127_v0  ;;  %v1102_v50 = vld [vmem:[#allocation2 + $0x248] sm:$0xff] }
  0x58   :  { %v10517_v11 = vsub.f32 %v10421_v31, %v14482_v28  ;;  %1483 = vmatpush1.msra.mxu1 %v1482_v9  ;;  %v1512_v53 = vand.u32 4294901760, %v1511_v6  ;;  %v1518_v12 = vand.u32 4294901760, %v10484_v48  ;;  %v14486_v28 = vand.u32 4294901760, %v10444_v16  ;;  %v1104_v48 = vld [vmem:[#allocation2 + $0x258] sm:$0xff]  ;;  %1220 = vmatprep.subr.mxu0 %v10142_v37 }
  0x59   :  { %14483 = vst [vmem:[#allocation91_spill] sm:$0xff] %v10520_v47  ;;  %v10531_v33 = vsub.f32 %v10436_v4, %v14485_v27  ;;  %1489 = vmatprep.subr.mxu1 %v1488_v8  ;;  %v1524_v27 = vand.u32 4294901760, %v10497_v40  ;;  %v1530_v9 = vand.u32 4294901760, %v10502_v26  ;;  %v10545_v6 = vand.u32 4294901760, %v1105_v10  ;;  %1222 = vmatpush1.msra.mxu0 %v10218_v21 }
  0x5a   :  { %v10538_v52 = vsub.f32 %v10444_v16, %v14486_v28  ;;  %1495 = vmatpush1.msra.mxu1 %v1494_v15  ;;  %v1536_v28 = vand.u32 4294901760, %v10512_v19  ;;  %v1542_v63 = vand.u32 4294901760, %v10517_v11  ;;  %v10551_v16 = vand.u32 4294901760, %v1104_v48  ;;  %v1101_v19 = vld [vmem:[#allocation2 + $0x240] sm:$0xff]  ;;  %1224 = vmatprep.subr.mxu0 %v10243_v32 }
  0x5b   :  { %14487 = vst [vmem:[#allocation92_spill] sm:$0xff] %v10545_v6  ;;  %1501 = vmatprep.subr.mxu1 %v1500_v42  ;;  %v1548_v26 = vand.u32 4294901760, %v10526_v39  ;;  %v1554_v40 = vand.u32 4294901760, %v10531_v33  ;;  %v10557_v15 = vsub.f32 %v1105_v10, %v10545_v6  ;;  %v10559_v4 = vand.u32 4294901760, %v1102_v50  ;;  %v1099_v10 = vld [vmem:[#allocation2 + $0x230] sm:$0xff]  ;;  %1226 = vmatpush1.msra.mxu0 %v10259_v61 }
  0x5c   :  { %14488 = vst [vmem:[#allocation93_spill] sm:$0xff] %v10551_v16  ;;  %1507 = vmatpush1.msra.mxu1 %v1506_v62  ;;  %v1560_v11 = vand.u32 4294901760, %v10538_v52  ;;  %v14491_v8 = vand.u32 4294901760, %v10488_v14  ;;  %v10569_v39 = vsub.f32 %v1104_v48, %v10551_v16  ;;  %v10571_v33 = vand.u32 4294901760, %v1101_v19  ;;  %v1098_v48 = vld [vmem:[#allocation2 + $0x228] sm:$0xff]  ;;  %1228 = vmatprep.subr.mxu0 %v10277_v25 }
  0x5d   :  { %14489 = vst [vmem:[#allocation94_spill] sm:$0xff] %v10557_v15  ;;  %14490 = vst [vmem:[#allocation95_spill] sm:$0xff] %v10559_v4  ;;  %1513 = vmatprep.subr.mxu1 %v1512_v53  ;;  %v14494_v62 = vand.u32 4294901760, %v10505_v29  ;;  %v10581_v59 = vsub.f32 %v1102_v50, %v10559_v4  ;;  %v14497_v53 = vand.u32 4294901760, %v10520_v47  ;;  %v10595_v52 = vand.u32 4294901760, %v1098_v48  ;;  %v1096_v50 = vld [vmem:[#allocation2 + $0x218] sm:$0xff]  ;;  %1230 = vmatpush1.msra.mxu0 %v10293_v5 }
  0x5e   :  { %v10566_v42 = vsub.f32 %v10488_v14, %v14491_v8  ;;  %14492 = vst [vmem:[#allocation96_spill] sm:$0xff] %v10569_v39  ;;  %14493 = vst [vmem:[#allocation97_spill] sm:$0xff] %v10571_v33  ;;  %v10583_v8 = vand.u32 4294901760, %v1099_v10  ;;  %1519 = vmatpush2.msra.mxu1 %v1518_v12  ;;  %v14500_v12 = vand.u32 4294901760, %v10557_v15  ;;  %v10607_v56 = vand.u32 4294901760, %v1096_v50  ;;  %1232 = vmatprep.subr.mxu0 %v10316_v43 }
  0x5f   :  { %v10577_v31 = vsub.f32 %v10505_v29, %v14494_v62  ;;  %14495 = vst [vmem:[#allocation98_spill] sm:$0xff] %v10581_v59  ;;  %v10589_v14 = vsub.f32 %v10520_v47, %v14497_v53  ;;  %v10593_v62 = vsub.f32 %v1101_v19, %v10571_v33  ;;  %14499 = vst [vmem:[#allocation101_spill] sm:$0xff] %v10595_v52  ;;  %1525 = vmatprep.subr.mxu1 %v1524_v27  ;;  %v1095_v19 = vld [vmem:[#allocation2 + $0x210] sm:$0xff] }
  0x60   :  { %14496 = vst [vmem:[#allocation99_spill] sm:$0xff] %v10583_v8  ;;  %v10601_v29 = vsub.f32 %v10557_v15, %v14500_v12  ;;  %v10605_v53 = vsub.f32 %v1099_v10, %v10583_v8  ;;  %14502 = vst [vmem:[#allocation103_spill] sm:$0xff] %v10607_v56  ;;  %1531 = vmatpush2.msra.mxu1 %v1530_v9  ;;  %v14503_v27 = vand.u32 4294901760, %v10569_v39  ;;  %v10619_v22 = vand.u32 4294901760, %v1095_v19 }
  0x61   :  { %14498 = vst [vmem:[#allocation100_spill] sm:$0xff] %v10593_v62  ;;  %v10617_v12 = vsub.f32 %v1098_v48, %v10595_v52  ;;  %1537 = vmatprep.subr.mxu1 %v1536_v28  ;;  %1234 = vmatpush1.msra.mxu0 %v10335_v58  ;;  %v1566_v10 = vand.u32 4294901760, %v10566_v42  ;;  %v1572_v9 = vand.u32 4294901760, %v10577_v31  ;;  %v14506_v15 = vand.u32 4294901760, %v10581_v59  ;;  %v1089_v31 = vld [vmem:[#allocation2 + $0x1e0] sm:$0xff] }
  0x62   :  { %14501 = vst [vmem:[#allocation102_spill] sm:$0xff] %v10605_v53  ;;  %v10613_v47 = vsub.f32 %v10569_v39, %v14503_v27  ;;  %14505 = vst [vmem:[#allocation105_spill] sm:$0xff] %v10619_v22  ;;  %1543 = vmatpush2.msra.mxu1 %v1542_v63  ;;  %1236 = vmatprep.subr.mxu0 %v10342_v54  ;;  %v1578_v48 = vand.u32 4294901760, %v10589_v14  ;;  %v14507_v28 = vand.u32 4294901760, %v10593_v62  ;;  %v1584_v63 = vand.u32 4294901760, %v10601_v29 }
  0x63   :  { %14504 = vst [vmem:[#allocation104_spill] sm:$0xff] %v10617_v12  ;;  %v10627_v43 = vsub.f32 %v10581_v59, %v14506_v15  ;;  %v10639_v42 = vsub.f32 %v1096_v50, %v10607_v56  ;;  %v1092_v15 = vld [vmem:[#allocation2 + $0x1f8] sm:$0xff]  ;;  %v1090_v59 = vld [vmem:[#allocation2 + $0x1e8] sm:$0xff]  ;;  %1549 = vmatprep.subr.mxu1 %v1548_v26  ;;  %1238 = vmatpush2.msra.mxu0 %v10344_v35  ;;  %v14509_v14 = vand.u32 4294901760, %v10605_v53  ;;  %v14511_v50 = vand.u32 4294901760, %v10617_v12 }
  0x64   :  { %v10635_v39 = vsub.f32 %v10593_v62, %v14507_v28  ;;  %v1590_v27 = vand.u32 4294901760, %v10613_v47  ;;  %v10650_v28 = vsub.f32 %v1095_v19, %v10619_v22  ;;  %1555 = vmatpush2.msra.mxu1 %v1554_v40  ;;  %1240 = vmatprep.subr.mxu0 %v10353_v57  ;;  %v10660_v62 = vand.u32 4294901760, %v1093_v34  ;;  %v1086_v57 = vld [vmem:[#allocation2 + $0x1c8] sm:$0xff] }
  0x65   :  { %14508 = vst [vmem:[#allocation106_spill] sm:$0xff] %v10639_v42  ;;  %v10647_v54 = vsub.f32 %v10605_v53, %v14509_v14  ;;  %v1596_v26 = vand.u32 4294901760, %v10627_v43  ;;  %v10657_v29 = vsub.f32 %v10617_v12, %v14511_v50  ;;  %v13916_v47 = vand.u32 4294901760, %v10639_v42  ;;  %v1087_v14 = vld [vmem:[#allocation2 + $0x1d0] sm:$0xff]  ;;  %1561 = vmatprep.subr.mxu1 %v1560_v11  ;;  %1242 = vmatpush2.msra.mxu0 %v10355_v51  ;;  %v1084_v51 = vld [vmem:[#allocation2 + $0x1b8] sm:$0xff] }
  0x66   :  { %14510 = vst [vmem:[#allocation107_spill] sm:$0xff] %v10650_v28  ;;  %14512 = vst [vmem:[#allocation108_spill] sm:$0xff] %v10660_v62  ;;  %v1602_v19 = vand.u32 4294901760, %v10635_v39  ;;  %v10665_v53 = vand.u32 4294901760, %v1092_v15  ;;  %v10667_v43 = vand.u32 4294901760, %v1090_v59  ;;  %1567 = vmatpush2.msra.mxu1 %v1566_v10  ;;  %1244 = vmatprep.subr.mxu0 %v10366_v60  ;;  %v10675_v12 = vsub.f32 %v1093_v34, %v10660_v62 }
  0x67   :  { %v1608_v50 = vand.u32 4294901760, %v10647_v54  ;;  %v1619_v11 = vsub.f32 %v10639_v42, %v13916_v47  ;;  %v10677_v39 = vand.u32 4294901760, %v1089_v31  ;;  %1573 = vmatprep.subr.mxu1 %v1572_v9  ;;  %1246 = vmatpush2.msra.mxu0 %v10368_v17  ;;  %v1614_v40 = vand.u32 4294901760, %v10657_v29  ;;  %v1083_v42 = vld [vmem:[#allocation2 + $0x1b0] sm:$0xff] }
  0x68   :  { %14513 = vst [vmem:[#allocation109_spill] sm:$0xff] %v10665_v53  ;;  %14514 = vst [vmem:[#allocation110_spill] sm:$0xff] %v10667_v43  ;;  %v10682_v10 = vsub.f32 %v1092_v15, %v10665_v53  ;;  %v10685_v60 = vsub.f32 %v1090_v59, %v10667_v43  ;;  %v10687_v54 = vand.u32 4294901760, %v1087_v14  ;;  %1579 = vmatpush2.msra.mxu1 %v1578_v48  ;;  %1248 = vmatprep.subr.mxu0 %v10377_v7 }
  0x69   :  { %14515 = vst [vmem:[#allocation111_spill] sm:$0xff] %v10675_v12  ;;  %14516 = vst [vmem:[#allocation112_spill] sm:$0xff] %v10677_v39  ;;  %v14520_v34 = vand.u32 4294901760, %v10650_v28  ;;  %v13923_v47 = vand.u32 4294901760, %v10675_v12  ;;  %v10695_v29 = vsub.f32 %v1089_v31, %v10677_v39  ;;  %v10697_v15 = vand.u32 4294901760, %v1086_v57  ;;  %1585 = vmatprep.subr.mxu1 %v1584_v63  ;;  %1250 = vmatpush2.msra.mxu0 %v10379_v30 }
  0x6a   :  { %14517 = vst [vmem:[#allocation113_spill] sm:$0xff] %v10682_v10  ;;  %14518 = vst [vmem:[#allocation114_spill] sm:$0xff] %v10685_v60  ;;  %v1620_v59 = vand.u32 4294901760, %v1619_v11  ;;  %v13930_v48 = vand.u32 4294901760, %v10682_v10  ;;  %v13933_v7 = vand.u32 4294901760, %v10685_v60  ;;  %v10703_v17 = vsub.f32 %v1087_v14, %v10687_v54  ;;  %1591 = vmatpush2.msra.mxu1 %v1590_v27  ;;  %1252 = vmatprep.subr.mxu0 %v10393_v36 }
  0x6b   :  { %14519 = vst [vmem:[#allocation115_spill] sm:$0xff] %v10687_v54  ;;  %v1625_v9 = vsub.f32 %v10650_v28, %v14520_v34  ;;  %14521 = vst [vmem:[#allocation116_spill] sm:$0xff] %v10695_v29  ;;  %v1631_v31 = vsub.f32 %v10675_v12, %v13923_v47  ;;  %v10711_v63 = vsub.f32 %v1086_v57, %v10697_v15  ;;  %v10713_v11 = vand.u32 4294901760, %v1084_v51  ;;  %v1081_v34 = vld [vmem:[#allocation2 + $0x1a0] sm:$0xff] }
  0x6c   :  { %14522 = vst [vmem:[#allocation117_spill] sm:$0xff] %v10697_v15  ;;  %14523 = vst [vmem:[#allocation118_spill] sm:$0xff] %v10703_v17  ;;  %1597 = vmatprep.subr.mxu1 %v1596_v26  ;;  %1254 = vmatpush2.msra.mxu0 %v10446_v38  ;;  %v1637_v27 = vsub.f32 %v10682_v10, %v13930_v48  ;;  %v1643_v14 = vsub.f32 %v10685_v60, %v13933_v7  ;;  %v10723_v12 = vand.u32 4294901760, %v1083_v42  ;;  %v1080_v10 = vld [vmem:[#allocation2 + $0x198] sm:$0xff]  ;;  %v1078_v7 = vld [vmem:[#allocation2 + $0x188] sm:$0xff] }
  0x6d   :  { %14524 = vst [vmem:[#allocation119_spill] sm:$0xff] %v10711_v63  ;;  %14525 = vst [vmem:[#allocation120_spill] sm:$0xff] %v10713_v11  ;;  %1603 = vmatpush2.msra.mxu1 %v1602_v19  ;;  %1256 = vmatprep.subr.mxu0 %v10456_v20  ;;  %v1626_v57 = vand.u32 4294901760, %v1625_v9  ;;  %v14527_v26 = vand.u32 4294901760, %v10695_v29  ;;  %v13940_v38 = vand.u32 4294901760, %v10711_v63  ;;  %v10731_v48 = vsub.f32 %v1084_v51, %v10713_v11  ;;  %v1077_v20 = vld [vmem:[#allocation2 + $0x180] sm:$0xff] }
  0x6e   :  { %14526 = vst [vmem:[#allocation121_spill] sm:$0xff] %v10723_v12  ;;  %1609 = vmatprep.subr.mxu1 %v1608_v50  ;;  %1258 = vmatpush2.msra.mxu0 %v10464_v13  ;;  %v1632_v47 = vand.u32 4294901760, %v1631_v31  ;;  %v14529_v19 = vand.u32 4294901760, %v10703_v17  ;;  %v10738_v9 = vsub.f32 %v1083_v42, %v10723_v12  ;;  %v1644_v31 = vand.u32 4294901760, %v1643_v14 }
  0x6f   :  { %v1649_v28 = vsub.f32 %v10695_v29, %v14527_v26  ;;  %14528 = vst [vmem:[#allocation122_spill] sm:$0xff] %v10731_v48  ;;  %1615 = vmatpush2.msra.mxu1 %v1614_v40  ;;  %1260 = vmatprep.subr.mxu0 %v10545_v6  ;;  %v1638_v26 = vand.u32 4294901760, %v1637_v27  ;;  %v1661_v51 = vsub.f32 %v10711_v63, %v13940_v38  ;;  %v13945_v50 = vand.u32 4294901760, %v10731_v48 }
  0x70   :  { %v1655_v60 = vsub.f32 %v10703_v17, %v14529_v19  ;;  %14530 = vst [vmem:[#allocation123_spill] sm:$0xff] %v10738_v9  ;;  %v10745_v29 = vand.u32 4294901760, %v1081_v34  ;;  %1621 = vmatprep.subr.mxu1 %v1620_v59  ;;  %1262 = vmatpush2.msra.mxu0 %v10551_v16  ;;  %v13946_v42 = vand.u32 4294901760, %v10738_v9  ;;  %v10749_v19 = vand.u32 4294901760, %v1080_v10 }
  0x71   :  { %v10751_v40 = vand.u32 4294901760, %v1078_v7  ;;  %1627 = vmatpush2.msra.mxu1 %v1626_v57  ;;  %1264 = vmatprep.subr.mxu0 %v10559_v4  ;;  %v1650_v27 = vand.u32 4294901760, %v1649_v28  ;;  %v1667_v38 = vsub.f32 %v10731_v48, %v13945_v50  ;;  %v10760_v59 = vand.u32 4294901760, %v1077_v20 }
  0x72   :  { %14531 = vst [vmem:[#allocation124_spill] sm:$0xff] %v10745_v29  ;;  %14532 = vst [vmem:[#allocation125_spill] sm:$0xff] %v10749_v19  ;;  %v10758_v63 = vsub.f32 %v1081_v34, %v10745_v29  ;;  %1633 = vmatprep.subr.mxu1 %v1632_v47  ;;  %1266 = vmatpush2.msra.mxu0 %v10571_v33  ;;  %v1656_v14 = vand.u32 4294901760, %v1655_v60  ;;  %v1673_v57 = vsub.f32 %v10738_v9, %v13946_v42 }
  0x73   :  { %14533 = vst [vmem:[#allocation126_spill] sm:$0xff] %v10751_v40  ;;  %14535 = vst [vmem:[#allocation128_spill] sm:$0xff] %v10760_v59  ;;  %v10767_v17 = vsub.f32 %v1080_v10, %v10749_v19  ;;  %v10770_v28 = vsub.f32 %v1078_v7, %v10751_v40  ;;  %1639 = vmatpush2.msra.mxu1 %v1638_v26  ;;  %1268 = vmatprep.subr.mxu0 %v10583_v8  ;;  %v1662_v34 = vand.u32 4294901760, %v1661_v51 }
  0x74   :  { %14534 = vst [vmem:[#allocation127_spill] sm:$0xff] %v10758_v63  ;;  %v13950_v50 = vand.u32 4294901760, %v10758_v63  ;;  %v10775_v47 = vsub.f32 %v1077_v20, %v10760_v59  ;;  %1645 = vmatprep.subr.mxu1 %v1644_v31  ;;  %1270 = vmatpush2.msra.mxu0 %v10595_v52  ;;  %v1668_v60 = vand.u32 4294901760, %v1667_v38  ;;  %v1674_v7 = vand.u32 4294901760, %v1673_v57 }
  0x75   :  { %14536 = vst [vmem:[#allocation129_spill] sm:$0xff] %v10767_v17  ;;  %14537 = vst [vmem:[#allocation130_spill] sm:$0xff] %v10770_v28  ;;  %v13947_v42 = vand.u32 4294901760, %v10767_v17  ;;  %v13949_v10 = vand.u32 4294901760, %v10770_v28  ;;  %1651 = vmatpush2.msra.mxu1 %v1650_v27  ;;  %1272 = vmatprep.subr.mxu0 %v10607_v56 }
  0x76   :  { %14538 = vst [vmem:[#allocation131_spill] sm:$0xff] %v10775_v47  ;;  %v1679_v26 = vsub.f32 %v10758_v63, %v13950_v50  ;;  %v13948_v51 = vand.u32 4294901760, %v10775_v47  ;;  %1657 = vmatprep.subr.mxu1 %v1656_v14  ;;  %1274 = vmatpush2.msra.mxu0 %v10619_v22 }
  0x77   :  { %v1685_v20 = vsub.f32 %v10767_v17, %v13947_v42  ;;  %v1691_v38 = vsub.f32 %v10770_v28, %v13949_v10  ;;  %1663 = vmatpush2.msra.mxu1 %v1662_v34  ;;  %1276 = vmatprep.subr.mxu0 %v10660_v62  ;;  %v14539_v34 = vld [vmem:[#allocation14_spill] sm:$0xff] }
  0x78   :  { %v1680_v31 = vand.u32 4294901760, %v1679_v26  ;;  %v1697_v27 = vsub.f32 %v10775_v47, %v13948_v51  ;;  %1669 = vmatprep.subr.mxu1 %v1668_v60  ;;  %1278 = vmatpush2.msra.mxu0 %v10665_v53  ;;  %v47_v60 = vlaneseq  ;;  %v45_v26 = vld [vmem:[%s13765_s3] ss:$2 sm:$0x7] }
  0x79   :  { %v1686_v14 = vand.u32 4294901760, %v1685_v20  ;;  %v1692_v57 = vand.u32 4294901760, %v1691_v38  ;;  %1675 = vmatpush2.msra.mxu1 %v1674_v7  ;;  %1280 = vmatprep.subr.mxu0 %v10667_v43 }
  0x7a   :  { %v1698_v42 = vand.u32 4294901760, %v1697_v27  ;;  %1681 = vmatprep.subr.mxu1 %v1680_v31  ;;  %1282 = vmatpush2.msra.mxu0 %v10677_v39  ;;  %v10809_v7 = vshrl.u32 %v47_v60, 7 }
  0x7b   :  { %1687 = vmatpush2.msra.mxu1 %v1686_v14  ;;  %1284 = vmatprep.subr.mxu0 %v10687_v54 }
  0x7c   :  { %1693 = vmatprep.subr.mxu1 %v1692_v57  ;;  %1286 = vmatpush2.msra.mxu0 %v10697_v15  ;;  %14540 = vst [vmem:[#allocation132_spill] sm:$0xff] %v10809_v7  ;;  %v13971_v20 = vsub.s32 1, %v10809_v7 }
  0x7d   :  { %1699 = vmatpush2.msra.mxu1 %v1698_v42  ;;  %1288 = vmatprep.subr.mxu0 %v10713_v11  ;;  %v13966_v42 = vsub.s32 0, %v10809_v7 }
  0x7e   :  { %1913 = vmatprep.subr.mxu1 %v9902_v44  ;;  %1290 = vmatpush2.msra.mxu0 %v10723_v12  ;;  %v54_v31 = vrot.slane %v45_v26, %v13971_v20 }
  0x7f   :  { %1292 = vmatprep.subr.mxu0 %v10745_v29  ;;  %v50_v38 = vrot.slane %v45_v26, %v13966_v42 }
  0x80   :  { %1294 = vmatpush2.msra.mxu0 %v10749_v19 }
  0x81   :  { %1296 = vmatprep.subr.mxu0 %v10751_v40 }
  0x82   :  { %1298 = vmatpush2.msra.mxu0 %v10760_v59 }
  0x83   :  { %1711 = vmatprep.subr.mxu0 %v14539_v34 }
  0xdc   :  { %v151_v27 = vpop.f32.mrf.mxu0 }
  0xdd   :  { %v152_v14 = vadd.f32 %v151_v27, %v50_v38 }
  0xde   :  { %v153_v57 = vpop.f32.mrf.mxu0  ;;  %v243_v51 = vpop.f32.mrf.mxu1 }
  0xdf   :  { %v154_v60 = vadd.f32 %v153_v57, %v54_v31  ;;  %v244_v10 = vadd.f32 %v243_v51, %v152_v14 }
  0xe0   :  { %v324_v50 = vpop.f32.mrf.mxu0  ;;  %v245_v34 = vpop.f32.mrf.mxu1 }
  0xe1   :  { %v325_v47 = vadd.f32 %v324_v50, %v244_v10  ;;  %v246_v28 = vadd.f32 %v245_v34, %v154_v60  ;;  %v13976_v50 = vsub.s32 2, %v10809_v7  ;;  %v14548_v10 = vld [vmem:[#allocation10_spill] sm:$0xff]  ;;  %v14550_v60 = vld [vmem:[#allocation12_spill] sm:$0xff] }
  0xe2   :  { %v326_v17 = vpop.f32.mrf.mxu0 }
  0xe3   :  { %v327_v63 = vadd.f32 %v326_v17, %v246_v28 }
  0xe4   :  { %v402_v9 = vpop.f32.mrf.mxu1 }
  0xe5   :  { %v403_v48 = vadd.f32 %v402_v9, %v325_v47 }
  0xe6   :  { %v486_v44 = vpop.f32.mrf.mxu0  ;;  %v404_v59 = vpop.f32.mrf.mxu1 }
  0xe7   :  { %v487_v42 = vadd.f32 %v486_v44, %v403_v48  ;;  %v405_v40 = vadd.f32 %v404_v59, %v327_v63  ;;  %v58_v44 = vrot.slane %v45_v26, %v13976_v50  ;;  %v14546_v59 = vld [vmem:[#allocation9_spill] sm:$0xff]  ;;  %v14549_v26 = vld [vmem:[#allocation11_spill] sm:$0xff] }
  0xe8   :  { %v488_v19 = vpop.f32.mrf.mxu0  ;;  %v14556_v50 = vld [vmem:[#allocation23_spill] sm:$0xff] }
  0xe9   :  { %v489_v20 = vadd.f32 %v488_v19, %v405_v40 }
  0xea   :  { %v562_v29 = vpop.f32.mrf.mxu1 }
  0xeb   :  { %v563_v38 = vadd.f32 %v562_v29, %v487_v42 }
  0xec   :  { %v564_v27 = vpop.f32.mrf.mxu1 }
  0xed   :  { %v1026_v12 = vmax.f32 %v563_v38, 0.0  ;;  %v565_v31 = vadd.f32 %v564_v27, %v489_v20 }
  0xef   :  { %v10820_v51 = vand.u32 4294901760, %v1026_v12  ;;  %v1027_v14 = vmax.f32 %v565_v31, 0.0  ;;  %v14551_v31 = vld [vmem:[#allocation13_spill] sm:$0xff] }
  0xf0   :  { %v640_v48 = vpop.f32.mrf.mxu0 }
  0xf1   :  { %14541 = vst [vmem:[#allocation133_spill] sm:$0xff] %v10820_v51  ;;  %v10824_v17 = vsub.f32 %v1026_v12, %v10820_v51  ;;  %v10826_v9 = vand.u32 4294901760, %v1027_v14  ;;  %v641_v19 = vadd.f32 %v640_v48, %v58_v44  ;;  %v721_v12 = vpop.f32.mrf.mxu1  ;;  %v14553_v48 = vld [vmem:[#allocation15_spill] sm:$0xff] }
  0xf2   :  { %v9277_v40 = vpop.f32.mrf.mxu0 }
  0xf3   :  { %14542 = vst [vmem:[#allocation134_spill] sm:$0xff] %v10824_v17  ;;  %14543 = vst [vmem:[#allocation135_spill] sm:$0xff] %v10826_v9  ;;  %v10831_v63 = vand.u32 4294901760, %v10824_v17  ;;  %v10834_v29 = vsub.f32 %v1027_v14, %v10826_v9  ;;  %1701 = vmatprep.mubr.f32.mxu1 %v10826_v9  ;;  %v722_v47 = vadd.f32 %v721_v12, %v641_v19  ;;  %v9284_v42 = vpop.f32.mrf.mxu1 }
  0xf4   :  { %1703 = vmatmul.mubr.f32.vlgmr.msra.gmra.mxu1 %v10820_v51  ;;  %v14555_v42 = vld [vmem:[#allocation17_spill] sm:$0xff] }
  0xf5   :  { %14544 = vst [vmem:[#allocation136_spill] sm:$0xff] %v10831_v63  ;;  %14545 = vst [vmem:[#allocation137_spill] sm:$0xff] %v10834_v29  ;;  %1915 = vmatpush1.msra.mxu1 %v14546_v59  ;;  %v10840_v28 = vand.u32 4294901760, %v10834_v29  ;;  %v1308_v34 = vsub.f32 %v10824_v17, %v10831_v63  ;;  %v872_v27 = vpop.f32.mrf.mxu1  ;;  %v14564_v51 = vld [vmem:[#allocation21_spill] sm:$0xff] }
  0xf6   :  { %1917 = vmatprep.subr.mxu1 %v14548_v10 }
  0xf7   :  { %14547 = vst [vmem:[#allocation9_spill] sm:$0xff] %v10840_v28  ;;  %1919 = vmatpush1.msra.mxu1 %v14549_v26  ;;  %2043 = vmatprep.mubr.f32.mxu1 %v10840_v28  ;;  %v1302_v20 = vsub.f32 %v10834_v29, %v10840_v28  ;;  %v797_v57 = vpop.f32.mrf.mxu0  ;;  %v10854_v19 = vand.u32 4294901760, %v1308_v34  ;;  %v9298_v12 = vpop.f32.mrf.mxu1  ;;  %v14561_v28 = vld [vmem:[#allocation28_spill] sm:$0xff] }
  0xf8   :  { %1921 = vmatprep.subr.mxu1 %v14550_v60  ;;  %v798_v38 = vadd.f32 %v797_v57, %v722_v47  ;;  %v14557_v57 = vld [vmem:[#allocation16_spill] sm:$0xff]  ;;  %v14560_v12 = vld [vmem:[#allocation19_spill] sm:$0xff] }
  0xf9   :  { %1923 = vmatpush1.msra.mxu1 %v14551_v31  ;;  %v10851_v14 = vand.u32 4294901760, %v1302_v20  ;;  %v9291_v44 = vpop.f32.mrf.mxu0  ;;  %14554 = vst [vmem:[#allocation11_spill] sm:$0xff] %v10854_v19  ;;  %v1022_v47 = vpop.f32.mrf.mxu1 }
  0xfa   :  { %1925 = vmatprep.subr.mxu1 %v14553_v48  ;;  %v873_v40 = vadd.f32 %v872_v27, %v798_v38  ;;  %v14558_v44 = vld [vmem:[#allocation18_spill] sm:$0xff] }
  0xfb   :  { %14552 = vst [vmem:[#allocation10_spill] sm:$0xff] %v10851_v14  ;;  %1927 = vmatpush1.msra.mxu1 %v14555_v42  ;;  %1304 = vmatprep.mubr.f32.mxu0 %v10851_v14  ;;  %v9312_v38 = vpop.f32.mrf.mxu1  ;;  %v14559_v27 = vld [vmem:[#allocation26_spill] sm:$0xff] }
  0xfc   :  { %1929 = vmatprep.subr.mxu1 %v14556_v50  ;;  %1310 = vmatmul.mubr.f32.vlgmr.msra.gmra.mxu0 %v10854_v19  ;;  %v14562_v19 = vld [vmem:[#allocation20_spill] sm:$0xff]  ;;  %v14571_v38 = vld [vmem:[#allocation30_spill] sm:$0xff] }
  0xfd   :  { %1714 = vmatpush1.msra.mxu0 %v14557_v57  ;;  %1931 = vmatpush1.msra.mxu1 %v9977_v18  ;;  %v949_v20 = vpop.f32.mrf.mxu0 }
  0xfe   :  { %1717 = vmatprep.subr.mxu0 %v14558_v44  ;;  %1903 = vmatprep.mubr.f32.mxu0 %v10834_v29  ;;  %v950_v34 = vadd.f32 %v949_v20, %v873_v40  ;;  %v14565_v29 = vld [vmem:[#allocation22_spill] sm:$0xff]  ;;  %v14566_v40 = vld [vmem:[#allocation24_spill] sm:$0xff] }
  0xff   :  { %1933 = vmatprep.subr.mxu1 %v14559_v27  ;;  %1720 = vmatpush1.msra.mxu0 %v14560_v12  ;;  %v9305_v7 = vpop.f32.mrf.mxu0  ;;  %v14567_v20 = vld [vmem:[#allocation32_spill] sm:$0xff] }
 0x100   :  { %1935 = vmatpush1.msra.mxu1 %v14561_v28  ;;  %1723 = vmatprep.subr.mxu0 %v14562_v19  ;;  %v10868_v14 = vadd.f32 %v1022_v47, %v950_v34  ;;  %v14568_v7 = vld [vmem:[#allocation25_spill] sm:$0xff]  ;;  %v14569_v47 = vld [vmem:[#allocation27_spill] sm:$0xff] }
 0x101   :  { %1937 = vmatprep.subr.mxu1 %v10033_v41  ;;  %1726 = vmatpush1.msra.mxu0 %v14564_v51  ;;  %v14570_v34 = vld [vmem:[#allocation29_spill] sm:$0xff] }
 0x102   :  { %14563 = vst [vmem:[#allocation12_spill] sm:$0xff] %v10868_v14  ;;  %1939 = vmatpush1.msra.mxu1 %v10043_v46  ;;  %1729 = vmatprep.subr.mxu0 %v14565_v29  ;;  %v14572_v14 = vld [vmem:[#allocation31_spill] sm:$0xff] }
 0x103   :  { %1941 = vmatprep.subr.mxu1 %v10045_v49  ;;  %1732 = vmatpush1.msra.mxu0 %v14566_v40 }
 0x104   :  { %1943 = vmatpush1.msra.mxu1 %v14567_v20  ;;  %1735 = vmatprep.subr.mxu0 %v14568_v7  ;;  %v14573_v20 = vld [vmem:[#allocation33_spill] sm:$0xff] }
 0x105   :  { %1945 = vmatprep.subr.mxu1 %v10094_v55  ;;  %1738 = vmatpush1.msra.mxu0 %v14569_v47  ;;  %v14574_v55 = vld [vmem:[#allocation34_spill] sm:$0xff] }
 0x106   :  { %1947 = vmatpush1.msra.mxu1 %v10096_v45  ;;  %1741 = vmatprep.subr.mxu0 %v14570_v34  ;;  %v14575_v45 = vld [vmem:[#allocation39_spill] sm:$0xff] }
 0x107   :  { %1949 = vmatprep.subr.mxu1 %v10106_v3  ;;  %1744 = vmatpush1.msra.mxu0 %v14571_v38  ;;  %v14576_v3 = vld [vmem:[#allocation44_spill] sm:$0xff] }
 0x108   :  { %1951 = vmatpush1.msra.mxu1 %v10108_v24  ;;  %1747 = vmatprep.subr.mxu0 %v14572_v14  ;;  %v14577_v24 = vld [vmem:[#allocation45_spill] sm:$0xff] }
 0x109   :  { %1953 = vmatprep.subr.mxu1 %v10117_v2  ;;  %1750 = vmatpush1.msra.mxu0 %v14573_v20  ;;  %v14578_v2 = vld [vmem:[#allocation47_spill] sm:$0xff] }
 0x10a   :  { %1955 = vmatpush1.msra.mxu1 %v10119_v23  ;;  %1753 = vmatprep.subr.mxu0 %v14574_v55  ;;  %v14579_v23 = vld [vmem:[#allocation48_spill] sm:$0xff] }
 0x10b   :  { %1957 = vmatprep.subr.mxu1 %v10125_v1  ;;  %1756 = vmatpush1.msra.mxu0 %v14575_v45  ;;  %v14580_v1 = vld [vmem:[#allocation49_spill] sm:$0xff] }
 0x10c   :  { %1959 = vmatpush1.msra.mxu1 %v10127_v0  ;;  %1759 = vmatprep.subr.mxu0 %v14576_v3  ;;  %v14581_v0 = vld [vmem:[#allocation50_spill] sm:$0xff] }
 0x10d   :  { %1961 = vmatprep.subr.mxu1 %v10142_v37  ;;  %1762 = vmatpush1.msra.mxu0 %v14577_v24  ;;  %v14582_v37 = vld [vmem:[#allocation51_spill] sm:$0xff]  ;;  %v14583_v24 = vld [vmem:[#allocation62_spill] sm:$0xff] }
 0x10e   :  { %1963 = vmatpush1.msra.mxu1 %v10218_v21  ;;  %1765 = vmatprep.subr.mxu0 %v14578_v2  ;;  %v14584_v21 = vld [vmem:[#allocation52_spill] sm:$0xff] }
 0x10f   :  { %1965 = vmatprep.subr.mxu1 %v10243_v32  ;;  %1768 = vmatpush1.msra.mxu0 %v14579_v23  ;;  %v14585_v32 = vld [vmem:[#allocation53_spill] sm:$0xff]  ;;  %v14586_v23 = vld [vmem:[#allocation66_spill] sm:$0xff] }
 0x110   :  { %1967 = vmatpush1.msra.mxu1 %v10259_v61  ;;  %1771 = vmatprep.subr.mxu0 %v14580_v1  ;;  %v14587_v61 = vld [vmem:[#allocation57_spill] sm:$0xff] }
 0x111   :  { %1969 = vmatprep.subr.mxu1 %v10277_v25  ;;  %1774 = vmatpush1.msra.mxu0 %v14581_v0  ;;  %v14588_v25 = vld [vmem:[#allocation60_spill] sm:$0xff]  ;;  %v14589_v0 = vld [vmem:[#allocation69_spill] sm:$0xff] }
 0x112   :  { %1971 = vmatpush1.msra.mxu1 %v10293_v5  ;;  %1777 = vmatprep.subr.mxu0 %v14582_v37  ;;  %v14590_v5 = vld [vmem:[#allocation61_spill] sm:$0xff]  ;;  %v14591_v37 = vld [vmem:[#allocation70_spill] sm:$0xff] }
 0x113   :  { %1973 = vmatprep.subr.mxu1 %v14583_v24  ;;  %1780 = vmatpush1.msra.mxu0 %v14584_v21  ;;  %v14592_v24 = vld [vmem:[#allocation63_spill] sm:$0xff] }
 0x114   :  { %1975 = vmatpush1.msra.mxu1 %v10335_v58  ;;  %1783 = vmatprep.subr.mxu0 %v14585_v32  ;;  %v14593_v21 = vld [vmem:[#allocation71_spill] sm:$0xff]  ;;  %v14594_v58 = vld [vmem:[#allocation64_spill] sm:$0xff] }
 0x115   :  { %1977 = vmatprep.subr.mxu1 %v14586_v23  ;;  %1786 = vmatpush1.msra.mxu0 %v14587_v61  ;;  %v14595_v32 = vld [vmem:[#allocation72_spill] sm:$0xff]  ;;  %v14597_v61 = vld [vmem:[#allocation74_spill] sm:$0xff] }
 0x116   :  { %1979 = vmatpush2.msra.mxu1 %v10344_v35  ;;  %1789 = vmatprep.subr.mxu0 %v14588_v25  ;;  %v14596_v23 = vld [vmem:[#allocation68_spill] sm:$0xff]  ;;  %v14598_v35 = vld [vmem:[#allocation73_spill] sm:$0xff] }
 0x117   :  { %1981 = vmatprep.subr.mxu1 %v14589_v0  ;;  %1792 = vmatpush1.msra.mxu0 %v14590_v5  ;;  %v14599_v0 = vld [vmem:[#allocation76_spill] sm:$0xff] }
 0x118   :  { %1983 = vmatpush2.msra.mxu1 %v14591_v37  ;;  %1795 = vmatprep.subr.mxu0 %v14592_v24  ;;  %v14600_v37 = vld [vmem:[#allocation77_spill] sm:$0xff]  ;;  %v14601_v24 = vld [vmem:[#allocation86_spill] sm:$0xff] }
 0x119   :  { %1985 = vmatprep.subr.mxu1 %v14593_v21  ;;  %1798 = vmatpush1.msra.mxu0 %v14594_v58  ;;  %v14602_v21 = vld [vmem:[#allocation79_spill] sm:$0xff] }
 0x11a   :  { %1987 = vmatpush2.msra.mxu1 %v14595_v32  ;;  %1801 = vmatprep.subr.mxu0 %v14596_v23  ;;  %v14603_v58 = vld [vmem:[#allocation87_spill] sm:$0xff]  ;;  %v14604_v32 = vld [vmem:[#allocation80_spill] sm:$0xff] }
 0x11b   :  { %1989 = vmatprep.subr.mxu1 %v14597_v61  ;;  %1804 = vmatpush1.msra.mxu0 %v14598_v35  ;;  %v14605_v61 = vld [vmem:[#allocation81_spill] sm:$0xff] }
 0x11c   :  { %1991 = vmatpush2.msra.mxu1 %v10379_v30  ;;  %1807 = vmatprep.subr.mxu0 %v14599_v0  ;;  %v14606_v30 = vld [vmem:[#allocation82_spill] sm:$0xff] }
 0x11d   :  { %1993 = vmatprep.subr.mxu1 %v10393_v36  ;;  %1810 = vmatpush2.msra.mxu0 %v14600_v37  ;;  %v14607_v36 = vld [vmem:[#allocation83_spill] sm:$0xff] }
 0x11e   :  { %1995 = vmatpush2.msra.mxu1 %v14601_v24  ;;  %1813 = vmatprep.subr.mxu0 %v14602_v21  ;;  %v14608_v24 = vld [vmem:[#allocation84_spill] sm:$0xff] }
 0x11f   :  { %1997 = vmatprep.subr.mxu1 %v14603_v58  ;;  %1816 = vmatpush2.msra.mxu0 %v14604_v32  ;;  %v14609_v58 = vld [vmem:[#allocation85_spill] sm:$0xff] }
 0x120   :  { %1999 = vmatpush2.msra.mxu1 %v10464_v13  ;;  %1819 = vmatprep.subr.mxu0 %v14605_v61  ;;  %v14610_v13 = vld [vmem:[#allocation89_spill] sm:$0xff] }
 0x121   :  { %2001 = vmatprep.subr.mxu1 %v10545_v6  ;;  %1822 = vmatpush2.msra.mxu0 %v14606_v30  ;;  %v14611_v6 = vld [vmem:[#allocation90_spill] sm:$0xff] }
 0x122   :  { %2003 = vmatpush2.msra.mxu1 %v10551_v16  ;;  %1825 = vmatprep.subr.mxu0 %v14607_v36  ;;  %v14612_v16 = vld [vmem:[#allocation91_spill] sm:$0xff] }
 0x123   :  { %2005 = vmatprep.subr.mxu1 %v10559_v4  ;;  %1828 = vmatpush2.msra.mxu0 %v14608_v24  ;;  %v14613_v4 = vld [vmem:[#allocation94_spill] sm:$0xff] }
 0x124   :  { %2007 = vmatpush2.msra.mxu1 %v10571_v33  ;;  %1831 = vmatprep.subr.mxu0 %v14609_v58  ;;  %v14614_v33 = vld [vmem:[#allocation96_spill] sm:$0xff] }
 0x125   :  { %2009 = vmatprep.subr.mxu1 %v10583_v8  ;;  %1834 = vmatpush2.msra.mxu0 %v14610_v13  ;;  %v14615_v8 = vld [vmem:[#allocation98_spill] sm:$0xff] }
 0x126   :  { %2011 = vmatpush2.msra.mxu1 %v10595_v52  ;;  %1837 = vmatprep.subr.mxu0 %v14611_v6  ;;  %v14616_v52 = vld [vmem:[#allocation100_spill] sm:$0xff] }
 0x127   :  { %2013 = vmatprep.subr.mxu1 %v10607_v56  ;;  %1840 = vmatpush2.msra.mxu0 %v14612_v16  ;;  %v14617_v56 = vld [vmem:[#allocation102_spill] sm:$0xff] }
 0x128   :  { %2015 = vmatpush2.msra.mxu1 %v10619_v22  ;;  %1843 = vmatprep.subr.mxu0 %v14613_v4  ;;  %v14618_v22 = vld [vmem:[#allocation104_spill] sm:$0xff] }
 0x129   :  { %2017 = vmatprep.subr.mxu1 %v10660_v62  ;;  %1846 = vmatpush2.msra.mxu0 %v14614_v33  ;;  %v14619_v62 = vld [vmem:[#allocation106_spill] sm:$0xff] }
 0x12a   :  { %2019 = vmatpush2.msra.mxu1 %v10665_v53  ;;  %1849 = vmatprep.subr.mxu0 %v14615_v8  ;;  %v14620_v53 = vld [vmem:[#allocation107_spill] sm:$0xff]  ;;  %v14621_v8 = vld [vmem:[#allocation121_spill] sm:$0xff] }
 0x12b   :  { %2021 = vmatprep.subr.mxu1 %v10667_v43  ;;  %1852 = vmatpush2.msra.mxu0 %v14616_v52  ;;  %v14622_v43 = vld [vmem:[#allocation111_spill] sm:$0xff]  ;;  %v14623_v52 = vld [vmem:[#allocation124_spill] sm:$0xff] }
 0x12c   :  { %2023 = vmatpush2.msra.mxu1 %v10677_v39  ;;  %1855 = vmatprep.subr.mxu0 %v14617_v56  ;;  %v14624_v39 = vld [vmem:[#allocation113_spill] sm:$0xff] }
 0x12d   :  { %2025 = vmatprep.subr.mxu1 %v10687_v54  ;;  %1858 = vmatpush2.msra.mxu0 %v14618_v22  ;;  %v14625_v56 = vld [vmem:[#allocation125_spill] sm:$0xff]  ;;  %v14626_v54 = vld [vmem:[#allocation114_spill] sm:$0xff] }
 0x12e   :  { %2027 = vmatpush2.msra.mxu1 %v10697_v15  ;;  %1861 = vmatprep.subr.mxu0 %v14619_v62  ;;  %v14627_v22 = vld [vmem:[#allocation126_spill] sm:$0xff]  ;;  %v14628_v15 = vld [vmem:[#allocation116_spill] sm:$0xff] }
 0x12f   :  { %2029 = vmatprep.subr.mxu1 %v10713_v11  ;;  %1864 = vmatpush2.msra.mxu0 %v14620_v53  ;;  %v14629_v62 = vld [vmem:[#allocation128_spill] sm:$0xff]  ;;  %v14630_v11 = vld [vmem:[#allocation118_spill] sm:$0xff] }
 0x130   :  { %2031 = vmatpush2.msra.mxu1 %v14621_v8  ;;  %1867 = vmatprep.subr.mxu0 %v14622_v43  ;;  %v14631_v8 = vld [vmem:[#allocation8_spill] sm:$0xff]  ;;  %v14632_v43 = vld [vmem:[#allocation119_spill] sm:$0xff] }
 0x131   :  { %2033 = vmatprep.subr.mxu1 %v14623_v52  ;;  %1870 = vmatpush2.msra.mxu0 %v14624_v39 }
 0x132   :  { %2035 = vmatpush2.msra.mxu1 %v14625_v56  ;;  %1873 = vmatprep.subr.mxu0 %v14626_v54  ;;  %v14633_v56 = vld [vmem:[#allocation122_spill] sm:$0xff] }
 0x133   :  { %2037 = vmatprep.subr.mxu1 %v14627_v22  ;;  %1876 = vmatpush2.msra.mxu0 %v14628_v15  ;;  %v14634_v22 = vld [vmem:[#allocation123_spill] sm:$0xff] }
 0x134   :  { %2039 = vmatpush2.msra.mxu1 %v14629_v62  ;;  %1879 = vmatprep.subr.mxu0 %v14630_v11  ;;  %v14635_v62 = vld [vmem:[#allocation127_spill] sm:$0xff] }
 0x135   :  { %2047 = vmatmul.mubr.f32.vlgmr.msra.gmra.mxu1 %v10831_v63  ;;  %2319 = vmatprep.subr.mxu1 %v14631_v8  ;;  %v14636_v63 = vld [vmem:[#allocation129_spill] sm:$0xff]  ;;  %v14637_v8 = vld [vmem:[#allocation130_spill] sm:$0xff] }
 0x136   :  { %1882 = vmatpush2.msra.mxu0 %v14632_v43  ;;  %2321 = vmatpush1.msra.mxu1 %v14546_v59  ;;  %v14638_v59 = vld [vmem:[#allocation131_spill] sm:$0xff] }
 0x137   :  { %2447 = vmatprep.mubr.f32.mxu1 %v10826_v9  ;;  %1885 = vmatprep.subr.mxu0 %v14633_v56 }
 0x138   :  { %2323 = vmatprep.subr.mxu1 %v14548_v10  ;;  %1888 = vmatpush2.msra.mxu0 %v14634_v22  ;;  %v14639_v10 = vld [vmem:[#allocation14_spill] sm:$0xff] }
 0x139   :  { %2325 = vmatpush1.msra.mxu1 %v14549_v26  ;;  %1891 = vmatprep.subr.mxu0 %v14635_v62  ;;  %v14640_v26 = vand.u32 4294901760, %v14639_v10  ;;  %v14662_v10 = vld [vmem:[#allocation42_spill] sm:$0xff] }
 0x13a   :  { %2327 = vmatprep.subr.mxu1 %v14550_v60  ;;  %1894 = vmatpush2.msra.mxu0 %v14636_v63  ;;  %v14641_v60 = vand.u32 4294901760, %v14557_v57  ;;  %v14647_v57 = vand.u32 4294901760, %v14566_v40  ;;  %v14658_v40 = vld [vmem:[#allocation40_spill] sm:$0xff] }
 0x13b   :  { %2329 = vmatpush1.msra.mxu1 %v14551_v31  ;;  %1897 = vmatprep.subr.mxu0 %v14637_v8  ;;  %v14642_v31 = vand.u32 4294901760, %v14558_v44  ;;  %v14648_v44 = vld [vmem:[#allocation32_spill] sm:$0xff] }
 0x13c   :  { %2331 = vmatprep.subr.mxu1 %v14553_v48  ;;  %1900 = vmatpush2.msra.mxu0 %v14638_v59  ;;  %v14643_v48 = vand.u32 4294901760, %v14560_v12  ;;  %v14657_v12 = vand.u32 4294901760, %v14572_v14  ;;  %v14665_v14 = vand.u32 4294901760, %v14576_v3  ;;  %v14675_v3 = vand.u32 4294901760, %v14580_v1 }
 0x13d   :  { %2333 = vmatpush1.msra.mxu1 %v14555_v42  ;;  %1906 = vmatmul.mubr.f32.vlgmr.msra.gmra.mxu0 %v10824_v17  ;;  %v14644_v42 = vand.u32 4294901760, %v14562_v19  ;;  %v14650_v19 = vld [vmem:[#allocation35_spill] sm:$0xff] }
 0x13e   :  { %2056 = vmatprep.subr.mxu0 %v14640_v26  ;;  %2335 = vmatprep.subr.mxu1 %v14556_v50  ;;  %v14645_v50 = vand.u32 4294901760, %v14564_v51  ;;  %v14652_v51 = vld [vmem:[#allocation36_spill] sm:$0xff]  ;;  %v14664_v26 = vld [vmem:[#allocation43_spill] sm:$0xff] }
 0x13f   :  { %2060 = vmatpush1.msra.mxu0 %v14641_v60  ;;  %2310 = vmatprep.mubr.f32.mxu0 %v10826_v9  ;;  %v14666_v60 = vld [vmem:[#allocation46_spill] sm:$0xff] }
 0x140   :  { %2337 = vmatpush1.msra.mxu1 %v9977_v18  ;;  %2064 = vmatprep.subr.mxu0 %v14642_v31  ;;  %v14646_v18 = vand.u32 4294901760, %v14565_v29  ;;  %v14654_v29 = vld [vmem:[#allocation37_spill] sm:$0xff] }
 0x141   :  { %2339 = vmatprep.subr.mxu1 %v14559_v27  ;;  %2068 = vmatpush1.msra.mxu0 %v14643_v48  ;;  %v14656_v27 = vld [vmem:[#allocation38_spill] sm:$0xff]  ;;  %v14667_v31 = vld [vmem:[#allocation45_spill] sm:$0xff] }
 0x142   :  { %2341 = vmatpush1.msra.mxu1 %v14561_v28  ;;  %2072 = vmatprep.subr.mxu0 %v14644_v42  ;;  %v14649_v28 = vand.u32 4294901760, %v14568_v7  ;;  %v14659_v7 = vand.u32 4294901760, %v14573_v20  ;;  %v14668_v20 = vand.u32 4294901760, %v14667_v31  ;;  %v14669_v48 = vld [vmem:[#allocation54_spill] sm:$0xff]  ;;  %v14671_v42 = vld [vmem:[#allocation55_spill] sm:$0xff] }
 0x143   :  { %2343 = vmatprep.subr.mxu1 %v10033_v41  ;;  %2076 = vmatpush1.msra.mxu0 %v14645_v50  ;;  %v14651_v41 = vand.u32 4294901760, %v14569_v47  ;;  %v14660_v47 = vld [vmem:[#allocation41_spill] sm:$0xff]  ;;  %v14672_v50 = vld [vmem:[#allocation48_spill] sm:$0xff]  ;;  %v14698_v31 = vld [vmem:[#allocation71_spill] sm:$0xff] }
 0x144   :  { %2345 = vmatpush1.msra.mxu1 %v10043_v46  ;;  %2080 = vmatprep.subr.mxu0 %v14646_v18  ;;  %v14653_v46 = vand.u32 4294901760, %v14570_v34  ;;  %v14661_v34 = vand.u32 4294901760, %v14574_v55  ;;  %v14670_v55 = vand.u32 4294901760, %v14578_v2  ;;  %v14674_v18 = vld [vmem:[#allocation56_spill] sm:$0xff] }
 0x145   :  { %2347 = vmatprep.subr.mxu1 %v10045_v49  ;;  %2084 = vmatpush1.msra.mxu0 %v14647_v57  ;;  %v14655_v49 = vand.u32 4294901760, %v14571_v38  ;;  %v14663_v38 = vand.u32 4294901760, %v14575_v45  ;;  %v14673_v45 = vand.u32 4294901760, %v14672_v50  ;;  %v14676_v57 = vld [vmem:[#allocation58_spill] sm:$0xff]  ;;  %v14705_v50 = vld [vmem:[#allocation75_spill] sm:$0xff] }
 0x146   :  { %2349 = vmatpush1.msra.mxu1 %v14648_v44  ;;  %2088 = vmatprep.subr.mxu0 %v14649_v28  ;;  %v14677_v44 = vld [vmem:[#allocation50_spill] sm:$0xff] }
 0x147   :  { %2351 = vmatprep.subr.mxu1 %v14650_v19  ;;  %2092 = vmatpush1.msra.mxu0 %v14651_v41  ;;  %v14678_v28 = vand.u32 4294901760, %v14677_v44  ;;  %v14679_v19 = vld [vmem:[#allocation59_spill] sm:$0xff]  ;;  %v1147_v44 = vld [vmem:[#allocation2 + $0x3b0] sm:$0xff] }
 0x148   :  { %2353 = vmatpush1.msra.mxu1 %v14652_v51  ;;  %2096 = vmatprep.subr.mxu0 %v14653_v46  ;;  %v14680_v41 = vld [vmem:[#allocation51_spill] sm:$0xff]  ;;  %v14682_v51 = vld [vmem:[#allocation62_spill] sm:$0xff]  ;;  %v14683_v46 = vld [vmem:[#allocation52_spill] sm:$0xff] }
 0x149   :  { %2355 = vmatprep.subr.mxu1 %v14654_v29  ;;  %2100 = vmatpush1.msra.mxu0 %v14655_v49  ;;  %v14681_v2 = vand.u32 4294901760, %v14680_v41  ;;  %v14684_v29 = vand.u32 4294901760, %v14683_v46  ;;  %v14685_v49 = vld [vmem:[#allocation65_spill] sm:$0xff]  ;;  %v14713_v41 = vld [vmem:[#allocation88_spill] sm:$0xff] }
 0x14a   :  { %2357 = vmatpush1.msra.mxu1 %v14656_v27  ;;  %2104 = vmatprep.subr.mxu0 %v14657_v12  ;;  %v14686_v27 = vld [vmem:[#allocation53_spill] sm:$0xff]  ;;  %v14688_v12 = vld [vmem:[#allocation66_spill] sm:$0xff] }
 0x14b   :  { %2359 = vmatprep.subr.mxu1 %v14658_v40  ;;  %2108 = vmatpush1.msra.mxu0 %v14659_v7  ;;  %v14687_v1 = vand.u32 4294901760, %v14686_v27  ;;  %v14689_v40 = vld [vmem:[#allocation57_spill] sm:$0xff]  ;;  %v1141_v27 = vld [vmem:[#allocation2 + $0x380] sm:$0xff] }
 0x14c   :  { %2361 = vmatpush1.msra.mxu1 %v14660_v47  ;;  %2112 = vmatprep.subr.mxu0 %v14661_v34  ;;  %v14690_v7 = vand.u32 4294901760, %v14689_v40  ;;  %v14691_v47 = vld [vmem:[#allocation67_spill] sm:$0xff]  ;;  %v14692_v34 = vand.u32 4294901760, %v14588_v25  ;;  %v14702_v25 = vand.u32 4294901760, %v14596_v23  ;;  %v14710_v23 = vand.u32 4294901760, %v14602_v21  ;;  %v1143_v46 = vld [vmem:[#allocation2 + $0x390] sm:$0xff] }
 0x14d   :  { %2363 = vmatprep.subr.mxu1 %v14662_v10  ;;  %2116 = vmatpush1.msra.mxu0 %v14663_v38  ;;  %v14693_v10 = vld [vmem:[#allocation69_spill] sm:$0xff]  ;;  %v14694_v38 = vand.u32 4294901760, %v14590_v5  ;;  %v14704_v5 = vand.u32 4294901760, %v14598_v35  ;;  %v14712_v35 = vand.u32 4294901760, %v14604_v32  ;;  %v11106_v21 = vand.u32 4294901760, %v1147_v44 }
 0x14e   :  { %2365 = vmatpush1.msra.mxu1 %v14664_v26  ;;  %2120 = vmatprep.subr.mxu0 %v14665_v14  ;;  %v14695_v26 = vld [vmem:[#allocation70_spill] sm:$0xff]  ;;  %v14696_v14 = vld [vmem:[#allocation63_spill] sm:$0xff]  ;;  %v14718_v32 = vand.u32 4294901760, %v14607_v36  ;;  %v14721_v40 = vld [vmem:[#allocation97_spill] sm:$0xff] }
 0x14f   :  { %2367 = vmatprep.subr.mxu1 %v14666_v60  ;;  %2124 = vmatpush1.msra.mxu0 %v14668_v20  ;;  %v14697_v60 = vand.u32 4294901760, %v14696_v14  ;;  %v14699_v20 = vld [vmem:[#allocation64_spill] sm:$0xff]  ;;  %v14725_v14 = vld [vmem:[#allocation101_spill] sm:$0xff] }
 0x150   :  { %2369 = vmatpush1.msra.mxu1 %v14669_v48  ;;  %2128 = vmatprep.subr.mxu0 %v14670_v55  ;;  %v14700_v48 = vand.u32 4294901760, %v14699_v20  ;;  %v14701_v55 = vld [vmem:[#allocation72_spill] sm:$0xff]  ;;  %v14727_v20 = vld [vmem:[#allocation103_spill] sm:$0xff] }
 0x151   :  { %2371 = vmatprep.subr.mxu1 %v14671_v42  ;;  %2132 = vmatpush1.msra.mxu0 %v14673_v45  ;;  %v14703_v42 = vld [vmem:[#allocation74_spill] sm:$0xff]  ;;  %v14706_v45 = vand.u32 4294901760, %v14599_v0  ;;  %v14714_v0 = vand.u32 4294901760, %v14605_v61  ;;  %v14720_v61 = vand.u32 4294901760, %v14608_v24  ;;  %v1138_v36 = vld [vmem:[#allocation2 + $0x368] sm:$0xff]  ;;  %v11129_v24 = vand.u32 4294901760, %v1141_v27 }
 0x152   :  { %2373 = vmatpush1.msra.mxu1 %v14674_v18  ;;  %2136 = vmatprep.subr.mxu0 %v14675_v3  ;;  %v14707_v18 = vld [vmem:[#allocation78_spill] sm:$0xff]  ;;  %v14708_v3 = vand.u32 4294901760, %v14600_v37  ;;  %v14715_v37 = vld [vmem:[#allocation92_spill] sm:$0xff] }
 0x153   :  { %2375 = vmatprep.subr.mxu1 %v14676_v57  ;;  %2140 = vmatpush1.msra.mxu0 %v14678_v28  ;;  %v14709_v57 = vld [vmem:[#allocation86_spill] sm:$0xff]  ;;  %v14711_v28 = vld [vmem:[#allocation87_spill] sm:$0xff] }
 0x154   :  { %2377 = vmatpush1.msra.mxu1 %v14679_v19  ;;  %2144 = vmatprep.subr.mxu0 %v14681_v2  ;;  %v1146_v19 = vld [vmem:[#allocation2 + $0x3a8] sm:$0xff]  ;;  %v1144_v2 = vld [vmem:[#allocation2 + $0x398] sm:$0xff] }
 0x155   :  { %2379 = vmatprep.subr.mxu1 %v14682_v51  ;;  %2148 = vmatpush1.msra.mxu0 %v14684_v29  ;;  %v14716_v51 = vand.u32 4294901760, %v14606_v30  ;;  %v14717_v29 = vld [vmem:[#allocation93_spill] sm:$0xff]  ;;  %v1140_v30 = vld [vmem:[#allocation2 + $0x378] sm:$0xff] }
 0x156   :  { %2381 = vmatpush1.msra.mxu1 %v14685_v49  ;;  %2152 = vmatprep.subr.mxu0 %v14687_v1  ;;  %v11111_v49 = vand.u32 4294901760, %v1146_v19  ;;  %v14719_v1 = vld [vmem:[#allocation95_spill] sm:$0xff] }
 0x157   :  { %2383 = vmatprep.subr.mxu1 %v14688_v12  ;;  %2156 = vmatpush1.msra.mxu0 %v14690_v7  ;;  %v11116_v12 = vand.u32 4294901760, %v1144_v2  ;;  %v14722_v7 = vand.u32 4294901760, %v14609_v58 }
 0x158   :  { %2385 = vmatpush2.msra.mxu1 %v14691_v47  ;;  %2160 = vmatprep.subr.mxu0 %v14692_v34  ;;  %v11121_v47 = vand.u32 4294901760, %v1143_v46  ;;  %v14723_v34 = vld [vmem:[#allocation99_spill] sm:$0xff]  ;;  %v11135_v58 = vsub.f32 %v1146_v19, %v11111_v49 }
 0x159   :  { %2387 = vmatprep.subr.mxu1 %v14693_v10  ;;  %2164 = vmatpush1.msra.mxu0 %v14694_v38  ;;  %v14724_v10 = vand.u32 4294901760, %v14610_v13  ;;  %v11127_v38 = vsub.f32 %v1147_v44, %v11106_v21  ;;  %v14728_v13 = vand.u32 4294901760, %v14612_v16  ;;  %v14732_v16 = vand.u32 4294901760, %v14614_v33  ;;  %v14733_v44 = vld [vmem:[#allocation109_spill] sm:$0xff] }
 0x15a   :  { %2389 = vmatpush2.msra.mxu1 %v14695_v26  ;;  %2168 = vmatprep.subr.mxu0 %v14697_v60  ;;  %v1137_v26 = vld [vmem:[#allocation2 + $0x360] sm:$0xff]  ;;  %v14726_v60 = vand.u32 4294901760, %v14611_v6  ;;  %v14730_v6 = vand.u32 4294901760, %v14613_v4  ;;  %v14734_v4 = vld [vmem:[#allocation98_spill] sm:$0xff]  ;;  %v1131_v33 = vld [vmem:[#allocation2 + $0x330] sm:$0xff] }
 0x15b   :  { %2391 = vmatprep.subr.mxu1 %v14698_v31  ;;  %2172 = vmatpush1.msra.mxu0 %v14700_v48  ;;  %v11137_v31 = vand.u32 4294901760, %v1140_v30  ;;  %v11143_v48 = vsub.f32 %v1144_v2, %v11116_v12  ;;  %v14737_v2 = vld [vmem:[#allocation100_spill] sm:$0xff] }
 0x15c   :  { %2393 = vmatpush2.msra.mxu1 %v14701_v55  ;;  %2176 = vmatprep.subr.mxu0 %v14702_v25  ;;  %v11145_v55 = vand.u32 4294901760, %v1138_v36  ;;  %v1135_v25 = vld [vmem:[#allocation2 + $0x350] sm:$0xff] }
 0x15d   :  { %2395 = vmatprep.subr.mxu1 %v14703_v42  ;;  %2180 = vmatpush1.msra.mxu0 %v14704_v5  ;;  %v14729_v42 = vld [vmem:[#allocation105_spill] sm:$0xff]  ;;  %v11151_v5 = vsub.f32 %v1143_v46, %v11121_v47  ;;  %v11167_v19 = vsub.f32 %v1140_v30, %v11137_v31 }
 0x15e   :  { %2397 = vmatpush2.msra.mxu1 %v14705_v50  ;;  %2184 = vmatprep.subr.mxu0 %v14706_v45  ;;  %v11153_v50 = vand.u32 4294901760, %v1137_v26  ;;  %v1134_v45 = vld [vmem:[#allocation2 + $0x348] sm:$0xff]  ;;  %v11176_v46 = vsub.f32 %v1138_v36, %v11145_v55 }
 0x15f   :  { %2399 = vmatprep.subr.mxu1 %v14707_v18  ;;  %2188 = vmatpush2.msra.mxu0 %v14708_v3  ;;  %v14731_v18 = vld [vmem:[#allocation108_spill] sm:$0xff]  ;;  %v14035_v3 = vand.u32 4294901760, %v11127_v38  ;;  %v14020_v30 = vand.u32 4294901760, %v11151_v5 }
 0x160   :  { %2401 = vmatpush2.msra.mxu1 %v14709_v57  ;;  %2192 = vmatprep.subr.mxu0 %v14710_v23  ;;  %v11160_v57 = vsub.f32 %v1141_v27, %v11129_v24  ;;  %v1132_v23 = vld [vmem:[#allocation2 + $0x338] sm:$0xff]  ;;  %v14739_v27 = vld [vmem:[#allocation112_spill] sm:$0xff] }
 0x161   :  { %2403 = vmatprep.subr.mxu1 %v14711_v28  ;;  %2196 = vmatpush2.msra.mxu0 %v14712_v35  ;;  %v14735_v28 = vand.u32 4294901760, %v14734_v4  ;;  %v14034_v35 = vand.u32 4294901760, %v11135_v58  ;;  %v14743_v36 = vld [vmem:[#allocation104_spill] sm:$0xff] }
 0x162   :  { %2405 = vmatpush2.msra.mxu1 %v14713_v41  ;;  %2200 = vmatprep.subr.mxu0 %v14714_v0  ;;  %v11169_v41 = vand.u32 4294901760, %v1135_v25  ;;  %v14736_v0 = vld [vmem:[#allocation110_spill] sm:$0xff] }
 0x163   :  { %2407 = vmatprep.subr.mxu1 %v14715_v37  ;;  %2204 = vmatpush2.msra.mxu0 %v14716_v51  ;;  %v14738_v37 = vand.u32 4294901760, %v14737_v2  ;;  %v14025_v51 = vand.u32 4294901760, %v11143_v48  ;;  %v14748_v2 = vld [vmem:[#allocation120_spill] sm:$0xff] }
 0x164   :  { %2409 = vmatpush2.msra.mxu1 %v14717_v29  ;;  %2208 = vmatprep.subr.mxu0 %v14718_v32  ;;  %v11178_v29 = vand.u32 4294901760, %v1134_v45  ;;  %v1129_v32 = vld [vmem:[#allocation2 + $0x320] sm:$0xff]  ;;  %v11206_v4 = vsub.f32 %v1135_v25, %v11169_v41  ;;  %v14750_v25 = vld [vmem:[#allocation121_spill] sm:$0xff] }
 0x165   :  { %2411 = vmatprep.subr.mxu1 %v14719_v1  ;;  %2212 = vmatpush2.msra.mxu0 %v14720_v61  ;;  %v14740_v1 = vld [vmem:[#allocation102_spill] sm:$0xff] }
 0x166   :  { %2413 = vmatpush2.msra.mxu1 %v14721_v40  ;;  %2216 = vmatprep.subr.mxu0 %v14722_v7  ;;  %v14741_v61 = vand.u32 4294901760, %v14740_v1  ;;  %v11185_v40 = vsub.f32 %v1137_v26, %v11153_v50  ;;  %v11187_v7 = vand.u32 4294901760, %v1132_v23  ;;  %v14746_v26 = vld [vmem:[#allocation106_spill] sm:$0xff]  ;;  %v14023_v1 = vand.u32 4294901760, %v11176_v46 }
 0x167   :  { %2415 = vmatprep.subr.mxu1 %v14723_v34  ;;  %2220 = vmatpush2.msra.mxu0 %v14724_v10  ;;  %v1128_v34 = vld [vmem:[#allocation2 + $0x318] sm:$0xff]  ;;  %v14742_v10 = vld [vmem:[#allocation115_spill] sm:$0xff] }
 0x168   :  { %2417 = vmatpush2.msra.mxu1 %v14725_v14  ;;  %2224 = vmatprep.subr.mxu0 %v14726_v60  ;;  %v14744_v14 = vand.u32 4294901760, %v14743_v36  ;;  %v2566_v60 = vsub.f32 %v11127_v38, %v14035_v3  ;;  %v14751_v36 = vld [vmem:[#allocation111_spill] sm:$0xff]  ;;  %v1058_v3 = vld [vmem:[#allocation2 + $0xe8] sm:$0xff] }
 0x169   :  { %2419 = vmatprep.subr.mxu1 %v14727_v20  ;;  %2228 = vmatpush2.msra.mxu0 %v14728_v13  ;;  %v14021_v20 = vand.u32 4294901760, %v11160_v57  ;;  %v11196_v13 = vand.u32 4294901760, %v1131_v33 }
 0x16a   :  { %2421 = vmatpush2.msra.mxu1 %v14729_v42  ;;  %2232 = vmatprep.subr.mxu0 %v14730_v6  ;;  %v1126_v42 = vld [vmem:[#allocation2 + $0x308] sm:$0xff]  ;;  %v14745_v6 = vld [vmem:[#allocation117_spill] sm:$0xff] }
 0x16b   :  { %2423 = vmatprep.subr.mxu1 %v14731_v18  ;;  %2236 = vmatpush2.msra.mxu0 %v14732_v16  ;;  %v14747_v18 = vand.u32 4294901760, %v14746_v26  ;;  %v2572_v16 = vsub.f32 %v11135_v58, %v14034_v35  ;;  %v11230_v26 = vsub.f32 %v1132_v23, %v11187_v7  ;;  %v14755_v23 = vand.u32 4294901760, %v14626_v54 }
 0x16c   :  { %2425 = vmatpush2.msra.mxu1 %v14733_v44  ;;  %2240 = vmatprep.subr.mxu0 %v14735_v28  ;;  %v14022_v44 = vand.u32 4294901760, %v11167_v19  ;;  %v11208_v28 = vand.u32 4294901760, %v1129_v32  ;;  %v2602_v54 = vsub.f32 %v11176_v46, %v14023_v1 }
 0x16d   :  { %2427 = vmatprep.subr.mxu1 %v14736_v0  ;;  %2244 = vmatpush2.msra.mxu0 %v14738_v37  ;;  %v1125_v0 = vld [vmem:[#allocation2 + $0x300] sm:$0xff]  ;;  %v14749_v37 = vand.u32 4294901760, %v14620_v53  ;;  %v2584_v53 = vsub.f32 %v11151_v5, %v14020_v30  ;;  %v2573_v30 = vand.u32 4294901760, %v2572_v16 }
 0x16e   :  { %2429 = vmatpush2.msra.mxu1 %v14739_v27  ;;  %2248 = vmatprep.subr.mxu0 %v14741_v61  ;;  %v2578_v27 = vsub.f32 %v11143_v48, %v14025_v51  ;;  %v11218_v61 = vsub.f32 %v1134_v45, %v11178_v29  ;;  %v14753_v45 = vand.u32 4294901760, %v14624_v39  ;;  %v14033_v39 = vand.u32 4294901760, %v11206_v4 }
 0x16f   :  { %2431 = vmatprep.subr.mxu1 %v14742_v10  ;;  %2252 = vmatpush2.msra.mxu0 %v14744_v14  ;;  %v11220_v10 = vand.u32 4294901760, %v1128_v34  ;;  %v14752_v14 = vand.u32 4294901760, %v14751_v36  ;;  %v11243_v36 = vand.u32 4294901760, %v1125_v0 }
 0x170   :  { %2433 = vmatpush2.msra.mxu1 %v14745_v6  ;;  %2256 = vmatprep.subr.mxu0 %v14747_v18  ;;  %v14024_v6 = vand.u32 4294901760, %v11185_v40  ;;  %v11232_v18 = vand.u32 4294901760, %v1126_v42  ;;  %v14032_v16 = vand.u32 4294901760, %v11218_v61 }
 0x171   :  { %2435 = vmatprep.subr.mxu1 %v14748_v2  ;;  %2260 = vmatpush2.msra.mxu0 %v14749_v37  ;;  %v2567_v2 = vand.u32 4294901760, %v2566_v60  ;;  %v2590_v37 = vsub.f32 %v11160_v57, %v14021_v20  ;;  %v11253_v60 = vsub.f32 %v1129_v32, %v11208_v28  ;;  %v2579_v20 = vand.u32 4294901760, %v2578_v27 }
 0x172   :  { %2437 = vmatpush2.msra.mxu1 %v14750_v25  ;;  %2264 = vmatprep.subr.mxu0 %v14752_v14  ;;  %v11241_v25 = vsub.f32 %v1131_v33, %v11196_v13  ;;  %v14754_v14 = vld [vmem:[#allocation125_spill] sm:$0xff]  ;;  %v14757_v33 = vand.u32 4294901760, %v14628_v15  ;;  %v14759_v32 = vand.u32 4294901760, %v14630_v11  ;;  %v2608_v15 = vsub.f32 %v11185_v40, %v14024_v6 }
 0x173   :  { %2439 = vmatprep.subr.mxu1 %v14623_v52  ;;  %2268 = vmatpush2.msra.mxu0 %v14753_v45  ;;  %v2596_v52 = vsub.f32 %v11167_v19, %v14022_v44  ;;  %v14756_v45 = vld [vmem:[#allocation126_spill] sm:$0xff]  ;;  %v2585_v44 = vand.u32 4294901760, %v2584_v53  ;;  %v14031_v27 = vand.u32 4294901760, %v11230_v26  ;;  %v14761_v11 = vand.u32 4294901760, %v14632_v43 }
 0x174   :  { %2441 = vmatpush2.msra.mxu1 %v14754_v14  ;;  %2272 = vmatprep.subr.mxu0 %v14755_v23  ;;  %v11263_v14 = vsub.f32 %v1128_v34, %v11220_v10  ;;  %v14758_v23 = vld [vmem:[#allocation128_spill] sm:$0xff]  ;;  %v2591_v34 = vand.u32 4294901760, %v2590_v37  ;;  %v14030_v1 = vand.u32 4294901760, %v11241_v25  ;;  %v14029_v51 = vand.u32 4294901760, %v11253_v60 }
 0x175   :  { %2443 = vmatprep.subr.mxu1 %v14756_v45  ;;  %2276 = vmatpush2.msra.mxu0 %v14757_v33  ;;  %v11273_v45 = vsub.f32 %v1126_v42, %v11232_v18  ;;  %v14760_v33 = vld [vmem:[#allocation133_spill] sm:$0xff]  ;;  %v2597_v53 = vand.u32 4294901760, %v2596_v52  ;;  %v2614_v42 = vsub.f32 %v11206_v4, %v14033_v39  ;;  %v2620_v43 = vsub.f32 %v11218_v61, %v14032_v16 }
 0x176   :  { %2445 = vmatpush2.msra.mxu1 %v14758_v23  ;;  %2280 = vmatprep.subr.mxu0 %v14759_v32  ;;  %v11278_v23 = vsub.f32 %v1125_v0, %v11243_v36  ;;  %v14762_v32 = vld [vmem:[#allocation12_spill] sm:$0xff]  ;;  %v2603_v0 = vand.u32 4294901760, %v2602_v54  ;;  %v14764_v37 = vand.u32 4294901760, %v14634_v22  ;;  %v2609_v52 = vand.u32 4294901760, %v2608_v15 }
 0x177   :  { %2449 = vmatmul.mubr.f32.vlgmr.msra.gmra.mxu1 %v14760_v33  ;;  %2568 = vmatprep.subr.mxu1 %v2567_v2  ;;  %v1028_v6 = vmax.f32 %v14762_v32, 0.0  ;;  %v14763_v2 = vand.u32 4294901760, %v14633_v56  ;;  %v14027_v56 = vand.u32 4294901760, %v11273_v45  ;;  %v2632_v54 = vsub.f32 %v11241_v25, %v14030_v1 }
 0x178   :  { %2284 = vmatpush2.msra.mxu0 %v14761_v11  ;;  %2574 = vmatpush1.msra.mxu1 %v2573_v30  ;;  %v14028_v30 = vand.u32 4294901760, %v11263_v14  ;;  %v2626_v11 = vsub.f32 %v11230_v26, %v14031_v27  ;;  %v14026_v32 = vand.u32 4294901760, %v11278_v23  ;;  %v14766_v22 = vand.u32 4294901760, %v14636_v63 }
 0x179   :  { %2288 = vmatprep.subr.mxu0 %v14763_v2  ;;  %2580 = vmatprep.subr.mxu1 %v2579_v20  ;;  %v14765_v20 = vand.u32 4294901760, %v14635_v62  ;;  %v2615_v15 = vand.u32 4294901760, %v2614_v42  ;;  %v2638_v2 = vsub.f32 %v11253_v60, %v14029_v51  ;;  %v14767_v62 = vand.u32 4294901760, %v14637_v8  ;;  %v1064_v51 = vld [vmem:[#allocation2 + $0x118] sm:$0xff] }
 0x17a   :  { %2292 = vmatpush2.msra.mxu0 %v14764_v37  ;;  %2586 = vmatpush1.msra.mxu1 %v2585_v44  ;;  %v1169_v44 = vsel %vm1167_vm3, %v1028_v6, 0  ;;  %v2644_v37 = vsub.f32 %v11263_v14, %v14028_v30  ;;  %v14768_v63 = vand.u32 4294901760, %v14638_v59  ;;  %v2650_v6 = vsub.f32 %v11273_v45, %v14027_v56 }
 0x17b   :  { %2296 = vmatprep.subr.mxu0 %v14765_v20  ;;  %2592 = vmatprep.subr.mxu1 %v2591_v34  ;;  %v2621_v34 = vand.u32 4294901760, %v2620_v43  ;;  %v11321_v42 = vand.u32 4294901760, %v1169_v44  ;;  %v2633_v8 = vand.u32 4294901760, %v2632_v54  ;;  %v2639_v59 = vand.u32 4294901760, %v2638_v2  ;;  %v1124_v2 = vld [vmem:[#allocation2 + $0x2f8] sm:$0xff] }
 0x17c   :  { %2300 = vmatpush2.msra.mxu0 %v14766_v22  ;;  %2598 = vmatpush1.msra.mxu1 %v2597_v53  ;;  %v2627_v53 = vand.u32 4294901760, %v2626_v11  ;;  %v2645_v43 = vand.u32 4294901760, %v2644_v37  ;;  %v14772_v22 = vmov 0.0   ;;  %v1121_v37 = vld [vmem:[#allocation2 + $0x2e0] sm:$0xff]  ;;  %v11434_v39 = vand.u32 4294901760, %v1064_v51 }
 0x17d   :  { %2304 = vmatprep.subr.mxu0 %v14767_v62  ;;  %2604 = vmatprep.subr.mxu1 %v2603_v0  ;;  %14769 = vst [vmem:[#allocation13_spill] sm:$0xff] %v11321_v42  ;;  %v2656_v0 = vsub.f32 %v11278_v23, %v14026_v32  ;;  %v11332_v11 = vsub.f32 %v1169_v44, %v11321_v42  ;;  %v1076_v62 = vld [vmem:[#allocation2 + $0x178] sm:$0xff] }
 0x17e   :  { %2308 = vmatpush2.msra.mxu0 %v14768_v63  ;;  %2610 = vmatpush1.msra.mxu1 %v2609_v52  ;;  %v2651_v52 = vand.u32 4294901760, %v2650_v6  ;;  %v1073_v63 = vld [vmem:[#allocation2 + $0x160] sm:$0xff]  ;;  %v1118_v6 = vld [vmem:[#allocation2 + $0x2c8] sm:$0xff] }
 0x17f   :  { %2312 = vmatmul.mubr.f32.vlgmr.msra.gmra.mxu0 %v14760_v33  ;;  %2472 = vmatprep.subr.mxu0 %v11106_v21  ;;  %14770 = vst [vmem:[#allocation15_spill] sm:$0xff] %v11332_v11  ;;  %v2657_v20 = vand.u32 4294901760, %v2656_v0  ;;  %v11339_v54 = vand.u32 4294901760, %v11332_v11  ;;  %v1070_v0 = vld [vmem:[#allocation2 + $0x148] sm:$0xff] }
 0x180   :  { %2616 = vmatprep.subr.mxu1 %v2615_v15  ;;  %2474 = vmatpush1.msra.mxu0 %v11111_v49  ;;  %v11404_v56 = vand.u32 4294901760, %v1070_v0 }
 0x181   :  { %2622 = vmatpush1.msra.mxu1 %v2621_v34  ;;  %2476 = vmatprep.subr.mxu0 %v11116_v12  ;;  %14771 = vst [vmem:[#allocation17_spill] sm:$0xff] %v11339_v54  ;;  %v2539_v44 = vsub.f32 %v11332_v11, %v11339_v54  ;;  %v11376_v34 = vand.u32 4294901760, %v1124_v2 }
 0x182   :  { %2628 = vmatprep.subr.mxu1 %v2627_v53  ;;  %2478 = vmatpush1.msra.mxu0 %v11121_v47  ;;  %v11382_v53 = vand.u32 4294901760, %v1076_v62  ;;  %v11432_v16 = vsub.f32 %v1070_v0, %v11404_v56 }
 0x183   :  { %2634 = vmatpush1.msra.mxu1 %v2633_v8  ;;  %2480 = vmatprep.subr.mxu0 %v11129_v24  ;;  %v11360_v15 = vand.u32 4294901760, %v2539_v44  ;;  %v11386_v8 = vand.u32 4294901760, %v1121_v37  ;;  %v1067_v44 = vld [vmem:[#allocation2 + $0x130] sm:$0xff] }
 0x184   :  { %2640 = vmatprep.subr.mxu1 %v2639_v59  ;;  %2482 = vmatpush1.msra.mxu0 %v11137_v31  ;;  %v11391_v59 = vsub.f32 %v1124_v2, %v11376_v34  ;;  %v11402_v32 = vsub.f32 %v1076_v62, %v11382_v53  ;;  %v1112_v2 = vld [vmem:[#allocation2 + $0x298] sm:$0xff]  ;;  %v11419_v1 = vand.u32 4294901760, %v1067_v44  ;;  %14777 = vst [vmem:[#allocation19_spill] sm:$0xff] %v11432_v16 }
 0x185   :  { %2646 = vmatpush1.msra.mxu1 %v2645_v43  ;;  %2484 = vmatprep.subr.mxu0 %v11145_v55  ;;  %14773 = vst [vmem:[#allocation23_spill] sm:$0xff] %v11360_v15  ;;  %v11393_v43 = vand.u32 4294901760, %v1073_v63  ;;  %v11426_v27 = vand.u32 4294901760, %v1112_v2 }
 0x186   :  { %2652 = vmatprep.subr.mxu1 %v2651_v52  ;;  %2486 = vmatpush1.msra.mxu0 %v11153_v50  ;;  %v1115_v52 = vld [vmem:[#allocation2 + $0x2b0] sm:$0xff] }
 0x187   :  { %2658 = vmatpush1.msra.mxu1 %v2657_v20  ;;  %2691 = vmatprep.mubr.f32.mxu1 %v14772_v22  ;;  %v11397_v20 = vand.u32 4294901760, %v1118_v6  ;;  %v11411_v30 = vand.u32 4294901760, %v1115_v52  ;;  %v11417_v62 = vsub.f32 %v1073_v63, %v11393_v43  ;;  %v11453_v63 = vsub.f32 %v1067_v44, %v11419_v1 }
 0x188   :  { %2488 = vmatprep.subr.mxu0 %v11169_v41  ;;  %2693 = vmatmul.mubr.f32.vlgmr.msra.gmra.mxu1 %v11321_v42  ;;  %v14782_v44 = vand.u32 4294901760, %v11135_v58 }
 0x189   :  { %2821 = vmatprep.subr.mxu1 %v11106_v21  ;;  %2490 = vmatpush1.msra.mxu0 %v11178_v29  ;;  %14775 = vst [vmem:[#allocation18_spill] sm:$0xff] %v11417_v62  ;;  %v11440_v35 = vsub.f32 %v1115_v52, %v11411_v30  ;;  %14779 = vst [vmem:[#allocation20_spill] sm:$0xff] %v11453_v63  ;;  %v1103_v52 = vld [vmem:[#allocation2 + $0x250] sm:$0xff] }
 0x18a   :  { %2823 = vmatpush1.msra.mxu1 %v11111_v49  ;;  %2492 = vmatprep.subr.mxu0 %v11187_v7 }
 0x18b   :  { %2825 = vmatprep.subr.mxu1 %v11116_v12  ;;  %2494 = vmatpush1.msra.mxu0 %v11196_v13  ;;  %14778 = vst [vmem:[#allocation28_spill] sm:$0xff] %v11440_v35 }
 0x18c   :  { %2827 = vmatpush1.msra.mxu1 %v11121_v47  ;;  %2496 = vmatprep.subr.mxu0 %v11208_v28 }
 0x18d   :  { %2829 = vmatprep.subr.mxu1 %v11129_v24  ;;  %2498 = vmatpush1.msra.mxu0 %v11220_v10 }
 0x18e   :  { %2831 = vmatpush1.msra.mxu1 %v11137_v31  ;;  %2500 = vmatprep.subr.mxu0 %v11232_v18 }
 0x18f   :  { %2833 = vmatprep.subr.mxu1 %v11145_v55  ;;  %2502 = vmatpush1.msra.mxu0 %v11243_v36 }
 0x190   :  { %2535 = vmatprep.mubr.f32.mxu0 %v14772_v22  ;;  %2835 = vmatpush1.msra.mxu1 %v11153_v50 }
 0x191   :  { %2541 = vmatmul.mubr.f32.vlgmr.msra.gmra.mxu0 %v11360_v15  ;;  %2717 = vmatprep.subr.mxu0 %v11127_v38  ;;  %v11462_v15 = vsub.f32 %v1112_v2, %v11426_v27  ;;  %v1055_v2 = vld [vmem:[#allocation2 + $0xd0] sm:$0xff] }
 0x192   :  { %2837 = vmatprep.subr.mxu1 %v11169_v41  ;;  %2720 = vmatpush1.msra.mxu0 %v11135_v58 }
 0x193   :  { %2839 = vmatpush1.msra.mxu1 %v11178_v29  ;;  %2723 = vmatprep.subr.mxu0 %v11143_v48  ;;  %14781 = vst [vmem:[#allocation21_spill] sm:$0xff] %v11462_v15 }
 0x194   :  { %2841 = vmatprep.subr.mxu1 %v11187_v7  ;;  %2726 = vmatpush1.msra.mxu0 %v11151_v5 }
 0x195   :  { %2843 = vmatpush1.msra.mxu1 %v11196_v13  ;;  %2729 = vmatprep.subr.mxu0 %v11160_v57 }
 0x196   :  { %2845 = vmatprep.subr.mxu1 %v11208_v28  ;;  %2732 = vmatpush1.msra.mxu0 %v11167_v19 }
 0x197   :  { %2847 = vmatpush1.msra.mxu1 %v11220_v10  ;;  %2735 = vmatprep.subr.mxu0 %v11176_v46 }
 0x198   :  { %2849 = vmatprep.subr.mxu1 %v11232_v18  ;;  %2738 = vmatpush1.msra.mxu0 %v11185_v40 }
 0x199   :  { %2851 = vmatpush1.msra.mxu1 %v11243_v36  ;;  %2884 = vmatprep.mubr.f32.mxu1 %v14772_v22 }
 0x19a   :  { %2741 = vmatprep.subr.mxu0 %v11206_v4  ;;  %2888 = vmatmul.mubr.f32.vlgmr.msra.gmra.mxu1 %v11339_v54  ;;  %v14780_v54 = vand.u32 4294901760, %v11127_v38 }
 0x19b   :  { %3031 = vmatprep.subr.mxu1 %v11106_v21  ;;  %2744 = vmatpush1.msra.mxu0 %v11218_v61  ;;  %v11409_v21 = vsub.f32 %v1121_v37, %v11386_v8  ;;  %v11424_v37 = vsub.f32 %v1118_v6, %v11397_v20 }
 0x19c   :  { %3033 = vmatpush1.msra.mxu1 %v11111_v49  ;;  %2747 = vmatprep.subr.mxu0 %v11230_v26  ;;  %v14038_v49 = vand.u32 4294901760, %v11391_v59 }
 0x19d   :  { %3035 = vmatprep.subr.mxu1 %v11116_v12  ;;  %2750 = vmatpush1.msra.mxu0 %v11241_v25  ;;  %14774 = vst [vmem:[#allocation16_spill] sm:$0xff] %v11409_v21  ;;  %v1109_v12 = vld [vmem:[#allocation2 + $0x280] sm:$0xff]  ;;  %14776 = vst [vmem:[#allocation26_spill] sm:$0xff] %v11424_v37  ;;  %v14786_v58 = vand.u32 4294901760, %v11409_v21 }
 0x19e   :  { %3037 = vmatpush1.msra.mxu1 %v11121_v47  ;;  %2753 = vmatprep.subr.mxu0 %v11253_v60  ;;  %v1061_v47 = vld [vmem:[#allocation2 + $0x100] sm:$0xff]  ;;  %v11449_v0 = vsub.f32 %v11391_v59, %v14038_v49 }
 0x19f   :  { %3039 = vmatprep.subr.mxu1 %v11129_v24  ;;  %2756 = vmatpush1.msra.mxu0 %v11263_v14  ;;  %v1106_v24 = vld [vmem:[#allocation2 + $0x268] sm:$0xff]  ;;  %v11455_v6 = vand.u32 4294901760, %v1061_v47 }
 0x1a0   :  { %3041 = vmatpush1.msra.mxu1 %v11137_v31  ;;  %2759 = vmatprep.subr.mxu0 %v11273_v45  ;;  %v11442_v31 = vand.u32 4294901760, %v1109_v12  ;;  %v11464_v49 = vand.u32 4294901760, %v1106_v24 }
 0x1a1   :  { %3043 = vmatprep.subr.mxu1 %v11145_v55  ;;  %2762 = vmatpush1.msra.mxu0 %v11278_v23  ;;  %v14783_v55 = vand.u32 4294901760, %v11402_v32 }
 0x1a2   :  { %2795 = vmatprep.mubr.f32.mxu0 %v14772_v22  ;;  %3045 = vmatpush1.msra.mxu1 %v11153_v50  ;;  %v11478_v50 = vand.u32 4294901760, %v1058_v3  ;;  %v11490_v38 = vsub.f32 %v1109_v12, %v11442_v31  ;;  %v14791_v12 = vand.u32 4294901760, %v11160_v57 }
 0x1a3   :  { %2798 = vmatmul.mubr.f32.vlgmr.msra.gmra.mxu0 %v11332_v11  ;;  %2913 = vmatprep.subr.mxu0 %v14780_v54  ;;  %v11472_v17 = vsub.f32 %v11402_v32, %v14783_v55  ;;  %v11476_v54 = vsub.f32 %v1064_v51, %v11434_v39  ;;  %v11492_v51 = vand.u32 4294901760, %v1103_v52  ;;  %v14788_v11 = vand.u32 4294901760, %v11151_v5 }
 0x1a4   :  { %3047 = vmatprep.subr.mxu1 %v11169_v41  ;;  %2917 = vmatpush1.msra.mxu0 %v14782_v44  ;;  %v14785_v41 = vand.u32 4294901760, %v11143_v48  ;;  %v11486_v44 = vsub.f32 %v11409_v21, %v14786_v58  ;;  %14787 = vst [vmem:[#allocation24_spill] sm:$0xff] %v11490_v38  ;;  %v3331_v48 = vand.u32 4294901760, %v11449_v0  ;;  %v11505_v55 = vsub.f32 %v1061_v47, %v11455_v6  ;;  %v1100_v58 = vld [vmem:[#allocation2 + $0x238] sm:$0xff] }
 0x1a5   :  { %14784 = vst [vmem:[#allocation22_spill] sm:$0xff] %v11476_v54  ;;  %3049 = vmatpush1.msra.mxu1 %v11178_v29  ;;  %v14789_v29 = vand.u32 4294901760, %v11417_v62  ;;  %v14792_v5 = vand.u32 4294901760, %v11424_v37  ;;  %v11517_v0 = vsub.f32 %v1106_v24, %v11464_v49  ;;  %v3219_v57 = vand.u32 4294901760, %v11472_v17  ;;  %3094 = vmatprep.mubr.f32.mxu1 %v14772_v22 }
 0x1a6   :  { %2921 = vmatprep.subr.mxu0 %v14785_v41  ;;  %3051 = vmatprep.subr.mxu1 %v11187_v7  ;;  %14790 = vst [vmem:[#allocation25_spill] sm:$0xff] %v11505_v55  ;;  %v14795_v47 = vand.u32 4294901760, %v11432_v16  ;;  %v11532_v24 = vsub.f32 %v1058_v3, %v11478_v50  ;;  %v14800_v3 = vand.u32 4294901760, %v11185_v40  ;;  %v14802_v40 = vand.u32 4294901760, %v11462_v15 }
 0x1a7   :  { %2925 = vmatpush1.msra.mxu0 %v14788_v11  ;;  %v11501_v41 = vsub.f32 %v11417_v62, %v14789_v29  ;;  %3053 = vmatpush1.msra.mxu1 %v11196_v13  ;;  %v11513_v7 = vsub.f32 %v11424_v37, %v14792_v5  ;;  %14793 = vst [vmem:[#allocation27_spill] sm:$0xff] %v11517_v0  ;;  %v11519_v29 = vand.u32 4294901760, %v1055_v2  ;;  %v14794_v13 = vand.u32 4294901760, %v11167_v19  ;;  %v1052_v5 = vld [vmem:[#allocation2 + $0xb8] sm:$0xff] }
 0x1a8   :  { %2929 = vmatprep.subr.mxu0 %v14791_v12  ;;  %3055 = vmatprep.subr.mxu1 %v11208_v28  ;;  %v11528_v12 = vsub.f32 %v11432_v16, %v14795_v47  ;;  %14796 = vst [vmem:[#allocation29_spill] sm:$0xff] %v11532_v24  ;;  %v14797_v11 = vand.u32 4294901760, %v11176_v46  ;;  %v3338_v19 = vand.u32 4294901760, %v11486_v44  ;;  %v14798_v28 = vand.u32 4294901760, %v11440_v35 }
 0x1a9   :  { %2933 = vmatpush1.msra.mxu0 %v14794_v13  ;;  %3057 = vmatpush1.msra.mxu1 %v11220_v10  ;;  %v11545_v47 = vsub.f32 %v1103_v52, %v11492_v51  ;;  %v3226_v46 = vand.u32 4294901760, %v11501_v41  ;;  %v14801_v10 = vand.u32 4294901760, %v11453_v63  ;;  %v1097_v13 = vld [vmem:[#allocation2 + $0x220] sm:$0xff]  ;;  %v11565_v52 = vsub.f32 %v11462_v15, %v14802_v40  ;;  %v1094_v41 = vld [vmem:[#allocation2 + $0x208] sm:$0xff]  ;;  %v1091_v40 = vld [vmem:[#allocation2 + $0x1f0] sm:$0xff] }
 0x1aa   :  { %2937 = vmatprep.subr.mxu0 %v14797_v11  ;;  %v11541_v17 = vsub.f32 %v11440_v35, %v14798_v28  ;;  %3059 = vmatprep.subr.mxu1 %v11232_v18  ;;  %v11557_v28 = vand.u32 4294901760, %v1100_v58  ;;  %v3345_v18 = vand.u32 4294901760, %v11513_v7  ;;  %v14804_v11 = vand.u32 4294901760, %v11206_v4 }
 0x1ab   :  { %14799 = vst [vmem:[#allocation30_spill] sm:$0xff] %v11545_v47  ;;  %2941 = vmatpush1.msra.mxu0 %v14800_v3  ;;  %v11554_v44 = vsub.f32 %v11453_v63, %v14801_v10  ;;  %3061 = vmatpush1.msra.mxu1 %v11243_v36  ;;  %v11569_v3 = vsub.f32 %v1055_v2, %v11519_v29  ;;  %v1049_v10 = vld [vmem:[#allocation2 + $0xa0] sm:$0xff]  ;;  %v3233_v36 = vand.u32 4294901760, %v11528_v12  ;;  %v14805_v7 = vand.u32 4294901760, %v11476_v54 }
 0x1ac   :  { %2945 = vmatprep.subr.mxu0 %v14804_v11  ;;  %3096 = vmatmul.mubr.f32.vlgmr.msra.gmra.mxu1 %v11321_v42  ;;  %v11581_v15 = vand.u32 4294901760, %v1052_v5  ;;  %v14806_v2 = vand.u32 4294901760, %v11218_v61  ;;  %v3352_v4 = vand.u32 4294901760, %v11541_v17  ;;  %v14807_v11 = vand.u32 4294901760, %v11490_v38 }
 0x1ad   :  { %14803 = vst [vmem:[#allocation31_spill] sm:$0xff] %v11569_v3  ;;  %v11578_v63 = vsub.f32 %v11476_v54, %v14805_v7  ;;  %8484 = vmatprep.subr.mxu1 %v3331_v48  ;;  %v11592_v7 = vand.u32 4294901760, %v1097_v13  ;;  %v1046_v54 = vld [vmem:[#allocation2 + $0x88] sm:$0xff]  ;;  %3439 = vmatprep.mubr.f32.mxu1 %v10826_v9  ;;  %v3240_v48 = vand.u32 4294901760, %v11554_v44  ;;  %v14808_v61 = vand.u32 4294901760, %v11505_v55 }
 0x1ae   :  { %2949 = vmatpush1.msra.mxu0 %v14806_v2  ;;  %v11589_v12 = vsub.f32 %v11490_v38, %v14807_v11  ;;  %8485 = vmatpush3.msra.mxu1 %v3219_v57  ;;  %v11602_v17 = vsub.f32 %v1100_v58, %v11557_v28  ;;  %v11604_v11 = vand.u32 4294901760, %v1049_v10  ;;  %v14810_v35 = vand.u32 4294901760, %v11230_v26  ;;  %v1043_v58 = vld [vmem:[#allocation2 + $0x70] sm:$0xff] }
 0x1af   :  { %v11599_v2 = vsub.f32 %v11505_v55, %v14808_v61  ;;  %8486 = vmatprep.subr.mxu1 %v3338_v19  ;;  %v3359_v57 = vand.u32 4294901760, %v11565_v52  ;;  %v14811_v9 = vand.u32 4294901760, %v11517_v0  ;;  %v11615_v55 = vand.u32 4294901760, %v1094_v41  ;;  %v1088_v61 = vld [vmem:[#allocation2 + $0x1d8] sm:$0xff]  ;;  %3006 = vmatprep.mubr.f32.mxu0 %v14772_v22 }
 0x1b0   :  { %14809 = vst [vmem:[#allocation33_spill] sm:$0xff] %v11602_v17  ;;  %2953 = vmatprep.subr.mxu0 %v14810_v35  ;;  %v14812_v38 = vand.u32 4294901760, %v11241_v25  ;;  %8487 = vmatpush3.msra.mxu1 %v3226_v46  ;;  %v3247_v26 = vand.u32 4294901760, %v11578_v63  ;;  %v14813_v35 = vand.u32 4294901760, %v11532_v24  ;;  %v11626_v52 = vsub.f32 %v1052_v5, %v11581_v15  ;;  %v1040_v5 = vld [vmem:[#allocation2 + $0x58] sm:$0xff] }
 0x1b1   :  { %v11612_v44 = vsub.f32 %v11517_v0, %v14811_v9  ;;  %v11628_v9 = vand.u32 4294901760, %v1046_v54  ;;  %v14815_v0 = vand.u32 4294901760, %v11253_v60  ;;  %8488 = vmatprep.subr.mxu1 %v3345_v18  ;;  %v3366_v25 = vand.u32 4294901760, %v11589_v12 }
 0x1b2   :  { %2957 = vmatpush1.msra.mxu0 %v14812_v38  ;;  %v11623_v19 = vsub.f32 %v11532_v24, %v14813_v35  ;;  %14814 = vst [vmem:[#allocation34_spill] sm:$0xff] %v11626_v52  ;;  %v14816_v38 = vand.u32 4294901760, %v11545_v47  ;;  %v11639_v46 = vsub.f32 %v1097_v13, %v11592_v7  ;;  %v11641_v35 = vand.u32 4294901760, %v1091_v40  ;;  %8489 = vmatpush3.msra.mxu1 %v3233_v36 }
 0x1b3   :  { %2961 = vmatprep.subr.mxu0 %v14815_v0  ;;  %v14818_v24 = vand.u32 4294901760, %v11263_v14  ;;  %v3254_v60 = vand.u32 4294901760, %v11599_v2  ;;  %v11648_v18 = vsub.f32 %v1049_v10, %v11604_v11  ;;  %v11650_v12 = vand.u32 4294901760, %v1043_v58  ;;  %8490 = vmatprep.subr.mxu1 %v3352_v4  ;;  %v1037_v10 = vld [vmem:[#allocation2 + $0x40] sm:$0xff] }
 0x1b4   :  { %v11636_v63 = vsub.f32 %v11545_v47, %v14816_v38  ;;  %14817 = vst [vmem:[#allocation39_spill] sm:$0xff] %v11639_v46  ;;  %v1085_v38 = vld [vmem:[#allocation2 + $0x1c0] sm:$0xff]  ;;  %v14820_v13 = vand.u32 4294901760, %v11273_v45  ;;  %v3373_v47 = vand.u32 4294901760, %v11612_v44  ;;  %v14821_v14 = vand.u32 4294901760, %v11569_v3  ;;  %8491 = vmatpush3.msra.mxu1 %v3240_v48  ;;  %v1031_v48 = vld [vmem:[#allocation2 + $0x10] sm:$0xff] }
 0x1b5   :  { %2965 = vmatpush1.msra.mxu0 %v14818_v24  ;;  %14819 = vst [vmem:[#allocation44_spill] sm:$0xff] %v11648_v18  ;;  %v11661_v36 = vsub.f32 %v1094_v41, %v11615_v55  ;;  %v11663_v2 = vand.u32 4294901760, %v1088_v61  ;;  %v14822_v0 = vand.u32 4294901760, %v11278_v23  ;;  %v3261_v45 = vand.u32 4294901760, %v11623_v19  ;;  %v1034_v19 = vld [vmem:[#allocation2 + $0x28] sm:$0xff]  ;;  %8492 = vmatprep.subr.mxu1 %v3359_v57  ;;  %v1079_v23 = vld [vmem:[#allocation2 + $0x190] sm:$0xff] }
 0x1b6   :  { %2969 = vmatprep.subr.mxu0 %v14820_v13  ;;  %v11658_v24 = vsub.f32 %v11569_v3, %v14821_v14  ;;  %v11671_v44 = vsub.f32 %v1046_v54, %v11628_v9  ;;  %v11673_v13 = vand.u32 4294901760, %v1040_v5  ;;  %v1082_v14 = vld [vmem:[#allocation2 + $0x1a8] sm:$0xff]  ;;  %v3380_v41 = vand.u32 4294901760, %v11636_v63  ;;  %8493 = vmatpush3.msra.mxu1 %v3247_v26 }
 0x1b7   :  { %2973 = vmatpush1.msra.mxu0 %v14822_v0  ;;  %v11679_v0 = vsub.f32 %v1091_v40, %v11641_v35  ;;  %v11681_v22 = vand.u32 4294901760, %v1085_v38  ;;  %v14824_v54 = vand.u32 4294901760, %v11602_v17  ;;  %v11691_v63 = vand.u32 4294901760, %v1037_v10  ;;  %v14825_v40 = vld [vmem:[#allocation10_spill] sm:$0xff]  ;;  %8494 = vmatprep.subr.mxu1 %v3366_v25 }
 0x1b8   :  { %14823 = vst [vmem:[#allocation47_spill] sm:$0xff] %v11671_v44  ;;  %3008 = vmatmul.mubr.f32.vlgmr.msra.gmra.mxu0 %v11321_v42  ;;  %8449 = vmatprep.subr.mxu0 %v11376_v34  ;;  %v11689_v42 = vsub.f32 %v1043_v58, %v11650_v12  ;;  %v3268_v3 = vand.u32 4294901760, %v11658_v24  ;;  %v11698_v16 = vsub.f32 %v1088_v61, %v11663_v2  ;;  %v14826_v58 = vand.u32 4294901760, %v11626_v52 }
 0x1b9   :  { %v3386_v4 = vsub.f32 %v11602_v17, %v14824_v54  ;;  %8450 = vmatpush3.msra.mxu0 %v11382_v53  ;;  %3203 = vmatprep.mubr.f32.mxu0 %v14825_v40  ;;  %v11700_v54 = vand.u32 4294901760, %v1082_v14  ;;  %v11708_v40 = vsub.f32 %v1040_v5, %v11673_v13  ;;  %v11710_v24 = vand.u32 4294901760, %v1034_v19 }
 0x1ba   :  { %8451 = vmatprep.subr.mxu0 %v11386_v8  ;;  %v3274_v17 = vsub.f32 %v11626_v52, %v14826_v58  ;;  %v14827_v61 = vand.u32 4294901760, %v11639_v46  ;;  %v11718_v62 = vsub.f32 %v1085_v38, %v11681_v22  ;;  %v11720_v58 = vand.u32 4294901760, %v1079_v23  ;;  %8495 = vmatpush3.msra.mxu1 %v3254_v60 }
 0x1bb   :  { %8452 = vmatpush3.msra.mxu0 %v11393_v43  ;;  %v14828_v5 = vand.u32 4294901760, %v11648_v18  ;;  %v11728_v52 = vsub.f32 %v1037_v10, %v11691_v63  ;;  %8496 = vmatprep.subr.mxu1 %v3373_v47  ;;  %v3387_v38 = vand.u32 4294901760, %v3386_v4  ;;  %v14829_v57 = vand.u32 4294901760, %v11661_v36 }
 0x1bc   :  { %v3393_v26 = vsub.f32 %v11639_v46, %v14827_v61  ;;  %8453 = vmatprep.subr.mxu0 %v11397_v20  ;;  %v11730_v61 = vand.u32 4294901760, %v1031_v48  ;;  %v11738_v21 = vsub.f32 %v1082_v14, %v11700_v54  ;;  %8497 = vmatpush3.msra.mxu1 %v3261_v45  ;;  %v3275_v10 = vand.u32 4294901760, %v3274_v17 }
 0x1bd   :  { %v3281_v25 = vsub.f32 %v11648_v18, %v14828_v5  ;;  %8454 = vmatpush3.msra.mxu0 %v11404_v56  ;;  %v3400_v60 = vsub.f32 %v11661_v36, %v14829_v57  ;;  %v14830_v5 = vand.u32 4294901760, %v11671_v44  ;;  %v11746_v4 = vsub.f32 %v1034_v19, %v11710_v24  ;;  %8498 = vmatprep.subr.mxu1 %v3380_v41 }
 0x1be   :  { %8455 = vmatprep.subr.mxu0 %v11411_v30  ;;  %v3394_v57 = vand.u32 4294901760, %v3393_v26  ;;  %v14831_v14 = vand.u32 4294901760, %v11679_v0  ;;  %v11754_v17 = vsub.f32 %v1079_v23, %v11720_v58  ;;  %8499 = vmatpush3.msra.mxu1 %v3268_v3  ;;  %v14832_v19 = vand.u32 4294901760, %v11689_v42 }
 0x1bf   :  { %v3288_v47 = vsub.f32 %v11671_v44, %v14830_v5  ;;  %8456 = vmatpush3.msra.mxu0 %v11419_v1  ;;  %v3282_v5 = vand.u32 4294901760, %v3281_v25  ;;  %v11762_v26 = vsub.f32 %v1031_v48, %v11730_v61  ;;  %8500 = vmatprep.subr.mxu1 %v3387_v38  ;;  %v14833_v23 = vand.u32 4294901760, %v11698_v16 }
 0x1c0   :  { %v3407_v45 = vsub.f32 %v11679_v0, %v14831_v14  ;;  %8457 = vmatprep.subr.mxu0 %v11426_v27  ;;  %v3295_v41 = vsub.f32 %v11689_v42, %v14832_v19  ;;  %v3401_v14 = vand.u32 4294901760, %v3400_v60  ;;  %8501 = vmatpush3.msra.mxu1 %v3275_v10  ;;  %v14834_v19 = vand.u32 4294901760, %v11708_v40 }
 0x1c1   :  { %8458 = vmatpush3.msra.mxu0 %v11434_v39  ;;  %v3414_v3 = vsub.f32 %v11698_v16, %v14833_v23  ;;  %v3289_v25 = vand.u32 4294901760, %v3288_v47  ;;  %8502 = vmatprep.subr.mxu1 %v3394_v57  ;;  %v14835_v60 = vand.u32 4294901760, %v11718_v62  ;;  %v14836_v47 = vand.u32 4294901760, %v11728_v52 }
 0x1c2   :  { %8459 = vmatprep.subr.mxu0 %v11442_v31  ;;  %v3302_v37 = vsub.f32 %v11708_v40, %v14834_v19  ;;  %v3408_v38 = vand.u32 4294901760, %v3407_v45  ;;  %8503 = vmatpush3.msra.mxu1 %v3282_v5  ;;  %v3296_v10 = vand.u32 4294901760, %v3295_v41  ;;  %v14080_v48 = vand.u32 4294901760, %v11762_v26 }
 0x1c3   :  { %8460 = vmatpush3.msra.mxu0 %v11455_v6  ;;  %v3421_v23 = vsub.f32 %v11718_v62, %v14835_v60  ;;  %v3309_v19 = vsub.f32 %v11728_v52, %v14836_v47  ;;  %8504 = vmatprep.subr.mxu1 %v3401_v14  ;;  %v3415_v57 = vand.u32 4294901760, %v3414_v3  ;;  %v14837_v45 = vand.u32 4294901760, %v11738_v21 }
 0x1c4   :  { %8461 = vmatprep.subr.mxu0 %v11464_v49  ;;  %8505 = vmatpush3.msra.mxu1 %v3289_v25  ;;  %v3303_v5 = vand.u32 4294901760, %v3302_v37  ;;  %v14838_v41 = vand.u32 4294901760, %v11746_v4  ;;  %v14839_v14 = vand.u32 4294901760, %v11754_v17  ;;  %v3323_v37 = vsub.f32 %v11762_v26, %v14080_v48  ;;  %v14858_v48 = vld [vmem:[#allocation34_spill] sm:$0xff] }
 0x1c5   :  { %8462 = vmatpush3.msra.mxu0 %v11478_v50  ;;  %v3428_v60 = vsub.f32 %v11738_v21, %v14837_v45  ;;  %8506 = vmatprep.subr.mxu1 %v3408_v38  ;;  %v3422_v47 = vand.u32 4294901760, %v3421_v23  ;;  %v3310_v45 = vand.u32 4294901760, %v3309_v19  ;;  %v14841_v19 = vld [vmem:[#allocation11_spill] sm:$0xff] }
 0x1c6   :  { %8463 = vmatprep.subr.mxu0 %v11492_v51  ;;  %v3316_v46 = vsub.f32 %v11746_v4, %v14838_v41  ;;  %v3435_v3 = vsub.f32 %v11754_v17, %v14839_v14  ;;  %8507 = vmatpush3.msra.mxu1 %v3296_v10  ;;  %v3324_v10 = vand.u32 4294901760, %v3323_v37  ;;  %v14845_v41 = vld [vmem:[#allocation26_spill] sm:$0xff]  ;;  %v14847_v14 = vld [vmem:[#allocation28_spill] sm:$0xff] }
 0x1c7   :  { %8464 = vmatpush3.msra.mxu0 %v11519_v29  ;;  %8508 = vmatprep.subr.mxu1 %v3415_v57  ;;  %v3429_v25 = vand.u32 4294901760, %v3428_v60  ;;  %v14842_v57 = vld [vmem:[#allocation137_spill] sm:$0xff]  ;;  %v14843_v60 = vld [vmem:[#allocation16_spill] sm:$0xff]  ;;  %v14850_v37 = vld [vmem:[#allocation22_spill] sm:$0xff] }
 0x1c8   :  { %8465 = vmatprep.subr.mxu0 %v11557_v28  ;;  %8509 = vmatpush3.msra.mxu1 %v3303_v5  ;;  %v3317_v38 = vand.u32 4294901760, %v3316_v46  ;;  %v3436_v23 = vand.u32 4294901760, %v3435_v3  ;;  %v14840_v46 = vld [vmem:[#allocation9_spill] sm:$0xff]  ;;  %v14844_v5 = vld [vmem:[#allocation18_spill] sm:$0xff]  ;;  %v14848_v3 = vld [vmem:[#allocation20_spill] sm:$0xff] }
 0x1c9   :  { %8466 = vmatpush3.msra.mxu0 %v11581_v15  ;;  %8510 = vmatprep.subr.mxu1 %v3422_v47  ;;  %v14846_v47 = vld [vmem:[#allocation19_spill] sm:$0xff] }
 0x1ca   :  { %8467 = vmatprep.subr.mxu0 %v11592_v7  ;;  %8511 = vmatpush3.msra.mxu1 %v3310_v45  ;;  %v14849_v45 = vld [vmem:[#allocation21_spill] sm:$0xff] }
 0x1cb   :  { %8468 = vmatpush3.msra.mxu0 %v11604_v11  ;;  %8512 = vmatprep.subr.mxu1 %v3429_v25  ;;  %v14851_v25 = vld [vmem:[#allocation24_spill] sm:$0xff] }
 0x1cc   :  { %8469 = vmatprep.subr.mxu0 %v11615_v55  ;;  %8513 = vmatpush3.msra.mxu1 %v3317_v38  ;;  %v14852_v38 = vld [vmem:[#allocation25_spill] sm:$0xff] }
 0x1cd   :  { %8470 = vmatpush3.msra.mxu0 %v11628_v9  ;;  %8514 = vmatprep.subr.mxu1 %v3436_v23  ;;  %v14853_v23 = vld [vmem:[#allocation27_spill] sm:$0xff] }
 0x1ce   :  { %8471 = vmatprep.subr.mxu0 %v11641_v35  ;;  %8515 = vmatpush3.msra.mxu1 %v3324_v10  ;;  %v14854_v10 = vld [vmem:[#allocation29_spill] sm:$0xff] }
 0x1cf   :  { %8472 = vmatpush3.msra.mxu0 %v11650_v12  ;;  %3441 = vmatmul.mubr.f32.vlgmr.msra.gmra.mxu1 %v14760_v33  ;;  %v14859_v33 = vld [vmem:[#allocation39_spill] sm:$0xff] }
 0x1d0   :  { %8473 = vmatprep.subr.mxu0 %v11663_v2  ;;  %8554 = vmatprep.subr.mxu1 %v11376_v34 }
 0x1d1   :  { %8474 = vmatpush3.msra.mxu0 %v11673_v13  ;;  %8555 = vmatpush3.msra.mxu1 %v11382_v53 }
 0x1d2   :  { %3683 = vmatprep.mubr.f32.mxu1 %v14840_v46  ;;  %8475 = vmatprep.subr.mxu0 %v11681_v22  ;;  %v14855_v46 = vld [vmem:[#allocation30_spill] sm:$0xff] }
 0x1d3   :  { %8556 = vmatprep.subr.mxu1 %v11386_v8  ;;  %8476 = vmatpush3.msra.mxu0 %v11691_v63 }
 0x1d4   :  { %8557 = vmatpush3.msra.mxu1 %v11393_v43  ;;  %8477 = vmatprep.subr.mxu0 %v11700_v54 }
 0x1d5   :  { %8558 = vmatprep.subr.mxu1 %v11397_v20  ;;  %8478 = vmatpush3.msra.mxu0 %v11710_v24 }
 0x1d6   :  { %8559 = vmatpush3.msra.mxu1 %v11404_v56  ;;  %8479 = vmatprep.subr.mxu0 %v11720_v58 }
 0x1d7   :  { %8560 = vmatprep.subr.mxu1 %v11411_v30  ;;  %8480 = vmatpush3.msra.mxu0 %v11730_v61 }
 0x1d8   :  { %8561 = vmatpush3.msra.mxu1 %v11419_v1  ;;  %3209 = vmatmul.mubr.f32.vlgmr.msra.gmra.mxu0 %v14841_v19  ;;  %v14856_v19 = vld [vmem:[#allocation31_spill] sm:$0xff] }
 0x1d9   :  { %8519 = vmatprep.subr.mxu0 %v11391_v59  ;;  %8562 = vmatprep.subr.mxu1 %v11426_v27 }
 0x1da   :  { %8520 = vmatpush3.msra.mxu0 %v11402_v32  ;;  %3576 = vmatprep.mubr.f32.mxu0 %v14842_v57  ;;  %v14857_v57 = vld [vmem:[#allocation33_spill] sm:$0xff] }
 0x1db   :  { %8563 = vmatpush3.msra.mxu1 %v11434_v39  ;;  %8521 = vmatprep.subr.mxu0 %v14843_v60 }
 0x1dc   :  { %8564 = vmatprep.subr.mxu1 %v11442_v31  ;;  %8522 = vmatpush3.msra.mxu0 %v14844_v5 }
 0x1dd   :  { %8565 = vmatpush3.msra.mxu1 %v11455_v6  ;;  %8523 = vmatprep.subr.mxu0 %v14845_v41 }
 0x1de   :  { %8566 = vmatprep.subr.mxu1 %v11464_v49  ;;  %8524 = vmatpush3.msra.mxu0 %v14846_v47 }
 0x1df   :  { %8567 = vmatpush3.msra.mxu1 %v11478_v50  ;;  %8525 = vmatprep.subr.mxu0 %v14847_v14 }
 0x1e0   :  { %8568 = vmatprep.subr.mxu1 %v11492_v51  ;;  %8526 = vmatpush3.msra.mxu0 %v14848_v3 }
 0x1e1   :  { %8569 = vmatpush3.msra.mxu1 %v11519_v29  ;;  %8527 = vmatprep.subr.mxu0 %v14849_v45 }
 0x1e2   :  { %8570 = vmatprep.subr.mxu1 %v11557_v28  ;;  %8528 = vmatpush3.msra.mxu0 %v14850_v37 }
 0x1e3   :  { %8571 = vmatpush3.msra.mxu1 %v11581_v15  ;;  %8529 = vmatprep.subr.mxu0 %v14851_v25 }
 0x1e4   :  { %8572 = vmatprep.subr.mxu1 %v11592_v7  ;;  %8530 = vmatpush3.msra.mxu0 %v14852_v38 }
 0x1e5   :  { %8573 = vmatpush3.msra.mxu1 %v11604_v11  ;;  %8531 = vmatprep.subr.mxu0 %v14853_v23 }
 0x1e6   :  { %8574 = vmatprep.subr.mxu1 %v11615_v55  ;;  %8532 = vmatpush3.msra.mxu0 %v14854_v10 }
 0x1e7   :  { %8575 = vmatpush3.msra.mxu1 %v11628_v9  ;;  %8533 = vmatprep.subr.mxu0 %v14855_v46 }
 0x1e8   :  { %8576 = vmatprep.subr.mxu1 %v11641_v35  ;;  %8534 = vmatpush3.msra.mxu0 %v14856_v19 }
 0x1e9   :  { %8577 = vmatpush3.msra.mxu1 %v11650_v12  ;;  %8535 = vmatprep.subr.mxu0 %v14857_v57 }
 0x1ea   :  { %8578 = vmatprep.subr.mxu1 %v11663_v2  ;;  %8536 = vmatpush3.msra.mxu0 %v14858_v48 }
 0x1eb   :  { %8579 = vmatpush3.msra.mxu1 %v11673_v13  ;;  %8537 = vmatprep.subr.mxu0 %v14859_v33 }
 0x1ec   :  { %8580 = vmatprep.subr.mxu1 %v11681_v22  ;;  %8538 = vmatpush3.msra.mxu0 %v11648_v18  ;;  %v14860_v18 = vld [vmem:[#allocation136_spill] sm:$0xff] }
 0x1ed   :  { %8581 = vmatpush3.msra.mxu1 %v11691_v63  ;;  %8539 = vmatprep.subr.mxu0 %v11661_v36 }
 0x1ee   :  { %8582 = vmatprep.subr.mxu1 %v11700_v54  ;;  %8540 = vmatpush3.msra.mxu0 %v11671_v44  ;;  %v14861_v44 = vld [vmem:[#allocation135_spill] sm:$0xff] }
 0x1ef   :  { %8583 = vmatpush3.msra.mxu1 %v11710_v24  ;;  %8541 = vmatprep.subr.mxu0 %v11679_v0 }
 0x1f0   :  { %8584 = vmatprep.subr.mxu1 %v11720_v58  ;;  %8542 = vmatpush3.msra.mxu0 %v11689_v42 }
 0x1f1   :  { %8585 = vmatpush3.msra.mxu1 %v11730_v61  ;;  %8543 = vmatprep.subr.mxu0 %v11698_v16 }
 0x1f2   :  { %3687 = vmatmul.mubr.f32.vlgmr.msra.gmra.mxu1 %v14860_v18  ;;  %8624 = vmatprep.subr.mxu1 %v11376_v34  ;;  %v14862_v34 = vld [vmem:[#allocation134_spill] sm:$0xff]  ;;  %v1139_v18 = vld [vmem:[#allocation2 + $0x370] sm:$0xff] }
 0x1f3   :  { %8544 = vmatpush3.msra.mxu0 %v11708_v40  ;;  %8625 = vmatpush3.msra.mxu1 %v11382_v53  ;;  %v14863_v53 = vand.u32 4294901760, %v11391_v59  ;;  %v14869_v59 = vand.u32 4294901760, %v14847_v14 }
 0x1f4   :  { %3957 = vmatprep.mubr.f32.mxu1 %v14861_v44  ;;  %8545 = vmatprep.subr.mxu0 %v11718_v62 }
 0x1f5   :  { %8626 = vmatprep.subr.mxu1 %v11386_v8  ;;  %8546 = vmatpush3.msra.mxu0 %v11728_v52  ;;  %v14864_v8 = vand.u32 4294901760, %v11402_v32  ;;  %v14868_v32 = vand.u32 4294901760, %v14846_v47  ;;  %v14876_v47 = vand.u32 4294901760, %v14854_v10 }
 0x1f6   :  { %8627 = vmatpush3.msra.mxu1 %v11393_v43  ;;  %8547 = vmatprep.subr.mxu0 %v11738_v21 }
 0x1f7   :  { %8628 = vmatprep.subr.mxu1 %v11397_v20  ;;  %8548 = vmatpush3.msra.mxu0 %v11746_v4  ;;  %v14870_v20 = vand.u32 4294901760, %v14848_v3  ;;  %v1133_v3 = vld [vmem:[#allocation2 + $0x340] sm:$0xff] }
 0x1f8   :  { %8629 = vmatpush3.msra.mxu1 %v11404_v56  ;;  %8549 = vmatprep.subr.mxu0 %v11754_v17  ;;  %v1148_v56 = vld [vmem:[#allocation2 + $0x3b8] sm:$0xff] }
 0x1f9   :  { %8630 = vmatprep.subr.mxu1 %v11411_v30  ;;  %8550 = vmatpush3.msra.mxu0 %v11762_v26  ;;  %v14865_v30 = vand.u32 4294901760, %v14843_v60  ;;  %v11915_v43 = vand.u32 4294901760, %v1148_v56  ;;  %v14874_v60 = vand.u32 4294901760, %v14852_v38  ;;  %v1130_v38 = vld [vmem:[#allocation2 + $0x328] sm:$0xff] }
 0x1fa   :  { %8631 = vmatpush3.msra.mxu1 %v11419_v1  ;;  %3579 = vmatmul.mubr.f32.vlgmr.msra.gmra.mxu0 %v14862_v34  ;;  %v14866_v1 = vand.u32 4294901760, %v14844_v5  ;;  %v11945_v5 = vand.u32 4294901760, %v1139_v18  ;;  %v11987_v34 = vand.u32 4294901760, %v1130_v38 }
 0x1fb   :  { %8589 = vmatprep.subr.mxu0 %v14863_v53  ;;  %8632 = vmatprep.subr.mxu1 %v11426_v27  ;;  %v14867_v27 = vand.u32 4294901760, %v14845_v41  ;;  %v1136_v41 = vld [vmem:[#allocation2 + $0x358] sm:$0xff] }
 0x1fc   :  { %8590 = vmatpush3.msra.mxu0 %v14864_v8  ;;  %3853 = vmatprep.mubr.f32.mxu0 %v14861_v44  ;;  %v11932_v44 = vsub.f32 %v1148_v56, %v11915_v43 }
 0x1fd   :  { %8633 = vmatpush3.msra.mxu1 %v11434_v39  ;;  %8591 = vmatprep.subr.mxu0 %v14865_v30  ;;  %v1145_v39 = vld [vmem:[#allocation2 + $0x3a0] sm:$0xff] }
 0x1fe   :  { %8634 = vmatprep.subr.mxu1 %v11442_v31  ;;  %8592 = vmatpush3.msra.mxu0 %v14866_v1  ;;  %v11923_v31 = vand.u32 4294901760, %v1145_v39 }
 0x1ff   :  { %8635 = vmatpush3.msra.mxu1 %v11455_v6  ;;  %8593 = vmatprep.subr.mxu0 %v14867_v27  ;;  %v1142_v6 = vld [vmem:[#allocation2 + $0x388] sm:$0xff] }
 0x200   :  { %8636 = vmatprep.subr.mxu1 %v11464_v49  ;;  %8594 = vmatpush3.msra.mxu0 %v14868_v32  ;;  %v14871_v49 = vand.u32 4294901760, %v14849_v45  ;;  %v14878_v45 = vand.u32 4294901760, %v14856_v19  ;;  %v1127_v19 = vld [vmem:[#allocation2 + $0x310] sm:$0xff]  ;;  %v12015_v32 = vsub.f32 %v1130_v38, %v11987_v34  ;;  %v4519_v38 = vld [vmem:[%s13766_s4 + $0x78] sm:$0xff] }
 0x201   :  { %8637 = vmatpush3.msra.mxu1 %v11478_v50  ;;  %8595 = vmatprep.subr.mxu0 %v14869_v59  ;;  %v14872_v50 = vand.u32 4294901760, %v14850_v37  ;;  %v12002_v1 = vand.u32 4294901760, %v1127_v19  ;;  %v14890_v59 = vld [vmem:[#allocation133_spill] sm:$0xff] }
 0x202   :  { %8638 = vmatprep.subr.mxu1 %v11492_v51  ;;  %8596 = vmatpush3.msra.mxu0 %v14870_v20  ;;  %v14873_v51 = vand.u32 4294901760, %v14851_v25  ;;  %v11967_v25 = vsub.f32 %v1139_v18, %v11945_v5  ;;  %v14894_v18 = vand.u32 4294901760, %v11728_v52  ;;  %v14897_v52 = vand.u32 4294901760, %v11754_v17 }
 0x203   :  { %8639 = vmatpush3.msra.mxu1 %v11519_v29  ;;  %8597 = vmatprep.subr.mxu0 %v14871_v49  ;;  %v11934_v29 = vand.u32 4294901760, %v1142_v6  ;;  %v12027_v20 = vsub.f32 %v1127_v19, %v12002_v1  ;;  %v4533_v19 = vld [vmem:[%s13766_s4 + $0xe8] sm:$0xff] }
 0x204   :  { %8640 = vmatprep.subr.mxu1 %v11557_v28  ;;  %8598 = vmatpush3.msra.mxu0 %v14872_v50  ;;  %v14875_v28 = vand.u32 4294901760, %v14853_v23  ;;  %v11972_v23 = vand.u32 4294901760, %v1133_v3  ;;  %v14088_v53 = vand.u32 4294901760, %v11967_v25  ;;  %v14085_v50 = vand.u32 4294901760, %v12015_v32 }
 0x205   :  { %8641 = vmatpush3.msra.mxu1 %v11581_v15  ;;  %8599 = vmatprep.subr.mxu0 %v14873_v51  ;;  %v11943_v15 = vsub.f32 %v1145_v39, %v11923_v31  ;;  %v11955_v14 = vsub.f32 %v1142_v6, %v11934_v29  ;;  %v14892_v6 = vand.u32 4294901760, %v11708_v40  ;;  %v14895_v40 = vand.u32 4294901760, %v11738_v21 }
 0x206   :  { %8642 = vmatprep.subr.mxu1 %v11592_v7  ;;  %8600 = vmatpush3.msra.mxu0 %v14874_v60  ;;  %v14877_v7 = vand.u32 4294901760, %v14855_v46  ;;  %v12000_v30 = vsub.f32 %v1133_v3, %v11972_v23  ;;  %v4088_v39 = vsub.f32 %v11967_v25, %v14088_v53  ;;  %v14084_v60 = vand.u32 4294901760, %v12027_v20  ;;  %v14899_v3 = vld [vmem:[#allocation13_spill] sm:$0xff] }
 0x207   :  { %8643 = vmatpush3.msra.mxu1 %v11604_v11  ;;  %8601 = vmatprep.subr.mxu0 %v14875_v28  ;;  %v4066_v11 = vand.u32 4294901760, %v11932_v44  ;;  %v4073_v37 = vand.u32 4294901760, %v11943_v15  ;;  %v14089_v46 = vand.u32 4294901760, %v11955_v14  ;;  %v14896_v28 = vand.u32 4294901760, %v11746_v4 }
 0x208   :  { %8644 = vmatprep.subr.mxu1 %v11615_v55  ;;  %8602 = vmatpush3.msra.mxu0 %v14876_v47  ;;  %v11960_v55 = vand.u32 4294901760, %v1136_v41  ;;  %v4089_v51 = vand.u32 4294901760, %v4088_v39  ;;  %v4109_v21 = vsub.f32 %v12015_v32, %v14085_v50  ;;  %v14898_v47 = vand.u32 4294901760, %v11762_v26  ;;  %v4516_v39 = vld [vmem:[%s13766_s4 + $0x60] sm:$0xff] }
 0x209   :  { %8645 = vmatpush3.msra.mxu1 %v11628_v9  ;;  %8603 = vmatprep.subr.mxu0 %v14877_v7  ;;  %v14879_v9 = vand.u32 4294901760, %v14857_v57  ;;  %v4067_v10 = vsub.f32 %v11932_v44, %v4066_v11  ;;  %v4081_v56 = vsub.f32 %v11955_v14, %v14089_v46  ;;  %v4116_v17 = vsub.f32 %v12027_v20, %v14084_v60 }
 0x20a   :  { %8646 = vmatprep.subr.mxu1 %v11641_v35  ;;  %8604 = vmatpush3.msra.mxu0 %v14878_v45  ;;  %v14880_v35 = vand.u32 4294901760, %v14858_v48  ;;  %v11985_v48 = vsub.f32 %v1136_v41, %v11960_v55  ;;  %v4110_v7 = vand.u32 4294901760, %v4109_v21  ;;  %v14900_v45 = vld [vmem:[#allocation23_spill] sm:$0xff] }
 0x20b   :  { %8647 = vmatpush3.msra.mxu1 %v11650_v12  ;;  %8605 = vmatprep.subr.mxu0 %v14879_v9  ;;  %v14881_v12 = vand.u32 4294901760, %v14859_v33  ;;  %v14884_v33 = vand.u32 4294901760, %v11661_v36  ;;  %v14887_v36 = vand.u32 4294901760, %v11679_v0  ;;  %v14889_v0 = vand.u32 4294901760, %v11698_v16  ;;  %v4535_v9 = vld [vmem:[%s13766_s4 + $0xf8] sm:$0xff] }
 0x20c   :  { %8648 = vmatprep.subr.mxu1 %v11663_v2  ;;  %8606 = vmatpush3.msra.mxu0 %v14880_v35  ;;  %v14882_v2 = vld [vmem:[#allocation44_spill] sm:$0xff]  ;;  %v14087_v27 = vand.u32 4294901760, %v11985_v48  ;;  %v4082_v16 = vand.u32 4294901760, %v4081_v56  ;;  %v4117_v26 = vand.u32 4294901760, %v4116_v17  ;;  %v4534_v35 = vld [vmem:[%s13766_s4 + $0xf0] sm:$0xff]  ;;  %v4532_v56 = vld [vmem:[%s13766_s4 + $0xe0] sm:$0xff] }
 0x20d   :  { %8649 = vmatpush3.msra.mxu1 %v11673_v13  ;;  %8607 = vmatprep.subr.mxu0 %v14881_v12  ;;  %v14883_v57 = vand.u32 4294901760, %v14882_v2  ;;  %v4074_v13 = vsub.f32 %v11943_v15, %v4073_v37  ;;  %v4518_v12 = vld [vmem:[%s13766_s4 + $0x70] sm:$0xff]  ;;  %v12123_v2 = vand.u32 4294901760, %v4519_v38 }
 0x20e   :  { %8650 = vmatprep.subr.mxu1 %v11681_v22  ;;  %v14885_v22 = vld [vmem:[#allocation47_spill] sm:$0xff]  ;;  %v4095_v49 = vsub.f32 %v11985_v48, %v14087_v27 }
 0x20f   :  { %8608 = vmatpush3.msra.mxu0 %v14883_v57  ;;  %8651 = vmatpush3.msra.mxu1 %v11691_v63  ;;  %v14886_v8 = vand.u32 4294901760, %v14885_v22  ;;  %v4068_v63 = vand.u32 4294901760, %v4067_v10  ;;  %v12116_v10 = vand.u32 4294901760, %v4535_v9  ;;  %v12127_v57 = vand.u32 4294901760, %v4534_v35  ;;  %v4517_v22 = vld [vmem:[%s13766_s4 + $0x68] sm:$0xff] }
 0x210   :  { %8609 = vmatprep.subr.mxu0 %v14884_v33  ;;  %8652 = vmatprep.subr.mxu1 %v11700_v54  ;;  %v14888_v54 = vand.u32 4294901760, %v11689_v42  ;;  %v14086_v42 = vand.u32 4294901760, %v12000_v30  ;;  %v4096_v41 = vand.u32 4294901760, %v4095_v49  ;;  %v12129_v33 = vand.u32 4294901760, %v4518_v12 }
 0x211   :  { %8610 = vmatpush3.msra.mxu0 %v14886_v8  ;;  %8653 = vmatpush3.msra.mxu1 %v11710_v24  ;;  %v4075_v24 = vand.u32 4294901760, %v4074_v13  ;;  %v12133_v13 = vand.u32 4294901760, %v4533_v19  ;;  %v12142_v8 = vsub.f32 %v4535_v9, %v12116_v10 }
 0x212   :  { %8611 = vmatprep.subr.mxu0 %v14887_v36  ;;  %8654 = vmatprep.subr.mxu1 %v11720_v58  ;;  %v14891_v58 = vmov 0.0   ;;  %14901 = vst [vmem:[#allocation49_spill] sm:$0xff] %v12129_v33  ;;  %v14904_v36 = vld [vmem:[#allocation17_spill] sm:$0xff] }
 0x213   :  { %8612 = vmatpush3.msra.mxu0 %v14888_v54  ;;  %8655 = vmatpush3.msra.mxu1 %v11730_v61  ;;  %v14893_v61 = vand.u32 4294901760, %v11718_v62  ;;  %v4102_v62 = vsub.f32 %v12000_v30, %v14086_v42  ;;  %14902 = vst [vmem:[#allocation60_spill] sm:$0xff] %v12133_v13  ;;  %14903 = vst [vmem:[#allocation61_spill] sm:$0xff] %v12142_v8  ;;  %v12155_v54 = vsub.f32 %v4534_v35, %v12127_v57 }
 0x214   :  { %8613 = vmatprep.subr.mxu0 %v14889_v0  ;;  %3959 = vmatmul.mubr.f32.vlgmr.msra.gmra.mxu1 %v14890_v59  ;;  %v12158_v0 = vsub.f32 %v4518_v12, %v12129_v33  ;;  %v12182_v49 = vand.u32 4294901760, %v12142_v8 }
 0x215   :  { %9332 = vmatprep.subr.mxu1 %v14891_v58  ;;  %8614 = vmatpush3.msra.mxu0 %v14892_v6  ;;  %v4103_v4 = vand.u32 4294901760, %v4102_v62  ;;  %14906 = vst [vmem:[#allocation73_spill] sm:$0xff] %v12155_v54  ;;  %v8430_v6 = vld [vmem:[%s13765_s3 + $0x1] ss:$2 sm:$0x7]  ;;  %v12197_v62 = vand.u32 4294901760, %v4516_v39 }
 0x216   :  { %9333 = vmatpush3.msra.mxu1 %v4068_v63  ;;  %8615 = vmatprep.subr.mxu0 %v14893_v61  ;;  %v12147_v63 = vsub.f32 %v4519_v38, %v12123_v2  ;;  %14907 = vst [vmem:[#allocation76_spill] sm:$0xff] %v12158_v0  ;;  %v4515_v61 = vld [vmem:[%s13766_s4 + $0x58] sm:$0xff]  ;;  %14910 = vst [vmem:[#allocation80_spill] sm:$0xff] %v12182_v49 }
 0x217   :  { %9334 = vmatprep.subr.mxu1 %v14891_v58  ;;  %8616 = vmatpush3.msra.mxu0 %v14894_v18  ;;  %v12184_v18 = vand.u32 4294901760, %v4532_v56  ;;  %14913 = vst [vmem:[#allocation83_spill] sm:$0xff] %v12197_v62 }
 0x218   :  { %9335 = vmatpush3.msra.mxu1 %v4075_v24  ;;  %8617 = vmatprep.subr.mxu0 %v14895_v40  ;;  %14905 = vst [vmem:[#allocation68_spill] sm:$0xff] %v12147_v63  ;;  %v12160_v24 = vand.u32 4294901760, %v4517_v22  ;;  %v12195_v40 = vand.u32 4294901760, %v12147_v63 }
 0x219   :  { %9336 = vmatprep.subr.mxu1 %v14891_v58  ;;  %8618 = vmatpush3.msra.mxu0 %v14896_v28  ;;  %14911 = vst [vmem:[#allocation81_spill] sm:$0xff] %v12184_v18  ;;  %v12237_v12 = vsub.f32 %v4532_v56, %v12184_v18 }
 0x21a   :  { %9337 = vmatpush3.msra.mxu1 %v4082_v16  ;;  %8619 = vmatprep.subr.mxu0 %v14897_v52  ;;  %14908 = vst [vmem:[#allocation77_spill] sm:$0xff] %v12160_v24  ;;  %v12174_v16 = vsub.f32 %v4533_v19, %v12133_v13  ;;  %14912 = vst [vmem:[#allocation82_spill] sm:$0xff] %v12195_v40  ;;  %v4529_v52 = vld [vmem:[%s13766_s4 + $0xc8] sm:$0xff]  ;;  %v12213_v21 = vsub.f32 %v4517_v22, %v12160_v24 }
 0x21b   :  { %9338 = vmatprep.subr.mxu1 %v14891_v58  ;;  %8620 = vmatpush3.msra.mxu0 %v14898_v47  ;;  %v12215_v47 = vand.u32 4294901760, %v4515_v61  ;;  %14925 = vst [vmem:[#allocation124_spill] sm:$0xff] %v12237_v12  ;;  %v12239_v19 = vand.u32 4294901760, %v4529_v52  ;;  %v4513_v22 = vld [vmem:[%s13766_s4 + $0x48] sm:$0xff] }
 0x21c   :  { %9339 = vmatpush3.msra.mxu1 %v4089_v51  ;;  %3855 = vmatmul.mubr.f32.vlgmr.msra.gmra.mxu0 %v14890_v59  ;;  %v4531_v59 = vld [vmem:[%s13766_s4 + $0xd8] sm:$0xff]  ;;  %14909 = vst [vmem:[#allocation79_spill] sm:$0xff] %v12174_v16  ;;  %v4514_v51 = vld [vmem:[%s13766_s4 + $0x50] sm:$0xff]  ;;  %14917 = vst [vmem:[#allocation90_spill] sm:$0xff] %v12213_v21 }
 0x21d   :  { %9313 = vmatprep.subr.mxu0 %v14891_v58  ;;  %9340 = vmatprep.subr.mxu1 %v14891_v58  ;;  %v12199_v28 = vand.u32 4294901760, %v4531_v59  ;;  %14918 = vst [vmem:[#allocation91_spill] sm:$0xff] %v12215_v47  ;;  %v12226_v9 = vand.u32 4294901760, %v4514_v51  ;;  %14926 = vst [vmem:[#allocation113_spill] sm:$0xff] %v12239_v19  ;;  %v12265_v42 = vsub.f32 %v4515_v61, %v12215_v47  ;;  %v12281_v61 = vand.u32 4294901760, %v4513_v22 }
 0x21e   :  { %9314 = vmatpush3.msra.mxu0 %v11915_v43  ;;  %9341 = vmatpush3.msra.mxu1 %v4096_v41  ;;  %v12207_v41 = vand.u32 4294901760, %v12155_v54 }
 0x21f   :  { %9315 = vmatprep.subr.mxu0 %v14891_v58  ;;  %9342 = vmatprep.subr.mxu1 %v14891_v58  ;;  %14914 = vst [vmem:[#allocation84_spill] sm:$0xff] %v12199_v28  ;;  %14923 = vst [vmem:[#allocation107_spill] sm:$0xff] %v12226_v9  ;;  %v12253_v56 = vsub.f32 %v4531_v59, %v12199_v28  ;;  %v12279_v27 = vsub.f32 %v4514_v51, %v12226_v9 }
 0x220   :  { %9316 = vmatpush3.msra.mxu0 %v11923_v31  ;;  %9343 = vmatpush3.msra.mxu1 %v4103_v4  ;;  %14915 = vst [vmem:[#allocation85_spill] sm:$0xff] %v12207_v41  ;;  %v14919_v4 = vld [vmem:[#allocation132_spill] sm:$0xff]  ;;  %v4782_v60 = vsub.f32 %v12155_v54, %v12207_v41  ;;  %14931 = vst [vmem:[#allocation8_spill] sm:$0xff] %v12265_v42 }
 0x221   :  { %9317 = vmatprep.subr.mxu0 %v14891_v58  ;;  %9344 = vmatprep.subr.mxu1 %v14891_v58  ;;  %v14920_v17 = vsub.s32 0, %v14919_v4  ;;  %v14924_v38 = vsub.s32 1, %v14919_v4  ;;  %14928 = vst [vmem:[#allocation116_spill] sm:$0xff] %v12253_v56  ;;  %14933 = vst [vmem:[#allocation122_spill] sm:$0xff] %v12279_v27  ;;  %v4511_v4 = vld [vmem:[%s13766_s4 + $0x38] sm:$0xff]  ;;  %v4505_v54 = vld [vmem:[%s13766_s4 + $0x8] sm:$0xff] }
 0x222   :  { %9318 = vmatpush3.msra.mxu0 %v11934_v29  ;;  %9345 = vmatpush3.msra.mxu1 %v4110_v7  ;;  %14934 = vst [vmem:[#allocation123_spill] sm:$0xff] %v12281_v61 }
 0x223   :  { %9319 = vmatprep.subr.mxu0 %v14891_v58  ;;  %9346 = vmatprep.subr.mxu1 %v14891_v58  ;;  %v1155_v7 = vrot.slane %v8430_v6, %v14920_v17  ;;  %v12230_v35 = vrot.slane %v8430_v6, %v14924_v38  ;;  %v4663_v6 = vsub.f32 %v12147_v63, %v12195_v40  ;;  %v14929_v38 = vld [vmem:[#allocation15_spill] sm:$0xff]  ;;  %v4525_v40 = vld [vmem:[%s13766_s4 + $0xa8] sm:$0xff] }
 0x224   :  { %9320 = vmatpush3.msra.mxu0 %v11945_v5  ;;  %9347 = vmatpush3.msra.mxu1 %v4117_v26  ;;  %v12222_v26 = vand.u32 4294901760, %v12174_v16  ;;  %v12250_v17 = vsub.f32 %v4516_v39, %v12197_v62  ;;  %v4528_v39 = vld [vmem:[%s13766_s4 + $0xc0] sm:$0xff] }
 0x225   :  { %9348 = vmatprep.mubr.msk.f32.mxu1 %vm9779_vm2, %v14891_v58  ;;  %9321 = vmatprep.subr.mxu0 %v14891_v58  ;;  %v4520_v63 = vld [vmem:[%s13766_s4 + $0x80] sm:$0xff] }
 0x226   :  { %9349 = vmatmul.mubr.f32.vlgmr.msra.gmra.mxu1 %v14899_v3  ;;  %9370 = vmatprep.subr.mxu1 %v14891_v58  ;;  %14921 = vst [vmem:[#allocation94_spill] sm:$0xff] %v12222_v26  ;;  %14927 = vst [vmem:[#allocation114_spill] sm:$0xff] %v12250_v17  ;;  %v4789_v59 = vsub.f32 %v12174_v16, %v12222_v26  ;;  %v12301_v51 = vand.u32 4294901760, %v12250_v17 }
 0x227   :  { %9322 = vmatpush3.msra.mxu0 %v11960_v55  ;;  %9371 = vmatpush3.msra.mxu1 %v11915_v43 }
 0x228   :  { %9323 = vmatprep.subr.mxu0 %v14891_v58  ;;  %9372 = vmatprep.subr.mxu1 %v14891_v58  ;;  %14939 = vst [vmem:[#allocation14_spill] sm:$0xff] %v12301_v51  ;;  %v12331_v26 = vand.u32 4294901760, %v4789_v59 }
 0x229   :  { %9324 = vmatpush3.msra.mxu0 %v11972_v23  ;;  %9373 = vmatpush3.msra.mxu1 %v11923_v31 }
 0x22a   :  { %9325 = vmatprep.subr.mxu0 %v14891_v58  ;;  %9374 = vmatprep.subr.mxu1 %v14891_v58  ;;  %14946 = vst [vmem:[#allocation40_spill] sm:$0xff] %v12331_v26 }
 0x22b   :  { %9326 = vmatpush3.msra.mxu0 %v11987_v34  ;;  %9375 = vmatpush3.msra.mxu1 %v11934_v29 }
 0x22c   :  { %9327 = vmatprep.subr.mxu0 %v14891_v58  ;;  %9376 = vmatprep.subr.mxu1 %v14891_v58 }
 0x22d   :  { %9328 = vmatpush3.msra.mxu0 %v12002_v1  ;;  %9329 = vmatprep.mubr.msk.f32.mxu0 %vm9779_vm2, %v14891_v58 }
 0x22e   :  { %9377 = vmatpush3.msra.mxu1 %v11945_v5  ;;  %9330 = vmatmul.mubr.f32.vlgmr.msra.gmra.mxu0 %v14900_v45 }
 0x22f   :  { %9351 = vmatprep.subr.mxu0 %v14891_v58  ;;  %9378 = vmatprep.subr.mxu1 %v14891_v58 }
 0x230   :  { %9352 = vmatpush3.msra.mxu0 %v11932_v44  ;;  %9379 = vmatpush3.msra.mxu1 %v11960_v55  ;;  %v12290_v44 = vand.u32 4294901760, %v12237_v12 }
 0x231   :  { %9353 = vmatprep.subr.mxu0 %v14891_v58  ;;  %9380 = vmatprep.subr.mxu1 %v14891_v58 }
 0x232   :  { %9354 = vmatpush3.msra.mxu0 %v11943_v15  ;;  %9381 = vmatpush3.msra.mxu1 %v11972_v23  ;;  %14936 = vst [vmem:[#allocation129_spill] sm:$0xff] %v12290_v44  ;;  %v12316_v15 = vand.u32 4294901760, %v4782_v60  ;;  %v12337_v60 = vand.u32 4294901760, %v12279_v27  ;;  %v4796_v59 = vsub.f32 %v12237_v12, %v12290_v44 }
 0x233   :  { %9355 = vmatprep.subr.mxu0 %v14891_v58  ;;  %9382 = vmatprep.subr.mxu1 %v14891_v58 }
 0x234   :  { %9356 = vmatpush3.msra.mxu0 %v11955_v14  ;;  %9383 = vmatpush3.msra.mxu1 %v11987_v34  ;;  %14942 = vst [vmem:[#allocation36_spill] sm:$0xff] %v12316_v15  ;;  %14948 = vst [vmem:[#allocation42_spill] sm:$0xff] %v12337_v60 }
 0x235   :  { %9357 = vmatprep.subr.mxu0 %v14891_v58  ;;  %9384 = vmatprep.subr.mxu1 %v14891_v58 }
 0x236   :  { %9358 = vmatpush3.msra.mxu0 %v11967_v25  ;;  %9385 = vmatpush3.msra.mxu1 %v12002_v1 }
 0x237   :  { %9386 = vmatprep.mubr.msk.f32.mxu1 %vm9779_vm2, %v14891_v58  ;;  %9359 = vmatprep.subr.mxu0 %v14891_v58 }
 0x238   :  { %9387 = vmatmul.mubr.f32.vlgmr.msra.gmra.mxu1 %v14904_v36  ;;  %9408 = vmatprep.subr.mxu1 %v14891_v58  ;;  %v1311_v36 = vpop.f32.mrf.mxu0 }
 0x239   :  { %9360 = vmatpush3.msra.mxu0 %v11985_v48  ;;  %9409 = vmatpush3.msra.mxu1 %v11915_v43  ;;  %v4530_v43 = vld [vmem:[%s13766_s4 + $0xd0] sm:$0xff]  ;;  %v12283_v53 = vadd.f32 %v1311_v36, %v1155_v7  ;;  %v12306_v7 = vand.u32 4294901760, %v4528_v39 }
 0x23a   :  { %9361 = vmatprep.subr.mxu0 %v14891_v58  ;;  %9410 = vmatprep.subr.mxu1 %v14891_v58  ;;  %v12224_v45 = vand.u32 4294901760, %v4530_v43 }
 0x23b   :  { %9362 = vmatpush3.msra.mxu0 %v12000_v30  ;;  %9411 = vmatpush3.msra.mxu1 %v11923_v31  ;;  %v12210_v31 = vand.u32 4294901760, %v12158_v0  ;;  %14941 = vst [vmem:[#allocation35_spill] sm:$0xff] %v12306_v7  ;;  %v12370_v12 = vsub.f32 %v4528_v39, %v12306_v7 }
 0x23c   :  { %9363 = vmatprep.subr.mxu0 %v14891_v58  ;;  %9412 = vmatprep.subr.mxu1 %v14891_v58  ;;  %14922 = vst [vmem:[#allocation96_spill] sm:$0xff] %v12224_v45 }
 0x23d   :  { %9364 = vmatpush3.msra.mxu0 %v12015_v32  ;;  %14916 = vst [vmem:[#allocation89_spill] sm:$0xff] %v12210_v31  ;;  %9413 = vmatpush3.msra.mxu1 %v11934_v29  ;;  %v4775_v29 = vsub.f32 %v12142_v8, %v12182_v49  ;;  %v4670_v50 = vsub.f32 %v12158_v0, %v12210_v31  ;;  %v4526_v31 = vld [vmem:[%s13766_s4 + $0xb0] sm:$0xff]  ;;  %14954 = vst [vmem:[#allocation55_spill] sm:$0xff] %v12370_v12  ;;  %v14985_v0 = vand.u32 4294901760, %v12027_v20 }
 0x23e   :  { %9365 = vmatprep.subr.mxu0 %v14891_v58  ;;  %9414 = vmatprep.subr.mxu1 %v14891_v58  ;;  %v4684_v49 = vsub.f32 %v12250_v17, %v12301_v51  ;;  %v4506_v17 = vld [vmem:[%s13766_s4 + $0x10] sm:$0xff] }
 0x23f   :  { %9366 = vmatpush3.msra.mxu0 %v12027_v20  ;;  %9367 = vmatprep.mubr.msk.f32.mxu0 %vm9779_vm2, %v14891_v58  ;;  %v12287_v46 = vand.u32 4294901760, %v4775_v29  ;;  %v4527_v29 = vld [vmem:[%s13766_s4 + $0xb8] sm:$0xff] }
 0x240   :  { %9415 = vmatpush3.msra.mxu1 %v11945_v5  ;;  %9368 = vmatmul.mubr.f32.vlgmr.msra.gmra.mxu0 %v14929_v38  ;;  %v12262_v5 = vand.u32 4294901760, %v12213_v21  ;;  %v12276_v38 = vsub.f32 %v4530_v43, %v12224_v45  ;;  %v12298_v43 = vand.u32 4294901760, %v4663_v6  ;;  %v12323_v6 = vand.u32 4294901760, %v12265_v42 }
 0x241   :  { %9389 = vmatprep.subr.mxu0 %v14891_v58  ;;  %9416 = vmatprep.subr.mxu1 %v14891_v58  ;;  %14935 = vst [vmem:[#allocation127_spill] sm:$0xff] %v12287_v46  ;;  %v12357_v41 = vand.u32 4294901760, %v4527_v29 }
 0x242   :  { %14930 = vst [vmem:[#allocation118_spill] sm:$0xff] %v12262_v5  ;;  %9390 = vmatpush3.msra.mxu0 %v4066_v11  ;;  %14932 = vst [vmem:[#allocation119_spill] sm:$0xff] %v12276_v38  ;;  %9417 = vmatpush3.msra.mxu1 %v11960_v55  ;;  %v12293_v11 = vsub.f32 %v4529_v52, %v12239_v19  ;;  %v12304_v55 = vand.u32 4294901760, %v12253_v56  ;;  %v4512_v52 = vld [vmem:[%s13766_s4 + $0x40] sm:$0xff]  ;;  %v4677_v36 = vsub.f32 %v12213_v21, %v12262_v5 }
 0x243   :  { %9391 = vmatprep.subr.mxu0 %v14891_v58  ;;  %9418 = vmatprep.subr.mxu1 %v14891_v58  ;;  %14938 = vst [vmem:[#allocation131_spill] sm:$0xff] %v12298_v43  ;;  %14944 = vst [vmem:[#allocation38_spill] sm:$0xff] %v12323_v6  ;;  %v12340_v5 = vsub.f32 %v4513_v22, %v12281_v61  ;;  %v12355_v22 = vand.u32 4294901760, %v4512_v52  ;;  %v12372_v21 = vand.u32 4294901760, %v4511_v4 }
 0x244   :  { %14937 = vst [vmem:[#allocation130_spill] sm:$0xff] %v12293_v11  ;;  %9392 = vmatpush3.msra.mxu0 %v4073_v37  ;;  %14940 = vst [vmem:[#allocation32_spill] sm:$0xff] %v12304_v55  ;;  %9419 = vmatpush3.msra.mxu1 %v11972_v23  ;;  %v12318_v37 = vand.u32 4294901760, %v4670_v50  ;;  %v14945_v23 = vand.u32 4294901760, %v11955_v14  ;;  %v12334_v50 = vand.u32 4294901760, %v12276_v38  ;;  %v4510_v14 = vld [vmem:[%s13766_s4 + $0x30] sm:$0xff]  ;;  %v4803_v44 = vsub.f32 %v12253_v56, %v12304_v55 }
 0x245   :  { %9393 = vmatprep.subr.mxu0 %v14891_v58  ;;  %9420 = vmatprep.subr.mxu1 %v14891_v58  ;;  %14949 = vst [vmem:[#allocation43_spill] sm:$0xff] %v12340_v5  ;;  %14951 = vst [vmem:[#allocation45_spill] sm:$0xff] %v12355_v22  ;;  %v12377_v16 = vand.u32 4294901760, %v4677_v36  ;;  %v12383_v51 = vand.u32 4294901760, %v4510_v14  ;;  %v12392_v36 = vand.u32 4294901760, %v12340_v5  ;;  %v12394_v55 = vand.u32 4294901760, %v4525_v40 }
 0x246   :  { %14943 = vst [vmem:[#allocation37_spill] sm:$0xff] %v12318_v37  ;;  %9394 = vmatpush3.msra.mxu0 %v14945_v23  ;;  %14947 = vst [vmem:[#allocation41_spill] sm:$0xff] %v12334_v50  ;;  %9421 = vmatpush3.msra.mxu1 %v11987_v34  ;;  %v12353_v23 = vand.u32 4294901760, %v12293_v11  ;;  %v14953_v34 = vand.u32 4294901760, %v11967_v25  ;;  %v4691_v25 = vsub.f32 %v12265_v42, %v12323_v6  ;;  %v4509_v6 = vld [vmem:[%s13766_s4 + $0x28] sm:$0xff]  ;;  %v14961_v42 = vand.u32 4294901760, %v11985_v48 }
 0x247   :  { %9395 = vmatprep.subr.mxu0 %v14891_v58  ;;  %14952 = vst [vmem:[#allocation54_spill] sm:$0xff] %v12357_v41  ;;  %9422 = vmatprep.subr.mxu1 %v14891_v58  ;;  %14955 = vst [vmem:[#allocation48_spill] sm:$0xff] %v12372_v21  ;;  %v4810_v39 = vsub.f32 %v12276_v38, %v12334_v50  ;;  %v12403_v56 = vand.u32 4294901760, %v4796_v59  ;;  %v12408_v50 = vsub.f32 %v4512_v52, %v12355_v22  ;;  %v4524_v38 = vld [vmem:[%s13766_s4 + $0xa0] sm:$0xff] }
 0x248   :  { %14950 = vst [vmem:[#allocation46_spill] sm:$0xff] %v12353_v23  ;;  %9396 = vmatpush3.msra.mxu0 %v14953_v34  ;;  %9423 = vmatpush3.msra.mxu1 %v12002_v1  ;;  %14956 = vst [vmem:[#allocation56_spill] sm:$0xff] %v12377_v16  ;;  %v12381_v34 = vand.u32 4294901760, %v4526_v31  ;;  %v4698_v1 = vsub.f32 %v12279_v27, %v12337_v60  ;;  %v4817_v60 = vsub.f32 %v12293_v11, %v12353_v23 }
 0x249   :  { %9424 = vmatprep.mubr.msk.f32.mxu1 %vm9779_vm2, %v14891_v58  ;;  %14958 = vst [vmem:[#allocation50_spill] sm:$0xff] %v12383_v51  ;;  %9397 = vmatprep.subr.mxu0 %v14891_v58  ;;  %14959 = vst [vmem:[#allocation59_spill] sm:$0xff] %v12392_v36  ;;  %v12411_v27 = vsub.f32 %v4527_v29, %v12357_v41  ;;  %v12418_v48 = vand.u32 4294901760, %v4684_v49  ;;  %v12423_v59 = vand.u32 4294901760, %v12370_v12  ;;  %v4508_v29 = vld [vmem:[%s13766_s4 + $0x20] sm:$0xff]  ;;  %v14969_v23 = vand.u32 4294901760, %v12000_v30 }
 0x24a   :  { %14957 = vst [vmem:[#allocation58_spill] sm:$0xff] %v12381_v34  ;;  %9425 = vmatmul.mubr.f32.vlgmr.msra.gmra.mxu1 %v14899_v3  ;;  %14960 = vst [vmem:[#allocation51_spill] sm:$0xff] %v12394_v55  ;;  %9398 = vmatpush3.msra.mxu0 %v14961_v42  ;;  %v12420_v42 = vand.u32 4294901760, %v4803_v44  ;;  %v12426_v52 = vsub.f32 %v4511_v4, %v12372_v21  ;;  %v12437_v49 = vsub.f32 %v4526_v31, %v12381_v34  ;;  %v4523_v4 = vld [vmem:[%s13766_s4 + $0x98] sm:$0xff] }
 0x24b   :  { %9405 = vmatprep.mubr.msk.f32.mxu0 %vm9779_vm2, %v14891_v58  ;;  %14962 = vst [vmem:[#allocation62_spill] sm:$0xff] %v12403_v56  ;;  %14963 = vst [vmem:[#allocation52_spill] sm:$0xff] %v12408_v50  ;;  %9399 = vmatprep.subr.mxu0 %v14891_v58  ;;  %v12440_v44 = vsub.f32 %v4510_v14, %v12383_v51  ;;  %v12442_v11 = vand.u32 4294901760, %v4509_v6  ;;  %v12449_v30 = vand.u32 4294901760, %v4810_v39  ;;  %v12456_v14 = vand.u32 4294901760, %v4524_v38 }
 0x24c   :  { %14964 = vst [vmem:[#allocation65_spill] sm:$0xff] %v12411_v27  ;;  %8748 = vmatprep.subr.mxu1 %v12287_v46  ;;  %14965 = vst [vmem:[#allocation53_spill] sm:$0xff] %v12418_v48  ;;  %9400 = vmatpush3.msra.mxu0 %v14969_v23  ;;  %v12434_v46 = vand.u32 4294901760, %v4691_v25  ;;  %v4705_v23 = vsub.f32 %v12340_v5, %v12392_v36  ;;  %v12454_v31 = vsub.f32 %v4525_v40, %v12394_v55  ;;  %v4507_v25 = vld [vmem:[%s13766_s4 + $0x18] sm:$0xff]  ;;  %v4522_v5 = vld [vmem:[%s13766_s4 + $0x90] sm:$0xff] }
 0x24d   :  { %14966 = vst [vmem:[#allocation66_spill] sm:$0xff] %v12420_v42  ;;  %14967 = vst [vmem:[#allocation57_spill] sm:$0xff] %v12423_v59  ;;  %8749 = vmatpush3.msra.mxu1 %v12298_v43  ;;  %9401 = vmatprep.subr.mxu0 %v14891_v58  ;;  %v14977_v43 = vand.u32 4294901760, %v12015_v32  ;;  %v12467_v39 = vand.u32 4294901760, %v12408_v50  ;;  %v12470_v36 = vand.u32 4294901760, %v12411_v27  ;;  %v12472_v40 = vand.u32 4294901760, %v4508_v29 }
 0x24e   :  { %14968 = vst [vmem:[#allocation67_spill] sm:$0xff] %v12426_v52  ;;  %14970 = vst [vmem:[#allocation69_spill] sm:$0xff] %v12434_v46  ;;  %8750 = vmatprep.subr.mxu1 %v12316_v15  ;;  %v12464_v15 = vand.u32 4294901760, %v4698_v1  ;;  %v12479_v32 = vand.u32 4294901760, %v4817_v60  ;;  %v12484_v1 = vand.u32 4294901760, %v12426_v52  ;;  %v12495_v60 = vand.u32 4294901760, %v12437_v49 }
 0x24f   :  { %14971 = vst [vmem:[#allocation70_spill] sm:$0xff] %v12437_v49  ;;  %14972 = vst [vmem:[#allocation63_spill] sm:$0xff] %v12440_v44  ;;  %9402 = vmatpush3.msra.mxu0 %v14977_v43  ;;  %8751 = vmatpush3.msra.mxu1 %v12318_v37  ;;  %v4824_v43 = vsub.f32 %v12370_v12, %v12423_v59  ;;  %v12486_v37 = vand.u32 4294901760, %v4523_v4  ;;  %v12503_v59 = vand.u32 4294901760, %v4507_v25  ;;  %v4521_v12 = vld [vmem:[%s13766_s4 + $0x88] sm:$0xff]  ;;  %v12510_v20 = vand.u32 4294901760, %v4705_v23 }
 0x250   :  { %14973 = vst [vmem:[#allocation71_spill] sm:$0xff] %v12442_v11  ;;  %14974 = vst [vmem:[#allocation64_spill] sm:$0xff] %v12449_v30  ;;  %9403 = vmatprep.subr.mxu0 %v14891_v58  ;;  %8752 = vmatprep.subr.mxu1 %v12331_v26  ;;  %v12498_v26 = vand.u32 4294901760, %v12440_v44  ;;  %v12501_v58 = vsub.f32 %v4509_v6, %v12442_v11  ;;  %v12518_v6 = vand.u32 4294901760, %v4522_v5 }
 0x251   :  { %14975 = vst [vmem:[#allocation72_spill] sm:$0xff] %v12454_v31  ;;  %14976 = vst [vmem:[#allocation74_spill] sm:$0xff] %v12456_v14  ;;  %9404 = vmatpush3.msra.mxu0 %v14985_v0  ;;  %8753 = vmatpush3.msra.mxu1 %v12377_v16  ;;  %v12513_v0 = vand.u32 4294901760, %v12454_v31  ;;  %v12516_v16 = vsub.f32 %v4524_v38, %v12456_v14  ;;  %v4831_v23 = vsub.f32 %v12411_v27, %v12470_v36  ;;  %v4504_v27 = vld [vmem:[%s13766_s4] sm:$0xff] }
 0x252   :  { %14978 = vst [vmem:[#allocation75_spill] sm:$0xff] %v12464_v15  ;;  %14979 = vst [vmem:[#allocation78_spill] sm:$0xff] %v12467_v39  ;;  %9406 = vmatmul.mubr.f32.vlgmr.msra.gmra.mxu0 %v14899_v3  ;;  %8754 = vmatprep.subr.mxu1 %v12403_v56  ;;  %v4712_v3 = vsub.f32 %v12408_v50, %v12467_v39  ;;  %v12530_v56 = vsub.f32 %v4508_v29, %v12472_v40  ;;  %v12532_v38 = vand.u32 4294901760, %v4506_v17 }
 0x253   :  { %14980 = vst [vmem:[#allocation86_spill] sm:$0xff] %v12470_v36  ;;  %14981 = vst [vmem:[#allocation87_spill] sm:$0xff] %v12472_v40  ;;  %8755 = vmatpush3.msra.mxu1 %v12418_v48  ;;  %8713 = vmatprep.subr.mxu0 %v12116_v10  ;;  %v12539_v48 = vand.u32 4294901760, %v4824_v43  ;;  %v4719_v39 = vsub.f32 %v12426_v52, %v12484_v1  ;;  %v12544_v36 = vsub.f32 %v4523_v4, %v12486_v37 }
 0x254   :  { %14982 = vst [vmem:[#allocation88_spill] sm:$0xff] %v12479_v32  ;;  %14983 = vst [vmem:[#allocation92_spill] sm:$0xff] %v12484_v1  ;;  %8756 = vmatprep.subr.mxu1 %v12420_v42  ;;  %8714 = vmatpush3.msra.mxu0 %v12123_v2  ;;  %v12546_v29 = vand.u32 4294901760, %v4521_v12  ;;  %v4838_v43 = vsub.f32 %v12437_v49, %v12495_v60  ;;  %v12556_v42 = vand.u32 4294901760, %v12501_v58  ;;  %v12561_v4 = vand.u32 4294901760, %v4505_v54 }
 0x255   :  { %14984 = vst [vmem:[#allocation93_spill] sm:$0xff] %v12486_v37  ;;  %14986 = vst [vmem:[#allocation95_spill] sm:$0xff] %v12495_v60  ;;  %8757 = vmatpush3.msra.mxu1 %v12434_v46  ;;  %8715 = vmatprep.subr.mxu0 %v12127_v57  ;;  %v12559_v1 = vsub.f32 %v4507_v25, %v12503_v59  ;;  %v4726_v46 = vsub.f32 %v12440_v44, %v12498_v26  ;;  %v12568_v52 = vand.u32 4294901760, %v12516_v16 }
 0x256   :  { %14987 = vst [vmem:[#allocation97_spill] sm:$0xff] %v12498_v26  ;;  %14988 = vst [vmem:[#allocation99_spill] sm:$0xff] %v12501_v58  ;;  %8758 = vmatprep.subr.mxu1 %v12449_v30  ;;  %8716 = vmatpush3.msra.mxu0 %v12129_v33  ;;  %v12571_v60 = vsub.f32 %v4522_v5, %v12518_v6  ;;  %v12573_v49 = vand.u32 4294901760, %v4520_v63  ;;  %v12577_v25 = vand.u32 4294901760, %v4712_v3  ;;  %v12580_v30 = vand.u32 4294901760, %v12530_v56 }
 0x257   :  { %14989 = vst [vmem:[#allocation101_spill] sm:$0xff] %v12503_v59  ;;  %14990 = vst [vmem:[#allocation103_spill] sm:$0xff] %v12510_v20  ;;  %8759 = vmatpush3.msra.mxu1 %v12464_v15  ;;  %8717 = vmatprep.subr.mxu0 %v12133_v13  ;;  %v12583_v50 = vsub.f32 %v4506_v17, %v12532_v38  ;;  %v12585_v26 = vand.u32 4294901760, %v4504_v27  ;;  %v12589_v5 = vand.u32 4294901760, %v4831_v23  ;;  %v12594_v3 = vand.u32 4294901760, %v12544_v36  ;;  %v1704_v13 = vpop.f32.mrf.mxu1  ;;  %v1313_v17 = vpop.f32.mrf.mxu0 }
 0x258   :  { %14991 = vst [vmem:[#allocation105_spill] sm:$0xff] %v12513_v0  ;;  %14992 = vst [vmem:[#allocation108_spill] sm:$0xff] %v12516_v16  ;;  %8760 = vmatprep.subr.mxu1 %v12479_v32  ;;  %8718 = vmatpush3.msra.mxu0 %v12160_v24  ;;  %v4845_v15 = vsub.f32 %v12454_v31, %v12513_v0  ;;  %v12597_v44 = vsub.f32 %v4521_v12, %v12546_v29  ;;  %v12601_v32 = vand.u32 4294901760, %v4719_v39 }
 0x259   :  { %14993 = vst [vmem:[#allocation109_spill] sm:$0xff] %v12518_v6  ;;  %14994 = vst [vmem:[#allocation98_spill] sm:$0xff] %v12530_v56  ;;  %8761 = vmatpush3.msra.mxu1 %v12510_v20  ;;  %8719 = vmatprep.subr.mxu0 %v12184_v18  ;;  %v4733_v23 = vsub.f32 %v12501_v58, %v12556_v42  ;;  %v12606_v24 = vand.u32 4294901760, %v12559_v1  ;;  %v12609_v0 = vsub.f32 %v4505_v54, %v12561_v4  ;;  %v1907_v58 = vpop.f32.mrf.mxu0 }
 0x25a   :  { %14995 = vst [vmem:[#allocation110_spill] sm:$0xff] %v12532_v38  ;;  %14996 = vst [vmem:[#allocation100_spill] sm:$0xff] %v12539_v48  ;;  %8762 = vmatprep.subr.mxu1 %v12539_v48  ;;  %8720 = vmatpush3.msra.mxu0 %v12197_v62  ;;  %v12613_v12 = vand.u32 4294901760, %v4838_v43  ;;  %v4852_v20 = vsub.f32 %v12516_v16, %v12568_v52  ;;  %v12618_v39 = vand.u32 4294901760, %v12571_v60  ;;  %v12625_v54 = vand.u32 4294901760, %v4726_v46 }
 0x25b   :  { %14997 = vst [vmem:[#allocation112_spill] sm:$0xff] %v12544_v36  ;;  %14998 = vst [vmem:[#allocation102_spill] sm:$0xff] %v12546_v29  ;;  %8763 = vmatpush3.msra.mxu1 %v12577_v25  ;;  %8721 = vmatprep.subr.mxu0 %v12199_v28  ;;  %v4740_v43 = vsub.f32 %v12530_v56, %v12580_v30  ;;  %v12630_v48 = vand.u32 4294901760, %v12583_v50  ;;  %v1314_v16 = vadd.f32 %v1313_v17, %v12230_v35 }
 0x25c   :  { %14999 = vst [vmem:[#allocation115_spill] sm:$0xff] %v12556_v42  ;;  %15000 = vst [vmem:[#allocation104_spill] sm:$0xff] %v12559_v1  ;;  %v12621_v42 = vsub.f32 %v4520_v63, %v12573_v49  ;;  %8764 = vmatprep.subr.mxu1 %v12589_v5  ;;  %8722 = vmatpush3.msra.mxu0 %v12215_v47  ;;  %v12638_v63 = vand.u32 4294901760, %v4845_v15  ;;  %v4859_v46 = vsub.f32 %v12544_v36, %v12594_v3  ;;  %v1909_v36 = vpop.f32.mrf.mxu0 }
 0x25d   :  { %15001 = vst [vmem:[#allocation117_spill] sm:$0xff] %v12561_v4  ;;  %15002 = vst [vmem:[#allocation106_spill] sm:$0xff] %v12568_v52  ;;  %v12633_v52 = vsub.f32 %v4504_v27, %v12585_v26  ;;  %8765 = vmatpush3.msra.mxu1 %v12601_v32  ;;  %8723 = vmatprep.subr.mxu0 %v12224_v45  ;;  %v12647_v27 = vand.u32 4294901760, %v4733_v23  ;;  %v4747_v35 = vsub.f32 %v12559_v1, %v12606_v24 }
 0x25e   :  { %15003 = vst [vmem:[#allocation120_spill] sm:$0xff] %v12571_v60  ;;  %15004 = vst [vmem:[#allocation121_spill] sm:$0xff] %v12573_v49  ;;  %v12652_v17 = vand.u32 4294901760, %v12609_v0  ;;  %v1705_v15 = vadd.f32 %v1704_v13, %v12283_v53  ;;  %8766 = vmatprep.subr.mxu1 %v12613_v12  ;;  %8724 = vmatpush3.msra.mxu0 %v12226_v9  ;;  %v12662_v23 = vand.u32 4294901760, %v12621_v42 }
 0x25f   :  { %15005 = vst [vmem:[#allocation111_spill] sm:$0xff] %v12577_v25  ;;  %15006 = vst [vmem:[#allocation125_spill] sm:$0xff] %v12580_v30  ;;  %v12643_v25 = vand.u32 4294901760, %v12597_v44  ;;  %v1706_v30 = vpop.f32.mrf.mxu1  ;;  %8767 = vmatpush3.msra.mxu1 %v12625_v54  ;;  %8725 = vmatprep.subr.mxu0 %v12239_v19  ;;  %v4754_v53 = vsub.f32 %v12583_v50, %v12630_v48  ;;  %v12671_v13 = vand.u32 4294901760, %v12633_v52 }
 0x260   :  { %15007 = vst [vmem:[#allocation126_spill] sm:$0xff] %v12583_v50  ;;  %15008 = vst [vmem:[#allocation128_spill] sm:$0xff] %v12585_v26  ;;  %8768 = vmatprep.subr.mxu1 %v12638_v63  ;;  %8726 = vmatpush3.msra.mxu0 %v12281_v61 }
 0x261   :  { %15009 = vst [vmem:[#allocation12_spill] sm:$0xff] %v12589_v5  ;;  %15010 = vst [vmem:[#allocation10_spill] sm:$0xff] %v12594_v3  ;;  %v12657_v5 = vand.u32 4294901760, %v4852_v20  ;;  %v2048_v3 = vpop.f32.mrf.mxu1  ;;  %v1908_v20 = vadd.f32 %v1907_v58, %v1705_v15  ;;  %8769 = vmatpush3.msra.mxu1 %v12647_v27  ;;  %8727 = vmatprep.subr.mxu0 %v12306_v7  ;;  %v4761_v58 = vsub.f32 %v12609_v0, %v12652_v17 }
 0x262   :  { %15011 = vst [vmem:[#allocation9_spill] sm:$0xff] %v12597_v44  ;;  %15012 = vst [vmem:[#allocation11_spill] sm:$0xff] %v12601_v32  ;;  %v4866_v32 = vsub.f32 %v12571_v60, %v12618_v39  ;;  %v2313_v60 = vpop.f32.mrf.mxu0  ;;  %8728 = vmatpush3.msra.mxu0 %v12355_v22 }
 0x263   :  { %15013 = vst [vmem:[#allocation137_spill] sm:$0xff] %v12606_v24  ;;  %15014 = vst [vmem:[#allocation16_spill] sm:$0xff] %v12609_v0  ;;  %v12666_v24 = vand.u32 4294901760, %v4740_v43  ;;  %v12681_v43 = vand.u32 4294901760, %v4747_v35  ;;  %8770 = vmatprep.subr.mxu1 %v12657_v5  ;;  %v2050_v15 = vpop.f32.mrf.mxu1  ;;  %8729 = vmatprep.subr.mxu0 %v12357_v41  ;;  %v12693_v35 = vand.u32 4294901760, %v4754_v53 }
 0x264   :  { %15015 = vst [vmem:[#allocation18_spill] sm:$0xff] %v12613_v12  ;;  %15016 = vst [vmem:[#allocation26_spill] sm:$0xff] %v12618_v39  ;;  %v1707_v12 = vadd.f32 %v1706_v30, %v1314_v16  ;;  %v12675_v39 = vand.u32 4294901760, %v4859_v46  ;;  %v12687_v30 = vand.u32 4294901760, %v4866_v32  ;;  %v4880_v46 = vsub.f32 %v12621_v42, %v12662_v23  ;;  %8730 = vmatpush3.msra.mxu0 %v12372_v21 }
 0x265   :  { %15017 = vst [vmem:[#allocation19_spill] sm:$0xff] %v12621_v42  ;;  %15018 = vst [vmem:[#allocation28_spill] sm:$0xff] %v12625_v54  ;;  %v4873_v54 = vsub.f32 %v12597_v44, %v12643_v25  ;;  %8771 = vmatpush3.msra.mxu1 %v12666_v24  ;;  %8731 = vmatprep.subr.mxu0 %v12381_v34 }
 0x266   :  { %15019 = vst [vmem:[#allocation20_spill] sm:$0xff] %v12630_v48  ;;  %15020 = vst [vmem:[#allocation21_spill] sm:$0xff] %v12633_v52  ;;  %v1910_v16 = vadd.f32 %v1909_v36, %v1707_v12  ;;  %v2049_v36 = vadd.f32 %v2048_v3, %v1908_v20  ;;  %8772 = vmatprep.subr.mxu1 %v12675_v39  ;;  %v2450_v12 = vpop.f32.mrf.mxu1  ;;  %8732 = vmatpush3.msra.mxu0 %v12383_v51  ;;  %v12707_v3 = vand.u32 4294901760, %v4880_v46 }
 0x267   :  { %15021 = vst [vmem:[#allocation22_spill] sm:$0xff] %v12638_v63  ;;  %15022 = vst [vmem:[#allocation24_spill] sm:$0xff] %v12643_v25  ;;  %v12699_v32 = vand.u32 4294901760, %v4873_v54  ;;  %8773 = vmatpush3.msra.mxu1 %v12681_v43  ;;  %8733 = vmatprep.subr.mxu0 %v12394_v55 }
 0x268   :  { %15023 = vst [vmem:[#allocation25_spill] sm:$0xff] %v12647_v27  ;;  %15024 = vst [vmem:[#allocation27_spill] sm:$0xff] %v12652_v17  ;;  %v4768_v27 = vsub.f32 %v12633_v52, %v12671_v13  ;;  %v2314_v53 = vadd.f32 %v2313_v60, %v2049_v36  ;;  %v2051_v63 = vadd.f32 %v2050_v15, %v1910_v16  ;;  %8774 = vmatprep.subr.mxu1 %v12687_v30  ;;  %v2452_v60 = vpop.f32.mrf.mxu1 }
 0x269   :  { %15025 = vst [vmem:[#allocation29_spill] sm:$0xff] %v12657_v5  ;;  %15026 = vst [vmem:[#allocation30_spill] sm:$0xff] %v12662_v23  ;;  %v2315_v5 = vpop.f32.mrf.mxu0  ;;  %8775 = vmatpush3.msra.mxu1 %v12693_v35  ;;  %8734 = vmatpush3.msra.mxu0 %v12442_v11 }
 0x26a   :  { %15027 = vst [vmem:[#allocation31_spill] sm:$0xff] %v12666_v24  ;;  %15028 = vst [vmem:[#allocation33_spill] sm:$0xff] %v12671_v13  ;;  %v12703_v24 = vand.u32 4294901760, %v4761_v58  ;;  %v12711_v54 = vand.u32 4294901760, %v4768_v27  ;;  %8776 = vmatprep.subr.mxu1 %v12699_v32  ;;  %8735 = vmatprep.subr.mxu0 %v12456_v14  ;;  %v2451_v58 = vadd.f32 %v2450_v12, %v2314_v53  ;;  %v2694_v16 = vpop.f32.mrf.mxu1 }
 0x26b   :  { %15029 = vst [vmem:[#allocation34_spill] sm:$0xff] %v12675_v39  ;;  %15030 = vst [vmem:[#allocation39_spill] sm:$0xff] %v12681_v43  ;;  %v2542_v20 = vpop.f32.mrf.mxu0  ;;  %v2316_v43 = vadd.f32 %v2315_v5, %v2051_v63  ;;  %8736 = vmatpush3.msra.mxu0 %v12472_v40 }
 0x26c   :  { %15031 = vst [vmem:[#allocation136_spill] sm:$0xff] %v12687_v30  ;;  %15032 = vst [vmem:[#allocation135_spill] sm:$0xff] %v12693_v35  ;;  %8777 = vmatpush3.msra.mxu1 %v12703_v24  ;;  %8737 = vmatprep.subr.mxu0 %v12486_v37  ;;  %v2543_v5 = vadd.f32 %v2542_v20, %v2451_v58  ;;  %v2696_v36 = vpop.f32.mrf.mxu1 }
 0x26d   :  { %15033 = vst [vmem:[#allocation134_spill] sm:$0xff] %v12699_v32  ;;  %15034 = vst [vmem:[#allocation44_spill] sm:$0xff] %v12703_v24  ;;  %8778 = vmatprep.subr.mxu1 %v12707_v3  ;;  %v2544_v46 = vpop.f32.mrf.mxu0  ;;  %v2453_v63 = vadd.f32 %v2452_v60, %v2316_v43  ;;  %8738 = vmatpush3.msra.mxu0 %v12503_v59 }
 0x26e   :  { %15035 = vst [vmem:[#allocation47_spill] sm:$0xff] %v12707_v3  ;;  %15036 = vst [vmem:[#allocation133_spill] sm:$0xff] %v12711_v54  ;;  %8779 = vmatpush3.msra.mxu1 %v12711_v54  ;;  %8739 = vmatprep.subr.mxu0 %v12518_v6  ;;  %v2695_v12 = vadd.f32 %v2694_v16, %v2543_v5  ;;  %v2889_v53 = vpop.f32.mrf.mxu1 }
 0x26f   :  { %8818 = vmatprep.subr.mxu1 %v12116_v10  ;;  %v2799_v27 = vpop.f32.mrf.mxu0  ;;  %v2545_v15 = vadd.f32 %v2544_v46, %v2453_v63  ;;  %8740 = vmatpush3.msra.mxu0 %v12532_v38 }
 0x270   :  { %8741 = vmatprep.subr.mxu0 %v12546_v29  ;;  %v2800_v43 = vadd.f32 %v2799_v27, %v2695_v12  ;;  %v2891_v58 = vpop.f32.mrf.mxu1  ;;  %v15040_v12 = vld [vmem:[#allocation77_spill] sm:$0xff] }
 0x271   :  { %8742 = vmatpush3.msra.mxu0 %v12561_v4  ;;  %v2801_v54 = vpop.f32.mrf.mxu0  ;;  %v2697_v20 = vadd.f32 %v2696_v36, %v2545_v15 }
 0x272   :  { %8743 = vmatprep.subr.mxu0 %v12573_v49  ;;  %v2890_v46 = vadd.f32 %v2889_v53, %v2800_v43  ;;  %v3097_v63 = vpop.f32.mrf.mxu1 }
 0x273   :  { %8744 = vmatpush3.msra.mxu0 %v12585_v26  ;;  %v2802_v60 = vadd.f32 %v2801_v54, %v2697_v20  ;;  %v15041_v20 = vld [vmem:[#allocation68_spill] sm:$0xff] }
 0x274   :  { %8783 = vmatprep.subr.mxu0 %v12142_v8  ;;  %v3099_v30 = vpop.f32.mrf.mxu1 }
 0x275   :  { %v2892_v32 = vadd.f32 %v2891_v58, %v2802_v60  ;;  %v15042_v60 = vld [vmem:[#allocation73_spill] sm:$0xff]  ;;  %v15043_v58 = vld [vmem:[#allocation76_spill] sm:$0xff] }
 0x278   :  { %v3009_v3 = vpop.f32.mrf.mxu0 }
 0x279   :  { %v3010_v24 = vadd.f32 %v3009_v3, %v2890_v46  ;;  %v15039_v3 = vld [vmem:[#allocation60_spill] sm:$0xff]  ;;  %v15044_v46 = vld [vmem:[#allocation79_spill] sm:$0xff] }
 0x27a   :  { %v3011_v16 = vpop.f32.mrf.mxu0 }
 0x27b   :  { %v3098_v5 = vadd.f32 %v3097_v63, %v3010_v24  ;;  %v3012_v35 = vadd.f32 %v3011_v16, %v2892_v32  ;;  %v15045_v63 = vld [vmem:[#allocation90_spill] sm:$0xff]  ;;  %v15046_v16 = vld [vmem:[#allocation124_spill] sm:$0xff] }
 0x27d   :  { %v12730_v39 = vmax.f32 %v3098_v5, 0.0  ;;  %v3100_v13 = vadd.f32 %v3099_v30, %v3012_v35  ;;  %v15047_v5 = vld [vmem:[#allocation114_spill] sm:$0xff] }
 0x27f   :  { %15037 = vst [vmem:[#allocation13_spill] sm:$0xff] %v12730_v39  ;;  %v12733_v27 = vand.u32 4294901760, %v12730_v39  ;;  %v12735_v15 = vmax.f32 %v3100_v13, 0.0 }
 0x281   :  { %15038 = vst [vmem:[#allocation23_spill] sm:$0xff] %v12735_v15  ;;  %v12739_v54 = vsub.f32 %v12730_v39, %v12733_v27  ;;  %v12742_v36 = vand.u32 4294901760, %v12735_v15  ;;  %v15102_v39 = vld [vmem:[#allocation106_spill] sm:$0xff] }
 0x283   :  { %v4644_v24 = vsub.f32 %v12735_v15, %v12742_v36  ;;  %4884 = vmatprep.mubr.f32.mxu1 %v12742_v36  ;;  %v14230_v32 = vand.u32 4294901760, %v12739_v54 }
 0x284   :  { %4886 = vmatmul.mubr.f32.vlgmr.msra.gmra.mxu1 %v12733_v27 }
 0x285   :  { %8819 = vmatpush3.msra.mxu1 %v12123_v2  ;;  %v4645_v13 = vand.u32 4294901760, %v4644_v24  ;;  %v4652_v30 = vsub.f32 %v12739_v54, %v14230_v32  ;;  %v15054_v32 = vld [vmem:[#allocation55_spill] sm:$0xff] }
 0x286   :  { %8820 = vmatprep.subr.mxu1 %v12127_v57 }
 0x287   :  { %8821 = vmatpush3.msra.mxu1 %v12129_v33  ;;  %5128 = vmatprep.mubr.f32.mxu1 %v4645_v13  ;;  %v4646_v35 = vsub.f32 %v4644_v24, %v4645_v13  ;;  %v4653_v43 = vand.u32 4294901760, %v4652_v30  ;;  %v15049_v13 = vld [vmem:[#allocation8_spill] sm:$0xff]  ;;  %v15050_v30 = vld [vmem:[#allocation119_spill] sm:$0xff] }
 0x288   :  { %8822 = vmatprep.subr.mxu1 %v15039_v3 }
 0x289   :  { %8823 = vmatpush3.msra.mxu1 %v15040_v12  ;;  %v4647_v53 = vand.u32 4294901760, %v4646_v35  ;;  %v15051_v35 = vld [vmem:[#allocation122_spill] sm:$0xff] }
 0x28a   :  { %8824 = vmatprep.subr.mxu1 %v12184_v18 }
 0x28b   :  { %8825 = vmatpush3.msra.mxu1 %v12197_v62  ;;  %4648 = vmatprep.mubr.f32.mxu0 %v4647_v53  ;;  %v15052_v53 = vld [vmem:[#allocation130_spill] sm:$0xff] }
 0x28c   :  { %8826 = vmatprep.subr.mxu1 %v12199_v28  ;;  %4654 = vmatmul.mubr.f32.vlgmr.msra.gmra.mxu0 %v4653_v43  ;;  %v15053_v43 = vld [vmem:[#allocation43_spill] sm:$0xff] }
 0x28d   :  { %8784 = vmatpush3.msra.mxu0 %v15041_v20  ;;  %8827 = vmatpush3.msra.mxu1 %v12215_v47 }
 0x28e   :  { %8785 = vmatprep.subr.mxu0 %v15042_v60  ;;  %5021 = vmatprep.mubr.f32.mxu0 %v4644_v24  ;;  %v15048_v24 = vld [vmem:[#allocation116_spill] sm:$0xff]  ;;  %v15098_v60 = vld [vmem:[#allocation115_spill] sm:$0xff] }
 0x28f   :  { %8828 = vmatprep.subr.mxu1 %v12224_v45  ;;  %8786 = vmatpush3.msra.mxu0 %v15043_v58 }
 0x290   :  { %8829 = vmatpush3.msra.mxu1 %v12226_v9  ;;  %8787 = vmatprep.subr.mxu0 %v15044_v46 }
 0x291   :  { %8830 = vmatprep.subr.mxu1 %v12239_v19  ;;  %8788 = vmatpush3.msra.mxu0 %v15045_v63  ;;  %v15093_v63 = vld [vmem:[#allocation97_spill] sm:$0xff] }
 0x292   :  { %8831 = vmatpush3.msra.mxu1 %v12281_v61  ;;  %8789 = vmatprep.subr.mxu0 %v15046_v16  ;;  %v15092_v16 = vld [vmem:[#allocation95_spill] sm:$0xff] }
 0x293   :  { %8832 = vmatprep.subr.mxu1 %v12306_v7  ;;  %8790 = vmatpush3.msra.mxu0 %v15047_v5 }
 0x294   :  { %8833 = vmatpush3.msra.mxu1 %v12355_v22  ;;  %8791 = vmatprep.subr.mxu0 %v15048_v24  ;;  %v15088_v24 = vld [vmem:[#allocation92_spill] sm:$0xff] }
 0x295   :  { %8834 = vmatprep.subr.mxu1 %v12357_v41  ;;  %8792 = vmatpush3.msra.mxu0 %v15049_v13  ;;  %v15055_v13 = vld [vmem:[#allocation52_spill] sm:$0xff] }
 0x296   :  { %8835 = vmatpush3.msra.mxu1 %v12372_v21  ;;  %8793 = vmatprep.subr.mxu0 %v15050_v30  ;;  %v15056_v30 = vld [vmem:[#allocation65_spill] sm:$0xff] }
 0x297   :  { %8836 = vmatprep.subr.mxu1 %v12381_v34  ;;  %8794 = vmatpush3.msra.mxu0 %v15051_v35  ;;  %v15057_v35 = vld [vmem:[#allocation67_spill] sm:$0xff] }
 0x298   :  { %8837 = vmatpush3.msra.mxu1 %v12383_v51  ;;  %8795 = vmatprep.subr.mxu0 %v15052_v53  ;;  %v15058_v53 = vld [vmem:[#allocation70_spill] sm:$0xff] }
 0x299   :  { %8838 = vmatprep.subr.mxu1 %v12394_v55  ;;  %8796 = vmatpush3.msra.mxu0 %v15053_v43  ;;  %v15059_v43 = vld [vmem:[#allocation63_spill] sm:$0xff] }
 0x29a   :  { %8839 = vmatpush3.msra.mxu1 %v12442_v11  ;;  %8797 = vmatprep.subr.mxu0 %v15054_v32  ;;  %v15087_v32 = vld [vmem:[#allocation86_spill] sm:$0xff] }
 0x29b   :  { %8840 = vmatprep.subr.mxu1 %v12456_v14  ;;  %8798 = vmatpush3.msra.mxu0 %v15055_v13  ;;  %v15060_v13 = vld [vmem:[#allocation99_spill] sm:$0xff] }
 0x29c   :  { %8841 = vmatpush3.msra.mxu1 %v12472_v40  ;;  %8799 = vmatprep.subr.mxu0 %v15056_v30  ;;  %v15061_v30 = vld [vmem:[#allocation108_spill] sm:$0xff] }
 0x29d   :  { %8842 = vmatprep.subr.mxu1 %v12486_v37  ;;  %8800 = vmatpush3.msra.mxu0 %v15057_v35 }
 0x29e   :  { %8843 = vmatpush3.msra.mxu1 %v12503_v59  ;;  %8801 = vmatprep.subr.mxu0 %v15058_v53  ;;  %v15062_v53 = vld [vmem:[#allocation112_spill] sm:$0xff] }
 0x29f   :  { %8844 = vmatprep.subr.mxu1 %v12518_v6  ;;  %8802 = vmatpush3.msra.mxu0 %v15059_v43  ;;  %v15063_v43 = vand.u32 4294901760, %v12739_v54 }
 0x2a0   :  { %8845 = vmatpush3.msra.mxu1 %v12532_v38  ;;  %8803 = vmatprep.subr.mxu0 %v12454_v31  ;;  %v15083_v31 = vld [vmem:[#allocation78_spill] sm:$0xff] }
 0x2a1   :  { %8846 = vmatprep.subr.mxu1 %v12546_v29  ;;  %8804 = vmatpush3.msra.mxu0 %v15060_v13 }
 0x2a2   :  { %8847 = vmatpush3.msra.mxu1 %v12561_v4  ;;  %8805 = vmatprep.subr.mxu0 %v15061_v30  ;;  %v15064_v30 = vld [vmem:[#allocation120_spill] sm:$0xff] }
 0x2a3   :  { %8848 = vmatprep.subr.mxu1 %v12573_v49  ;;  %8806 = vmatpush3.msra.mxu0 %v12530_v56  ;;  %v15079_v56 = vld [vmem:[#allocation59_spill] sm:$0xff] }
 0x2a4   :  { %8849 = vmatpush3.msra.mxu1 %v12585_v26  ;;  %8807 = vmatprep.subr.mxu0 %v15062_v53 }
 0x2a5   :  { %5132 = vmatmul.mubr.f32.vlgmr.msra.gmra.mxu1 %v15063_v43  ;;  %8888 = vmatprep.subr.mxu1 %v12116_v10  ;;  %v15065_v43 = vld [vmem:[#allocation80_spill] sm:$0xff] }
 0x2a6   :  { %8808 = vmatpush3.msra.mxu0 %v12559_v1  ;;  %8889 = vmatpush3.msra.mxu1 %v12123_v2 }
 0x2a7   :  { %5402 = vmatprep.mubr.f32.mxu1 %v12742_v36  ;;  %8809 = vmatprep.subr.mxu0 %v15064_v30  ;;  %v15075_v30 = vld [vmem:[#allocation41_spill] sm:$0xff] }
 0x2a8   :  { %8890 = vmatprep.subr.mxu1 %v12127_v57  ;;  %8810 = vmatpush3.msra.mxu0 %v12583_v50 }
 0x2a9   :  { %8891 = vmatpush3.msra.mxu1 %v12129_v33  ;;  %8811 = vmatprep.subr.mxu0 %v12597_v44  ;;  %v15066_v44 = vld [vmem:[#allocation82_spill] sm:$0xff] }
 0x2aa   :  { %8892 = vmatprep.subr.mxu1 %v15039_v3  ;;  %8812 = vmatpush3.msra.mxu0 %v12609_v0  ;;  %v15067_v0 = vld [vmem:[#allocation85_spill] sm:$0xff] }
 0x2ab   :  { %8893 = vmatpush3.msra.mxu1 %v15040_v12  ;;  %8813 = vmatprep.subr.mxu0 %v12621_v42  ;;  %v15068_v42 = vld [vmem:[#allocation89_spill] sm:$0xff] }
 0x2ac   :  { %8894 = vmatprep.subr.mxu1 %v12184_v18  ;;  %8814 = vmatpush3.msra.mxu0 %v12633_v52  ;;  %v15069_v52 = vld [vmem:[#allocation94_spill] sm:$0xff] }
 0x2ad   :  { %8895 = vmatpush3.msra.mxu1 %v12197_v62  ;;  %5024 = vmatmul.mubr.f32.vlgmr.msra.gmra.mxu0 %v12739_v54  ;;  %v4543_v54 = vld [vmem:[%s13766_s4 + $0x138] sm:$0xff] }
 0x2ae   :  { %8853 = vmatprep.subr.mxu0 %v15065_v43  ;;  %8896 = vmatprep.subr.mxu1 %v12199_v28  ;;  %v15073_v43 = vld [vmem:[#allocation32_spill] sm:$0xff] }
 0x2af   :  { %8854 = vmatpush3.msra.mxu0 %v15066_v44  ;;  %5298 = vmatprep.mubr.f32.mxu0 %v12742_v36  ;;  %v15070_v44 = vld [vmem:[#allocation118_spill] sm:$0xff]  ;;  %v15071_v36 = vld [vmem:[#allocation129_spill] sm:$0xff] }
 0x2b0   :  { %8897 = vmatpush3.msra.mxu1 %v12215_v47  ;;  %8855 = vmatprep.subr.mxu0 %v15067_v0  ;;  %v15072_v0 = vld [vmem:[#allocation14_spill] sm:$0xff] }
 0x2b1   :  { %8898 = vmatprep.subr.mxu1 %v12224_v45  ;;  %8856 = vmatpush3.msra.mxu0 %v15068_v42  ;;  %v4542_v42 = vld [vmem:[%s13766_s4 + $0x130] sm:$0xff] }
 0x2b2   :  { %8899 = vmatpush3.msra.mxu1 %v12226_v9  ;;  %8857 = vmatprep.subr.mxu0 %v15069_v52  ;;  %v12848_v52 = vand.u32 4294901760, %v4543_v54  ;;  %v12857_v50 = vand.u32 4294901760, %v4542_v42 }
 0x2b3   :  { %8900 = vmatprep.subr.mxu1 %v12239_v19  ;;  %8858 = vmatpush3.msra.mxu0 %v15070_v44  ;;  %v4541_v44 = vld [vmem:[%s13766_s4 + $0x128] sm:$0xff] }
 0x2b4   :  { %8901 = vmatpush3.msra.mxu1 %v12281_v61  ;;  %8859 = vmatprep.subr.mxu0 %v15071_v36  ;;  %v15074_v36 = vld [vmem:[#allocation38_spill] sm:$0xff]  ;;  %v12867_v1 = vsub.f32 %v4543_v54, %v12848_v52  ;;  %v12869_v53 = vand.u32 4294901760, %v4541_v44  ;;  %v12879_v13 = vsub.f32 %v4542_v42, %v12857_v50  ;;  %v15082_v54 = vld [vmem:[#allocation57_spill] sm:$0xff] }
 0x2b5   :  { %8902 = vmatprep.subr.mxu1 %v12306_v7  ;;  %8860 = vmatpush3.msra.mxu0 %v15072_v0  ;;  %v4540_v0 = vld [vmem:[%s13766_s4 + $0x120] sm:$0xff] }
 0x2b6   :  { %8903 = vmatpush3.msra.mxu1 %v12355_v22  ;;  %8861 = vmatprep.subr.mxu0 %v15073_v43  ;;  %v15076_v43 = vld [vmem:[#allocation42_spill] sm:$0xff]  ;;  %15077 = vst [vmem:[#allocation17_spill] sm:$0xff] %v12867_v1  ;;  %15080 = vst [vmem:[#allocation15_spill] sm:$0xff] %v12879_v13  ;;  %v12891_v35 = vand.u32 4294901760, %v12867_v1  ;;  %v12894_v42 = vsub.f32 %v4541_v44, %v12869_v53 }
 0x2b7   :  { %8904 = vmatprep.subr.mxu1 %v12357_v41  ;;  %8862 = vmatpush3.msra.mxu0 %v15074_v36  ;;  %v15078_v36 = vld [vmem:[#allocation46_spill] sm:$0xff] }
 0x2b8   :  { %8905 = vmatpush3.msra.mxu1 %v12372_v21  ;;  %8863 = vmatprep.subr.mxu0 %v15075_v30  ;;  %v4539_v30 = vld [vmem:[%s13766_s4 + $0x118] sm:$0xff]  ;;  %15084 = vst [vmem:[#allocation139_spill] sm:$0xff] %v12891_v35  ;;  %15085 = vst [vmem:[#allocation140_spill] sm:$0xff] %v12894_v42 }
 0x2b9   :  { %8906 = vmatprep.subr.mxu1 %v12381_v34  ;;  %8864 = vmatpush3.msra.mxu0 %v15076_v43  ;;  %v12881_v43 = vand.u32 4294901760, %v4540_v0 }
 0x2ba   :  { %8907 = vmatpush3.msra.mxu1 %v12383_v51  ;;  %8865 = vmatprep.subr.mxu0 %v15078_v36  ;;  %v4538_v36 = vld [vmem:[%s13766_s4 + $0x110] sm:$0xff] }
 0x2bb   :  { %8908 = vmatprep.subr.mxu1 %v12394_v55  ;;  %8866 = vmatpush3.msra.mxu0 %v15079_v56  ;;  %15081 = vst [vmem:[#allocation138_spill] sm:$0xff] %v12881_v43  ;;  %v12896_v56 = vand.u32 4294901760, %v4539_v30  ;;  %v12909_v44 = vsub.f32 %v4540_v0, %v12881_v43  ;;  %v12911_v5 = vand.u32 4294901760, %v4538_v36  ;;  %v12923_v0 = vand.u32 4294901760, %v12894_v42 }
 0x2bc   :  { %8909 = vmatpush3.msra.mxu1 %v12442_v11  ;;  %8867 = vmatprep.subr.mxu0 %v15082_v54  ;;  %v4537_v54 = vld [vmem:[%s13766_s4 + $0x108] sm:$0xff] }
 0x2bd   :  { %8910 = vmatprep.subr.mxu1 %v12456_v14  ;;  %8868 = vmatpush3.msra.mxu0 %v15083_v31  ;;  %15086 = vst [vmem:[#allocation141_spill] sm:$0xff] %v12896_v56  ;;  %v12906_v31 = vand.u32 4294901760, %v12879_v13  ;;  %15090 = vst [vmem:[#allocation143_spill] sm:$0xff] %v12909_v44  ;;  %v12926_v46 = vsub.f32 %v4539_v30, %v12896_v56  ;;  %v12928_v58 = vand.u32 4294901760, %v4537_v54  ;;  %v12937_v20 = vand.u32 4294901760, %v12909_v44  ;;  %v15123_v14 = vld [vmem:[#allocation132_spill] sm:$0xff] }
 0x2be   :  { %8911 = vmatpush3.msra.mxu1 %v12472_v40  ;;  %8869 = vmatprep.subr.mxu0 %v15087_v32  ;;  %15091 = vst [vmem:[#allocation144_spill] sm:$0xff] %v12911_v5  ;;  %v4536_v32 = vld [vmem:[%s13766_s4 + $0x100] sm:$0xff]  ;;  %15094 = vst [vmem:[#allocation145_spill] sm:$0xff] %v12923_v0  ;;  %v12940_v15 = vsub.f32 %v4538_v36, %v12911_v5  ;;  %v5526_v8 = vsub.f32 %v12894_v42, %v12923_v0  ;;  %v15124_v11 = vsub.s32 2, %v15123_v14 }
 0x2bf   :  { %8912 = vmatprep.subr.mxu1 %v12486_v37  ;;  %8870 = vmatpush3.msra.mxu0 %v15088_v24  ;;  %15089 = vst [vmem:[#allocation142_spill] sm:$0xff] %v12906_v31  ;;  %v5512_v24 = vsub.f32 %v12867_v1, %v12891_v35  ;;  %15095 = vst [vmem:[#allocation146_spill] sm:$0xff] %v12926_v46  ;;  %v12942_v30 = vand.u32 4294901760, %v4536_v32  ;;  %v12956_v36 = vsub.f32 %v4537_v54, %v12928_v58  ;;  %v15112_v54 = vld [vmem:[#allocation26_spill] sm:$0xff] }
 0x2c0   :  { %8913 = vmatpush3.msra.mxu1 %v12503_v59  ;;  %8871 = vmatprep.subr.mxu0 %v15092_v16  ;;  %15096 = vst [vmem:[#allocation147_spill] sm:$0xff] %v12928_v58  ;;  %v15097_v16 = vld [vmem:[#allocation105_spill] sm:$0xff]  ;;  %15099 = vst [vmem:[#allocation148_spill] sm:$0xff] %v12937_v20  ;;  %v9730_v40 = vld [vmem:[%s13765_s3 + $0x1] ss:$2 sm:$0x7] }
 0x2c1   :  { %8914 = vmatprep.subr.mxu1 %v12518_v6  ;;  %8872 = vmatpush3.msra.mxu0 %v15093_v63  ;;  %v5519_v63 = vsub.f32 %v12879_v13, %v12906_v31  ;;  %15100 = vst [vmem:[#allocation149_spill] sm:$0xff] %v12940_v15  ;;  %15101 = vst [vmem:[#allocation150_spill] sm:$0xff] %v12942_v30  ;;  %v1163_v55 = vrot.slane %v9730_v40, %v15124_v11 }
 0x2c2   :  { %8915 = vmatpush3.msra.mxu1 %v12532_v38  ;;  %8873 = vmatprep.subr.mxu0 %v15097_v16  ;;  %v15103_v16 = vld [vmem:[#allocation125_spill] sm:$0xff]  ;;  %15106 = vst [vmem:[#allocation153_spill] sm:$0xff] %v12956_v36  ;;  %v12970_v38 = vsub.f32 %v4536_v32, %v12942_v30 }
 0x2c3   :  { %8916 = vmatprep.subr.mxu1 %v12546_v29  ;;  %8874 = vmatpush3.msra.mxu0 %v15098_v60  ;;  %v12948_v60 = vand.u32 4294901760, %v5512_v24  ;;  %v12953_v29 = vand.u32 4294901760, %v12926_v46  ;;  %v5533_v24 = vsub.f32 %v12909_v44, %v12937_v20 }
 0x2c4   :  { %8917 = vmatpush3.msra.mxu1 %v12561_v4  ;;  %8875 = vmatprep.subr.mxu0 %v15102_v39  ;;  %v15107_v4 = vld [vmem:[#allocation10_spill] sm:$0xff]  ;;  %v15108_v39 = vld [vmem:[#allocation137_spill] sm:$0xff]  ;;  %15111 = vst [vmem:[#allocation156_spill] sm:$0xff] %v12970_v38 }
 0x2c5   :  { %8918 = vmatprep.subr.mxu1 %v12573_v49  ;;  %8876 = vmatpush3.msra.mxu0 %v15103_v16  ;;  %15104 = vst [vmem:[#allocation151_spill] sm:$0xff] %v12948_v60  ;;  %15105 = vst [vmem:[#allocation152_spill] sm:$0xff] %v12953_v29  ;;  %v12962_v16 = vand.u32 4294901760, %v5519_v63  ;;  %v12967_v49 = vand.u32 4294901760, %v12940_v15  ;;  %v5540_v63 = vsub.f32 %v12926_v46, %v12953_v29  ;;  %v12987_v32 = vand.u32 4294901760, %v5533_v24 }
 0x2c6   :  { %8919 = vmatpush3.msra.mxu1 %v12585_v26  ;;  %8877 = vmatprep.subr.mxu0 %v15107_v4  ;;  %v15113_v26 = vmov 0.0   ;;  %v12981_v4 = vand.u32 4294901760, %v12956_v36 }
 0x2c7   :  { %5404 = vmatmul.mubr.f32.vlgmr.msra.gmra.mxu1 %v12733_v27  ;;  %8878 = vmatpush3.msra.mxu0 %v15108_v39  ;;  %15109 = vst [vmem:[#allocation154_spill] sm:$0xff] %v12962_v16  ;;  %15110 = vst [vmem:[#allocation155_spill] sm:$0xff] %v12967_v49  ;;  %v12976_v39 = vand.u32 4294901760, %v5526_v8  ;;  %v5547_v8 = vsub.f32 %v12940_v15, %v12967_v49 }
 0x2c8   :  { %8879 = vmatprep.subr.mxu0 %v15112_v54  ;;  %9446 = vmatprep.subr.mxu1 %v15113_v26  ;;  %15115 = vst [vmem:[#allocation158_spill] sm:$0xff] %v12981_v4  ;;  %15116 = vst [vmem:[#allocation159_spill] sm:$0xff] %v12987_v32  ;;  %v15118_v54 = vld [vmem:[#allocation33_spill] sm:$0xff]  ;;  %v5554_v24 = vsub.f32 %v12956_v36, %v12981_v4 }
 0x2c9   :  { %8880 = vmatpush3.msra.mxu0 %v12630_v48  ;;  %9447 = vmatpush3.msra.mxu1 %v12948_v60  ;;  %15114 = vst [vmem:[#allocation157_spill] sm:$0xff] %v12976_v39  ;;  %v12992_v48 = vand.u32 4294901760, %v12970_v38 }
 0x2ca   :  { %8881 = vmatprep.subr.mxu0 %v12643_v25  ;;  %9448 = vmatprep.subr.mxu1 %v15113_v26  ;;  %v12998_v25 = vand.u32 4294901760, %v5540_v63 }
 0x2cb   :  { %8882 = vmatpush3.msra.mxu0 %v12652_v17  ;;  %9449 = vmatpush3.msra.mxu1 %v12962_v16  ;;  %15117 = vst [vmem:[#allocation160_spill] sm:$0xff] %v12992_v48 }
 0x2cc   :  { %8883 = vmatprep.subr.mxu0 %v12662_v23  ;;  %9450 = vmatprep.subr.mxu1 %v15113_v26  ;;  %15119 = vst [vmem:[#allocation161_spill] sm:$0xff] %v12998_v25  ;;  %v13006_v23 = vand.u32 4294901760, %v5547_v8  ;;  %v8516_v8 = vpop.f32.mrf.mxu1 }
 0x2cd   :  { %8884 = vmatpush3.msra.mxu0 %v15118_v54  ;;  %9451 = vmatpush3.msra.mxu1 %v12976_v39  ;;  %v5561_v54 = vsub.f32 %v12970_v38, %v12992_v48 }
 0x2ce   :  { %5300 = vmatmul.mubr.f32.vlgmr.msra.gmra.mxu0 %v12733_v27  ;;  %9452 = vmatprep.subr.mxu1 %v15113_v26  ;;  %15120 = vst [vmem:[#allocation162_spill] sm:$0xff] %v13006_v23  ;;  %v13014_v27 = vand.u32 4294901760, %v5554_v24 }
 0x2cf   :  { %9453 = vmatpush3.msra.mxu1 %v12987_v32  ;;  %9427 = vmatprep.subr.mxu0 %v15113_v26  ;;  %v13020_v63 = vand.u32 4294901760, %v5561_v54  ;;  %v8517_v54 = vpop.f32.mrf.mxu1 }
 0x2d0   :  { %9454 = vmatprep.subr.mxu1 %v15113_v26  ;;  %9428 = vmatpush3.msra.mxu0 %v12848_v52  ;;  %15121 = vst [vmem:[#allocation163_spill] sm:$0xff] %v13014_v27  ;;  %v8518_v41 = vadd.f32 %v8517_v54, %v8516_v8 }
 0x2d1   :  { %9455 = vmatpush3.msra.mxu1 %v12998_v25  ;;  %9429 = vmatprep.subr.mxu0 %v15113_v26  ;;  %15122 = vst [vmem:[#allocation164_spill] sm:$0xff] %v13020_v63  ;;  %v8586_v24 = vpop.f32.mrf.mxu1 }
 0x2d2   :  { %9456 = vmatprep.subr.mxu1 %v15113_v26  ;;  %9430 = vmatpush3.msra.mxu0 %v12857_v50 }
 0x2d3   :  { %9457 = vmatpush3.msra.mxu1 %v13006_v23  ;;  %9431 = vmatprep.subr.mxu0 %v15113_v26 }
 0x2d4   :  { %9458 = vmatprep.subr.mxu1 %v15113_v26  ;;  %9432 = vmatpush3.msra.mxu0 %v12869_v53 }
 0x2d5   :  { %9459 = vmatpush3.msra.mxu1 %v13014_v27  ;;  %9433 = vmatprep.subr.mxu0 %v15113_v26  ;;  %v8587_v27 = vpop.f32.mrf.mxu1 }
 0x2d6   :  { %9460 = vmatprep.subr.mxu1 %v15113_v26  ;;  %9434 = vmatpush3.msra.mxu0 %v12881_v43 }
 0x2d7   :  { %9461 = vmatpush3.msra.mxu1 %v13020_v63  ;;  %9435 = vmatprep.subr.mxu0 %v15113_v26  ;;  %v8481_v63 = vpop.f32.mrf.mxu0  ;;  %v8656_v23 = vpop.f32.mrf.mxu1 }
 0x2d8   :  { %9462 = vmatprep.mubr.msk.f32.mxu1 %vm9779_vm2, %v15113_v26  ;;  %9484 = vmatprep.subr.mxu1 %v15113_v26 }
 0x2d9   :  { %9436 = vmatpush3.msra.mxu0 %v12896_v56  ;;  %9443 = vmatprep.mubr.msk.f32.mxu0 %vm9779_vm2, %v15113_v26  ;;  %v8482_v25 = vpop.f32.mrf.mxu0  ;;  %v8657_v39 = vpop.f32.mrf.mxu1 }
 0x2da   :  { %9437 = vmatprep.subr.mxu0 %v15113_v26  ;;  %v8483_v51 = vadd.f32 %v8482_v25, %v8481_v63  ;;  %v8658_v18 = vadd.f32 %v8657_v39, %v8656_v23  ;;  %v5952_v23 = vld [vmem:[%s13767_s5 + $0x20] sm:$0xff] }
 0x2db   :  { %9438 = vmatpush3.msra.mxu0 %v12911_v5  ;;  %v8551_v32 = vpop.f32.mrf.mxu0 }
 0x2dc   :  { %9439 = vmatprep.subr.mxu0 %v15113_v26  ;;  %v3211_v21 = vadd.f32 %v8483_v51, %v1163_v55 }
 0x2dd   :  { %9440 = vmatpush3.msra.mxu0 %v12928_v58  ;;  %v8552_v16 = vpop.f32.mrf.mxu0 }
 0x2de   :  { %9441 = vmatprep.subr.mxu0 %v15113_v26  ;;  %v8553_v22 = vadd.f32 %v8552_v16, %v8551_v32  ;;  %v3443_v61 = vadd.f32 %v8518_v41, %v3211_v21  ;;  %v13167_v32 = vand.u32 4294901760, %v5952_v23 }
 0x2df   :  { %9442 = vmatpush3.msra.mxu0 %v12942_v30  ;;  %v8621_v6 = vpop.f32.mrf.mxu0 }
 0x2e0   :  { %9465 = vmatprep.subr.mxu0 %v15113_v26  ;;  %v3581_v9 = vadd.f32 %v8553_v22, %v3443_v61  ;;  %v5957_v61 = vld [vmem:[%s13767_s5 + $0x48] sm:$0xff] }
 0x2e1   :  { %v8622_v59 = vpop.f32.mrf.mxu0 }
 0x2e2   :  { %v8623_v45 = vadd.f32 %v8622_v59, %v8621_v6  ;;  %v5954_v6 = vld [vmem:[%s13767_s5 + $0x30] sm:$0xff] }
 0x2e6   :  { %v4154_v17 = vpop.f32.mrf.mxu1 }
 0x2e8   :  { %v9350_v60 = vpop.f32.mrf.mxu1 }
 0x2e9   :  { %v8588_v60 = vadd.f32 %v8587_v27, %v8586_v24  ;;  %v5951_v27 = vld [vmem:[%s13767_s5 + $0x18] sm:$0xff]  ;;  %v5949_v24 = vld [vmem:[%s13767_s5 + $0x8] sm:$0xff] }
 0x2ea   :  { %v13177_v54 = vand.u32 4294901760, %v5951_v27 }
 0x2eb   :  { %v3689_v47 = vadd.f32 %v8588_v60, %v3581_v9  ;;  %v5958_v9 = vld [vmem:[%s13767_s5 + $0x50] sm:$0xff] }
 0x2ed   :  { %v3857_v28 = vadd.f32 %v8623_v45, %v3689_v47 }
 0x2ee   :  { %v4043_v37 = vpop.f32.mrf.mxu0 }
 0x2ef   :  { %v3961_v3 = vadd.f32 %v8658_v18, %v3857_v28 }
 0x2f0   :  { %v9331_v34 = vpop.f32.mrf.mxu0 }
 0x2f1   :  { %v4044_v33 = vadd.f32 %v4043_v37, %v3961_v3  ;;  %v5955_v37 = vld [vmem:[%s13767_s5 + $0x38] sm:$0xff] }
 0x2f2   :  { %v13148_v59 = vand.u32 4294901760, %v5955_v37 }
 0x2f3   :  { %v4155_v11 = vadd.f32 %v4154_v17, %v4044_v33  ;;  %v13157_v17 = vand.u32 4294901760, %v5954_v6 }
 0x2f5   :  { %v13175_v8 = vsub.f32 %v5954_v6, %v13157_v17 }
 0x2f8   :  { %v4323_v7 = vpop.f32.mrf.mxu1 }
 0x2fa   :  { %v9388_v19 = vpop.f32.mrf.mxu1 }
 0x2fb   :  { %v13135_v19 = vand.u32 4294901760, %v5958_v9 }
 0x2fd   :  { %v13146_v22 = vsub.f32 %v5958_v9, %v13135_v19 }
 0x2ff   :  { %v14318_v3 = vand.u32 4294901760, %v13146_v22 }
 0x300   :  { %v4242_v62 = vpop.f32.mrf.mxu0 }
 0x301   :  { %v4243_v34 = vadd.f32 %v4242_v62, %v4155_v11  ;;  %v6075_v60 = vsub.f32 %v13146_v22, %v14318_v3  ;;  %v13188_v11 = vsub.f32 %v5952_v23, %v13167_v32 }
 0x302   :  { %v9369_v12 = vpop.f32.mrf.mxu0 }
 0x303   :  { %v4324_v51 = vadd.f32 %v4323_v7, %v4243_v34  ;;  %v13140_v7 = vand.u32 4294901760, %v5957_v61  ;;  %v13165_v12 = vsub.f32 %v5955_v37, %v13148_v59  ;;  %v5948_v34 = vld [vmem:[%s13767_s5] sm:$0xff] }
 0x305   :  { %v13155_v39 = vsub.f32 %v5957_v61, %v13140_v7 }
 0x307   :  { %v14316_v63 = vand.u32 4294901760, %v13155_v39 }
 0x30a   :  { %v4497_v14 = vpop.f32.mrf.mxu1 }
 0x30c   :  { %v9426_v40 = vpop.f32.mrf.mxu1 }
 0x30d   :  { %v13190_v40 = vand.u32 4294901760, %v5949_v24 }
 0x312   :  { %v4418_v55 = vpop.f32.mrf.mxu0 }
 0x313   :  { %v4419_v25 = vadd.f32 %v4418_v55, %v4324_v51  ;;  %v6081_v51 = vsub.f32 %v13155_v39, %v14316_v63  ;;  %v14314_v55 = vand.u32 4294901760, %v13175_v8 }
 0x314   :  { %v9407_v16 = vpop.f32.mrf.mxu0 }
 0x315   :  { %v13048_v41 = vadd.f32 %v4497_v14, %v4419_v25  ;;  %v14315_v14 = vand.u32 4294901760, %v13165_v12  ;;  %v13201_v25 = vsub.f32 %v5951_v27, %v13177_v54  ;;  %v13203_v16 = vand.u32 4294901760, %v5948_v34 }
 0x317   :  { %v14310_v21 = vmax.f32 %v13048_v41, 0.0  ;;  %v14311_v9 = vand.u32 4294901760, %v13201_v25  ;;  %v13219_v61 = vsub.f32 %v5948_v34, %v13203_v16 }
 0x319   :  { %v4545_v47 = vsel %vm1167_vm3, %v14310_v21, 0 }
 0x31a   :  { %v13054_v45 = vand.u32 4294901760, %v4545_v47 }
 0x31c   :  { %v5483_v18 = vsub.f32 %v4545_v47, %v13054_v45  ;;  %9463 = vmatmul.mubr.f32.vlgmr.msra.gmra.mxu1 %v13054_v45  ;;  %v6076_v47 = vand.u32 4294901760, %v6075_v60  ;;  %v14317_v60 = vand.u32 4294901760, %v13219_v61 }
 0x31d   :  { %9485 = vmatpush3.msra.mxu1 %v12848_v52  ;;  %9500 = vmatprep.mubr.msk.f32.mxu1 %vm9779_vm2, %v15113_v26 }
 0x31e   :  { %9486 = vmatprep.subr.mxu1 %v15113_v26  ;;  %v5484_v33 = vand.u32 4294901760, %v5483_v18 }
 0x31f   :  { %9487 = vmatpush3.msra.mxu1 %v12857_v50 }
 0x320   :  { %9488 = vmatprep.subr.mxu1 %v15113_v26  ;;  %v5485_v62 = vsub.f32 %v5483_v18, %v5484_v33 }
 0x321   :  { %9489 = vmatpush3.msra.mxu1 %v12869_v53 }
 0x322   :  { %9490 = vmatprep.subr.mxu1 %v15113_v26  ;;  %v5486_v28 = vand.u32 4294901760, %v5485_v62  ;;  %v6082_v62 = vand.u32 4294901760, %v6081_v51 }
 0x323   :  { %9491 = vmatpush3.msra.mxu1 %v12881_v43 }
 0x324   :  { %9492 = vmatprep.subr.mxu1 %v15113_v26  ;;  %9444 = vmatmul.mubr.f32.vlgmr.msra.gmra.mxu0 %v5486_v28  ;;  %v6093_v28 = vsub.f32 %v13175_v8, %v14314_v55 }
 0x325   :  { %9466 = vmatpush3.msra.mxu0 %v12867_v1  ;;  %9493 = vmatpush3.msra.mxu1 %v12896_v56 }
 0x326   :  { %9467 = vmatprep.subr.mxu0 %v15113_v26  ;;  %9494 = vmatprep.subr.mxu1 %v15113_v26  ;;  %v6094_v27 = vand.u32 4294901760, %v6093_v28 }
 0x327   :  { %9468 = vmatpush3.msra.mxu0 %v12879_v13  ;;  %9495 = vmatpush3.msra.mxu1 %v12911_v5 }
 0x328   :  { %9469 = vmatprep.subr.mxu0 %v15113_v26  ;;  %9496 = vmatprep.subr.mxu1 %v15113_v26 }
 0x329   :  { %9470 = vmatpush3.msra.mxu0 %v12894_v42  ;;  %9497 = vmatpush3.msra.mxu1 %v12928_v58 }
 0x32a   :  { %9471 = vmatprep.subr.mxu0 %v15113_v26  ;;  %9498 = vmatprep.subr.mxu1 %v15113_v26 }
 0x32b   :  { %9472 = vmatpush3.msra.mxu0 %v12909_v44  ;;  %9499 = vmatpush3.msra.mxu1 %v12942_v30 }
 0x32c   :  { %9473 = vmatprep.subr.mxu0 %v15113_v26  ;;  %9501 = vmatmul.mubr.f32.vlgmr.msra.gmra.mxu1 %v5484_v33  ;;  %v13211_v33 = vsub.f32 %v5949_v24, %v13190_v40  ;;  %v6105_v24 = vsub.f32 %v13201_v25, %v14311_v9 }
 0x32d   :  { %9522 = vmatprep.subr.mxu1 %v15113_v26  ;;  %9474 = vmatpush3.msra.mxu0 %v12926_v46 }
 0x32e   :  { %9523 = vmatpush3.msra.mxu1 %v12848_v52  ;;  %9475 = vmatprep.subr.mxu0 %v15113_v26  ;;  %v14313_v23 = vand.u32 4294901760, %v13211_v33 }
 0x32f   :  { %9524 = vmatprep.subr.mxu1 %v15113_v26  ;;  %9476 = vmatpush3.msra.mxu0 %v12940_v15 }
 0x330   :  { %9525 = vmatpush3.msra.mxu1 %v12857_v50  ;;  %9477 = vmatprep.subr.mxu0 %v15113_v26  ;;  %v6111_v51 = vsub.f32 %v13211_v33, %v14313_v23 }
 0x331   :  { %9526 = vmatprep.subr.mxu1 %v15113_v26  ;;  %9478 = vmatpush3.msra.mxu0 %v12956_v36 }
 0x332   :  { %9527 = vmatpush3.msra.mxu1 %v12869_v53  ;;  %9479 = vmatprep.subr.mxu0 %v15113_v26 }
 0x333   :  { %9528 = vmatprep.subr.mxu1 %v15113_v26  ;;  %9480 = vmatpush3.msra.mxu0 %v12970_v38 }
 0x334   :  { %9481 = vmatprep.mubr.msk.f32.mxu0 %vm9779_vm2, %v15113_v26  ;;  %9529 = vmatpush3.msra.mxu1 %v12881_v43 }
 0x335   :  { %9482 = vmatmul.mubr.f32.vlgmr.msra.gmra.mxu0 %v5483_v18  ;;  %9503 = vmatprep.subr.mxu0 %v15113_v26  ;;  %v14312_v18 = vand.u32 4294901760, %v13188_v11 }
 0x336   :  { %9530 = vmatprep.subr.mxu1 %v15113_v26  ;;  %9504 = vmatpush3.msra.mxu0 %v12891_v35 }
 0x337   :  { %9531 = vmatpush3.msra.mxu1 %v12896_v56  ;;  %9505 = vmatprep.subr.mxu0 %v15113_v26  ;;  %v6099_v6 = vsub.f32 %v13188_v11, %v14312_v18 }
 0x338   :  { %9532 = vmatprep.subr.mxu1 %v15113_v26  ;;  %9506 = vmatpush3.msra.mxu0 %v12906_v31 }
 0x339   :  { %9533 = vmatpush3.msra.mxu1 %v12911_v5  ;;  %9507 = vmatprep.subr.mxu0 %v15113_v26  ;;  %v6100_v34 = vand.u32 4294901760, %v6099_v6 }
 0x33a   :  { %9534 = vmatprep.subr.mxu1 %v15113_v26  ;;  %9508 = vmatpush3.msra.mxu0 %v12923_v0 }
 0x33b   :  { %9535 = vmatpush3.msra.mxu1 %v12928_v58  ;;  %9509 = vmatprep.subr.mxu0 %v15113_v26  ;;  %v15196_v58 = vld [vmem:[#allocation13_spill] sm:$0xff] }
 0x33c   :  { %9536 = vmatprep.subr.mxu1 %v15113_v26  ;;  %9510 = vmatpush3.msra.mxu0 %v12937_v20 }
 0x33d   :  { %9537 = vmatpush3.msra.mxu1 %v12942_v30  ;;  %9538 = vmatprep.mubr.msk.f32.mxu1 %vm9779_vm2, %v15113_v26 }
 0x33e   :  { %9511 = vmatprep.subr.mxu0 %v15113_v26  ;;  %9539 = vmatmul.mubr.f32.vlgmr.msra.gmra.mxu1 %v13054_v45 }
 0x33f   :  { %9512 = vmatpush3.msra.mxu0 %v12953_v29  ;;  %9519 = vmatprep.mubr.msk.f32.mxu0 %vm9779_vm2, %v15113_v26 }
 0x340   :  { %9513 = vmatprep.subr.mxu0 %v15113_v26  ;;  %6152 = vmatprep.mubr.f32.mxu1 %v15113_v26 }
 0x341   :  { %9514 = vmatpush3.msra.mxu0 %v12967_v49  ;;  %6077 = vmatprep.subr.mxu1 %v6076_v47  ;;  %v6106_v47 = vand.u32 4294901760, %v6105_v24 }
 0x342   :  { %9515 = vmatprep.subr.mxu0 %v15113_v26  ;;  %6083 = vmatpush1.msra.mxu1 %v6082_v62  ;;  %v6112_v62 = vand.u32 4294901760, %v6111_v51 }
 0x343   :  { %9516 = vmatpush3.msra.mxu0 %v12981_v4 }
 0x344   :  { %9517 = vmatprep.subr.mxu0 %v15113_v26 }
 0x345   :  { %9518 = vmatpush3.msra.mxu0 %v12992_v48 }
 0x346   :  { %9520 = vmatmul.mubr.f32.vlgmr.msra.gmra.mxu0 %v13054_v45  ;;  %5989 = vmatprep.subr.mxu0 %v13135_v19  ;;  %v6087_v45 = vsub.f32 %v13165_v12, %v14315_v14 }
 0x347   :  { %6036 = vmatprep.mubr.f32.mxu0 %v15113_v26  ;;  %5991 = vmatpush1.msra.mxu0 %v13140_v7 }
 0x348   :  { %5993 = vmatprep.subr.mxu0 %v13148_v59  ;;  %v6088_v37 = vand.u32 4294901760, %v6087_v45  ;;  %v6117_v45 = vsub.f32 %v13219_v61, %v14317_v60 }
 0x349   :  { %5995 = vmatpush1.msra.mxu0 %v13157_v17 }
 0x34a   :  { %5997 = vmatprep.subr.mxu0 %v13167_v32  ;;  %6089 = vmatprep.subr.mxu1 %v6088_v37  ;;  %v6118_v28 = vand.u32 4294901760, %v6117_v45  ;;  %v8780_v37 = vpop.f32.mrf.mxu1 }
 0x34b   :  { %5999 = vmatpush1.msra.mxu0 %v13177_v54  ;;  %6095 = vmatpush1.msra.mxu1 %v6094_v27 }
 0x34c   :  { %6001 = vmatprep.subr.mxu0 %v13190_v40  ;;  %6101 = vmatprep.subr.mxu1 %v6100_v34  ;;  %v8781_v6 = vpop.f32.mrf.mxu1  ;;  %v8745_v9 = vpop.f32.mrf.mxu0 }
 0x34d   :  { %6003 = vmatpush1.msra.mxu0 %v13203_v16  ;;  %6107 = vmatpush1.msra.mxu1 %v6106_v47 }
 0x34e   :  { %6186 = vmatprep.subr.mxu0 %v13146_v22  ;;  %6113 = vmatprep.subr.mxu1 %v6112_v62  ;;  %v8746_v23 = vpop.f32.mrf.mxu0 }
 0x34f   :  { %6119 = vmatpush1.msra.mxu1 %v6118_v28  ;;  %v8747_v62 = vadd.f32 %v8746_v23, %v8745_v9  ;;  %v8782_v28 = vadd.f32 %v8781_v6, %v8780_v37 }
 0x350   :  { %6274 = vmatprep.subr.mxu1 %v13135_v19 }
 0x351   :  { %v4888_v4 = vadd.f32 %v8782_v28, %v8747_v62  ;;  %v15130_v62 = vand.u32 4294901760, %v13188_v11 }
 0x365   :  { %v8850_v21 = vpop.f32.mrf.mxu1 }
 0x367   :  { %v8851_v18 = vpop.f32.mrf.mxu1 }
 0x368   :  { %v8852_v20 = vadd.f32 %v8851_v18, %v8850_v21 }
 0x36d   :  { %v8815_v24 = vpop.f32.mrf.mxu0 }
 0x36f   :  { %v8816_v14 = vpop.f32.mrf.mxu0 }
 0x370   :  { %v8817_v3 = vadd.f32 %v8816_v14, %v8815_v24 }
 0x372   :  { %v5026_v29 = vadd.f32 %v8817_v3, %v4888_v4 }
 0x374   :  { %v5134_v31 = vadd.f32 %v8852_v20, %v5026_v29  ;;  %v5959_v29 = vld [vmem:[%s13767_s5 + $0x58] sm:$0xff]  ;;  %v5953_v20 = vld [vmem:[%s13767_s5 + $0x28] sm:$0xff] }
 0x387   :  { %v8920_v27 = vpop.f32.mrf.mxu1 }
 0x389   :  { %v8921_v55 = vpop.f32.mrf.mxu1 }
 0x38a   :  { %v8922_v36 = vadd.f32 %v8921_v55, %v8920_v27 }
 0x38e   :  { %v8885_v60 = vpop.f32.mrf.mxu0 }
 0x390   :  { %v8886_v51 = vpop.f32.mrf.mxu0 }
 0x391   :  { %v8887_v0 = vadd.f32 %v8886_v51, %v8885_v60  ;;  %v15128_v51 = vand.u32 4294901760, %v13165_v12 }
 0x393   :  { %v5302_v35 = vadd.f32 %v8887_v0, %v5134_v31  ;;  %v13277_v0 = vand.u32 4294901760, %v5953_v20 }
 0x395   :  { %v5406_v46 = vadd.f32 %v8922_v36, %v5302_v35  ;;  %v5950_v35 = vld [vmem:[%s13767_s5 + $0x10] sm:$0xff]  ;;  %v13293_v55 = vsub.f32 %v5953_v20, %v13277_v0 }
 0x396   :  { %v13286_v3 = vand.u32 4294901760, %v5950_v35  ;;  %v15151_v20 = vld [vmem:[#allocation81_spill] sm:$0xff] }
 0x398   :  { %v13301_v60 = vsub.f32 %v5950_v35, %v13286_v3  ;;  %v15154_v35 = vld [vmem:[#allocation111_spill] sm:$0xff] }
 0x3dc   :  { %v5599_v63 = vpop.f32.mrf.mxu1 }
 0x3de   :  { %v9464_v34 = vpop.f32.mrf.mxu1 }
 0x3e4   :  { %v5488_v47 = vpop.f32.mrf.mxu0 }
 0x3e5   :  { %v5489_v44 = vadd.f32 %v5488_v47, %v5406_v46 }
 0x3e6   :  { %v9445_v45 = vpop.f32.mrf.mxu0 }
 0x3e7   :  { %v5600_v42 = vadd.f32 %v5599_v63, %v5489_v44 }
 0x3ec   :  { %v5768_v48 = vpop.f32.mrf.mxu1 }
 0x3ee   :  { %v9502_v49 = vpop.f32.mrf.mxu1 }
 0x3f5   :  { %v5687_v38 = vpop.f32.mrf.mxu0 }
 0x3f6   :  { %v5688_v45 = vadd.f32 %v5687_v38, %v5600_v42 }
 0x3f7   :  { %v9483_v15 = vpop.f32.mrf.mxu0 }
 0x3f8   :  { %v5769_v9 = vadd.f32 %v5768_v48, %v5688_v45  ;;  %v5956_v48 = vld [vmem:[%s13767_s5 + $0x40] sm:$0xff]  ;;  %v13254_v15 = vand.u32 4294901760, %v5959_v29  ;;  %v15139_v45 = vld [vmem:[#allocation56_spill] sm:$0xff]  ;;  %s9780_s5 = smov 32  }
 0x3fa   :  { %v13275_v44 = vsub.f32 %v5959_v29, %v13254_v15  ;;  %v15146_v29 = vld [vmem:[#allocation75_spill] sm:$0xff] }
 0x3fc   :  { %v6613_v63 = vand.u32 4294901760, %v13275_v44 }
 0x3fe   :  { %v5942_v34 = vpop.f32.mrf.mxu1 }
 0x400   :  { %v9540_v13 = vpop.f32.mrf.mxu1 }
 0x401   :  { %v13265_v13 = vand.u32 4294901760, %v5956_v48 }
 0x403   :  { %v13284_v21 = vsub.f32 %v5956_v48, %v13265_v13  ;;  %v15148_v48 = vld [vmem:[#allocation88_spill] sm:$0xff] }
 0x405   :  { %v6620_v18 = vand.u32 4294901760, %v13284_v21 }
 0x406   :  { %v5863_v23 = vpop.f32.mrf.mxu0 }
 0x407   :  { %v5864_v14 = vadd.f32 %v5863_v23, %v5769_v9  ;;  %v15140_v9 = vld [vmem:[#allocation62_spill] sm:$0xff]  ;;  %v15141_v23 = vld [vmem:[#allocation53_spill] sm:$0xff] }
 0x408   :  { %v9521_v37 = vpop.f32.mrf.mxu0 }
 0x409   :  { %v5943_v6 = vadd.f32 %v5942_v34, %v5864_v14  ;;  %v15133_v34 = vand.u32 4294901760, %v13219_v61  ;;  %v15142_v14 = vld [vmem:[#allocation66_spill] sm:$0xff]  ;;  %v15143_v37 = vld [vmem:[#allocation69_spill] sm:$0xff] }
 0x40b   :  { %v13238_v49 = vmul.f32 0.1, %v5943_v6  ;;  %v15144_v6 = vld [vmem:[#allocation64_spill] sm:$0xff] }
 0x40d   :  { %15125 = vst [vmem:[#allocation132_spill] sm:$0xff] %v13238_v49  ;;  %v5962_v31 = vsel %vm5960_vm4, %v13238_v49, 0 }
 0x40e   :  { %v13245_v4 = vand.u32 4294901760, %v5962_v31 }
 0x410   :  { %v13251_v38 = vsub.f32 %v5962_v31, %v13245_v4  ;;  %6154 = vmatmul.mubr.f32.vlgmr.msra.gmra.mxu1 %v13245_v4  ;;  %v15145_v31 = vld [vmem:[#allocation49_spill] sm:$0xff] }
 0x411   :  { %6276 = vmatpush1.msra.mxu1 %v13140_v7  ;;  %6321 = vmatprep.mubr.f32.mxu1 %v15113_v26 }
 0x412   :  { %6278 = vmatprep.subr.mxu1 %v13148_v59  ;;  %v13263_v46 = vand.u32 4294901760, %v13251_v38 }
 0x413   :  { %6280 = vmatpush1.msra.mxu1 %v13157_v17 }
 0x414   :  { %6282 = vmatprep.subr.mxu1 %v13167_v32  ;;  %v6040_v42 = vsub.f32 %v13251_v38, %v13263_v46 }
 0x415   :  { %6284 = vmatpush1.msra.mxu1 %v13177_v54 }
 0x416   :  { %6286 = vmatprep.subr.mxu1 %v13190_v40  ;;  %v13281_v36 = vand.u32 4294901760, %v6040_v42  ;;  %v15155_v42 = vld [vmem:[#allocation84_spill] sm:$0xff] }
 0x417   :  { %6288 = vmatpush1.msra.mxu1 %v13203_v16 }
 0x418   :  { %6325 = vmatmul.mubr.f32.vlgmr.msra.gmra.mxu1 %v13263_v46  ;;  %6452 = vmatprep.subr.mxu1 %v13135_v19  ;;  %v6614_v19 = vsub.f32 %v13275_v44, %v6613_v63 }
 0x419   :  { %6042 = vmatmul.mubr.f32.vlgmr.msra.gmra.mxu0 %v13281_v36  ;;  %6454 = vmatpush1.msra.mxu1 %v13140_v7  ;;  %v6627_v7 = vand.u32 4294901760, %v13293_v55 }
 0x41a   :  { %6189 = vmatpush1.msra.mxu0 %v13155_v39  ;;  %6456 = vmatprep.subr.mxu1 %v13148_v59  ;;  %v6621_v59 = vsub.f32 %v13284_v21, %v6620_v18 }
 0x41b   :  { %6192 = vmatprep.subr.mxu0 %v13165_v12  ;;  %6458 = vmatpush1.msra.mxu1 %v13157_v17  ;;  %v6634_v17 = vand.u32 4294901760, %v13301_v60  ;;  %v15132_v12 = vand.u32 4294901760, %v13211_v33 }
 0x41c   :  { %6195 = vmatpush1.msra.mxu0 %v13175_v8  ;;  %6460 = vmatprep.subr.mxu1 %v13167_v32  ;;  %v6615_v32 = vand.u32 4294901760, %v6614_v19  ;;  %v6622_v27 = vand.u32 4294901760, %v6621_v59  ;;  %v15165_v19 = vld [vmem:[#allocation123_spill] sm:$0xff] }
 0x41d   :  { %6198 = vmatprep.subr.mxu0 %v13188_v11  ;;  %6462 = vmatpush1.msra.mxu1 %v13177_v54  ;;  %v6628_v54 = vsub.f32 %v13293_v55, %v6627_v7  ;;  %v6635_v24 = vsub.f32 %v13301_v60, %v6634_v17  ;;  %v15135_v11 = vld [vmem:[#allocation131_spill] sm:$0xff] }
 0x41e   :  { %6201 = vmatpush1.msra.mxu0 %v13201_v25  ;;  %6464 = vmatprep.subr.mxu1 %v13190_v40  ;;  %v15126_v40 = vand.u32 4294901760, %v13146_v22  ;;  %v15129_v22 = vand.u32 4294901760, %v13175_v8  ;;  %v15134_v8 = vld [vmem:[#allocation127_spill] sm:$0xff] }
 0x41f   :  { %6204 = vmatprep.subr.mxu0 %v13211_v33  ;;  %6240 = vmatprep.mubr.f32.mxu0 %v15113_v26  ;;  %v6629_v47 = vand.u32 4294901760, %v6628_v54  ;;  %v6636_v28 = vand.u32 4294901760, %v6635_v24  ;;  %v15137_v33 = vld [vmem:[#allocation37_spill] sm:$0xff]  ;;  %v15167_v59 = vld [vmem:[#allocation35_spill] sm:$0xff]  ;;  %v15173_v24 = vld [vmem:[#allocation48_spill] sm:$0xff] }
 0x420   :  { %6207 = vmatpush1.msra.mxu0 %v13219_v61  ;;  %6466 = vmatpush1.msra.mxu1 %v13203_v16  ;;  %v15127_v16 = vand.u32 4294901760, %v13155_v39  ;;  %v15131_v39 = vand.u32 4294901760, %v13201_v25  ;;  %v15136_v25 = vld [vmem:[#allocation36_spill] sm:$0xff]  ;;  %v15170_v54 = vld [vmem:[#allocation31_spill] sm:$0xff] }
 0x421   :  { %6499 = vmatprep.mubr.f32.mxu1 %v15113_v26  ;;  %6243 = vmatmul.mubr.f32.vlgmr.msra.gmra.mxu0 %v13251_v38  ;;  %v15138_v61 = vld [vmem:[#allocation40_spill] sm:$0xff] }
 0x422   :  { %6358 = vmatprep.subr.mxu0 %v15126_v40  ;;  %6501 = vmatmul.mubr.f32.vlgmr.msra.gmra.mxu1 %v13245_v4  ;;  %v15171_v40 = vld [vmem:[#allocation54_spill] sm:$0xff] }
 0x423   :  { %9552 = vmatprep.subr.mxu1 %v15113_v26  ;;  %6362 = vmatpush1.msra.mxu0 %v15127_v16  ;;  %v15174_v16 = vld [vmem:[#allocation39_spill] sm:$0xff] }
 0x424   :  { %9553 = vmatpush3.msra.mxu1 %v6615_v32  ;;  %6366 = vmatprep.subr.mxu0 %v15128_v51  ;;  %v15169_v32 = vld [vmem:[#allocation45_spill] sm:$0xff]  ;;  %v15175_v51 = vld [vmem:[#allocation58_spill] sm:$0xff] }
 0x425   :  { %9554 = vmatprep.subr.mxu1 %v15113_v26  ;;  %6370 = vmatpush1.msra.mxu0 %v15129_v22  ;;  %v15177_v22 = vld [vmem:[#allocation50_spill] sm:$0xff] }
 0x426   :  { %9555 = vmatpush3.msra.mxu1 %v6622_v27  ;;  %6374 = vmatprep.subr.mxu0 %v15130_v62  ;;  %v15172_v27 = vld [vmem:[#allocation34_spill] sm:$0xff]  ;;  %v15178_v62 = vld [vmem:[#allocation135_spill] sm:$0xff] }
 0x427   :  { %9556 = vmatprep.subr.mxu1 %v15113_v26  ;;  %6378 = vmatpush1.msra.mxu0 %v15131_v39  ;;  %v15180_v39 = vld [vmem:[#allocation134_spill] sm:$0xff] }
 0x428   :  { %9557 = vmatpush3.msra.mxu1 %v6629_v47  ;;  %6382 = vmatprep.subr.mxu0 %v15132_v12  ;;  %v15176_v47 = vld [vmem:[#allocation136_spill] sm:$0xff]  ;;  %v15181_v12 = vld [vmem:[#allocation71_spill] sm:$0xff] }
 0x429   :  { %9558 = vmatprep.subr.mxu1 %v15113_v26  ;;  %6386 = vmatpush1.msra.mxu0 %v15133_v34  ;;  %v15182_v34 = vld [vmem:[#allocation44_spill] sm:$0xff] }
 0x42a   :  { %6419 = vmatprep.mubr.f32.mxu0 %v15113_v26  ;;  %9559 = vmatpush3.msra.mxu1 %v6636_v28  ;;  %v15179_v28 = vld [vmem:[#allocation51_spill] sm:$0xff] }
 0x42b   :  { %9560 = vmatprep.mubr.msk.f32.mxu1 %vm9779_vm2, %v15113_v26  ;;  %6421 = vmatmul.mubr.f32.vlgmr.msra.gmra.mxu0 %v13245_v4 }
 0x42c   :  { %9541 = vmatprep.subr.mxu0 %v15113_v26  ;;  %9561 = vmatmul.mubr.f32.vlgmr.msra.gmra.mxu1 %v13245_v4 }
 0x42d   :  { %9574 = vmatprep.subr.mxu1 %v15113_v26  ;;  %9542 = vmatpush3.msra.mxu0 %v13254_v15 }
 0x42e   :  { %9575 = vmatpush3.msra.mxu1 %v13254_v15  ;;  %9543 = vmatprep.subr.mxu0 %v15113_v26 }
 0x42f   :  { %9576 = vmatprep.subr.mxu1 %v15113_v26  ;;  %9544 = vmatpush3.msra.mxu0 %v13265_v13 }
 0x430   :  { %9577 = vmatpush3.msra.mxu1 %v13265_v13  ;;  %9545 = vmatprep.subr.mxu0 %v15113_v26 }
 0x431   :  { %9578 = vmatprep.subr.mxu1 %v15113_v26  ;;  %9546 = vmatpush3.msra.mxu0 %v13277_v0 }
 0x432   :  { %9579 = vmatpush3.msra.mxu1 %v13277_v0  ;;  %9547 = vmatprep.subr.mxu0 %v15113_v26 }
 0x433   :  { %9580 = vmatprep.subr.mxu1 %v15113_v26  ;;  %9548 = vmatpush3.msra.mxu0 %v13286_v3 }
 0x434   :  { %9549 = vmatprep.mubr.msk.f32.mxu0 %vm9779_vm2, %v15113_v26  ;;  %9581 = vmatpush3.msra.mxu1 %v13286_v3 }
 0x435   :  { %9582 = vmatprep.mubr.msk.f32.mxu1 %vm9779_vm2, %v15113_v26  ;;  %9550 = vmatmul.mubr.f32.vlgmr.msra.gmra.mxu0 %v13281_v36  ;;  %v15158_v36 = vld [vmem:[#allocation11_spill] sm:$0xff] }
 0x436   :  { %9563 = vmatprep.subr.mxu0 %v15113_v26  ;;  %9583 = vmatmul.mubr.f32.vlgmr.msra.gmra.mxu1 %v13263_v46  ;;  %v15152_v46 = vld [vmem:[#allocation100_spill] sm:$0xff] }
 0x437   :  { %9596 = vmatprep.subr.mxu1 %v15113_v26  ;;  %9564 = vmatpush3.msra.mxu0 %v13275_v44  ;;  %v15156_v44 = vld [vmem:[#allocation12_spill] sm:$0xff] }
 0x438   :  { %9597 = vmatpush3.msra.mxu1 %v13254_v15  ;;  %9565 = vmatprep.subr.mxu0 %v15113_v26  ;;  %v15150_v15 = vld [vmem:[#allocation103_spill] sm:$0xff] }
 0x439   :  { %9598 = vmatprep.subr.mxu1 %v15113_v26  ;;  %9566 = vmatpush3.msra.mxu0 %v13284_v21  ;;  %v15159_v21 = vld [vmem:[#allocation96_spill] sm:$0xff] }
 0x43a   :  { %9599 = vmatpush3.msra.mxu1 %v13265_v13  ;;  %9567 = vmatprep.subr.mxu0 %v15113_v26  ;;  %v15153_v13 = vld [vmem:[#allocation83_spill] sm:$0xff] }
 0x43b   :  { %9600 = vmatprep.subr.mxu1 %v15113_v26  ;;  %9568 = vmatpush3.msra.mxu0 %v13293_v55  ;;  %v15162_v55 = vld [vmem:[#allocation28_spill] sm:$0xff] }
 0x43c   :  { %9601 = vmatpush3.msra.mxu1 %v13277_v0  ;;  %9569 = vmatprep.subr.mxu0 %v15113_v26  ;;  %v15157_v0 = vld [vmem:[#allocation91_spill] sm:$0xff] }
 0x43d   :  { %9602 = vmatprep.subr.mxu1 %v15113_v26  ;;  %9570 = vmatpush3.msra.mxu0 %v13301_v60  ;;  %v15164_v60 = vld [vmem:[#allocation22_spill] sm:$0xff] }
 0x43e   :  { %9571 = vmatprep.mubr.msk.f32.mxu0 %vm9779_vm2, %v15113_v26  ;;  %9603 = vmatpush3.msra.mxu1 %v13286_v3  ;;  %v15160_v3 = vld [vmem:[#allocation18_spill] sm:$0xff] }
 0x43f   :  { %9604 = vmatprep.mubr.msk.f32.mxu1 %vm9779_vm2, %v15113_v26  ;;  %9572 = vmatmul.mubr.f32.vlgmr.msra.gmra.mxu0 %v13251_v38  ;;  %v15149_v38 = vld [vmem:[#allocation77_spill] sm:$0xff] }
 0x440   :  { %9585 = vmatprep.subr.mxu0 %v15113_v26  ;;  %9605 = vmatmul.mubr.f32.vlgmr.msra.gmra.mxu1 %v13245_v4 }
 0x441   :  { %9586 = vmatpush3.msra.mxu0 %v6613_v63  ;;  %9593 = vmatprep.mubr.msk.f32.mxu0 %vm9779_vm2, %v15113_v26  ;;  %v15161_v63 = vld [vmem:[#allocation107_spill] sm:$0xff] }
 0x442   :  { %9587 = vmatprep.subr.mxu0 %v15113_v26  ;;  %9042 = vmatprep.subr.mxu1 %v15134_v8  ;;  %v15183_v8 = vld [vmem:[#allocation74_spill] sm:$0xff] }
 0x443   :  { %9588 = vmatpush3.msra.mxu0 %v6620_v18  ;;  %9043 = vmatpush3.msra.mxu1 %v15135_v11  ;;  %v15163_v18 = vld [vmem:[#allocation113_spill] sm:$0xff]  ;;  %v15184_v11 = vld [vmem:[#allocation47_spill] sm:$0xff] }
 0x444   :  { %9589 = vmatprep.subr.mxu0 %v15113_v26  ;;  %9044 = vmatprep.subr.mxu1 %v15136_v25  ;;  %v15185_v25 = vld [vmem:[#allocation87_spill] sm:$0xff] }
 0x445   :  { %9590 = vmatpush3.msra.mxu0 %v6627_v7  ;;  %9045 = vmatpush3.msra.mxu1 %v15137_v33  ;;  %v15166_v7 = vld [vmem:[#allocation25_spill] sm:$0xff] }
 0x446   :  { %9591 = vmatprep.subr.mxu0 %v15113_v26  ;;  %9046 = vmatprep.subr.mxu1 %v15138_v61  ;;  %v15186_v33 = vld [vmem:[#allocation133_spill] sm:$0xff] }
 0x447   :  { %9592 = vmatpush3.msra.mxu0 %v6634_v17  ;;  %9047 = vmatpush3.msra.mxu1 %v15139_v45  ;;  %v15168_v17 = vld [vmem:[#allocation29_spill] sm:$0xff] }
 0x448   :  { %9594 = vmatmul.mubr.f32.vlgmr.msra.gmra.mxu0 %v13245_v4  ;;  %9048 = vmatprep.subr.mxu1 %v15140_v9  ;;  %v15147_v4 = vld [vmem:[#allocation60_spill] sm:$0xff]  ;;  %v15187_v61 = vld [vmem:[#allocation93_spill] sm:$0xff] }
 0x449   :  { %9049 = vmatpush3.msra.mxu1 %v15141_v23  ;;  %9007 = vmatprep.subr.mxu0 %v12116_v10  ;;  %v15188_v45 = vld [vmem:[#allocation101_spill] sm:$0xff]  ;;  %v15190_v23 = vld [vmem:[#allocation110_spill] sm:$0xff] }
 0x44a   :  { %9050 = vmatprep.subr.mxu1 %v15142_v14  ;;  %9008 = vmatpush3.msra.mxu0 %v12123_v2  ;;  %v15189_v9 = vld [vmem:[#allocation109_spill] sm:$0xff]  ;;  %v15191_v14 = vld [vmem:[#allocation102_spill] sm:$0xff] }
 0x44b   :  { %9051 = vmatpush3.msra.mxu1 %v15143_v37  ;;  %9009 = vmatprep.subr.mxu0 %v12127_v57  ;;  %v15192_v37 = vld [vmem:[#allocation117_spill] sm:$0xff] }
 0x44c   :  { %9052 = vmatprep.subr.mxu1 %v15144_v6  ;;  %9010 = vmatpush3.msra.mxu0 %v15145_v31  ;;  %v15193_v6 = vld [vmem:[#allocation121_spill] sm:$0xff] }
 0x44d   :  { %9053 = vmatpush3.msra.mxu1 %v15146_v29  ;;  %9011 = vmatprep.subr.mxu0 %v15147_v4  ;;  %v15194_v29 = vld [vmem:[#allocation128_spill] sm:$0xff] }
 0x44e   :  { %9054 = vmatprep.subr.mxu1 %v15148_v48  ;;  %9012 = vmatpush3.msra.mxu0 %v15149_v38  ;;  %v15195_v48 = vld [vmem:[#allocation61_spill] sm:$0xff] }
 0x44f   :  { %9055 = vmatpush3.msra.mxu1 %v15150_v15  ;;  %9013 = vmatprep.subr.mxu0 %v15151_v20 }
 0x450   :  { %9056 = vmatprep.subr.mxu1 %v15152_v46  ;;  %9014 = vmatpush3.msra.mxu0 %v15153_v13 }
 0x451   :  { %9057 = vmatpush3.msra.mxu1 %v15154_v35  ;;  %9015 = vmatprep.subr.mxu0 %v15155_v42 }
 0x452   :  { %9058 = vmatprep.subr.mxu1 %v15156_v44  ;;  %9016 = vmatpush3.msra.mxu0 %v15157_v0 }
 0x453   :  { %9059 = vmatpush3.msra.mxu1 %v15158_v36  ;;  %9017 = vmatprep.subr.mxu0 %v15159_v21 }
 0x454   :  { %9060 = vmatprep.subr.mxu1 %v15160_v3  ;;  %9018 = vmatpush3.msra.mxu0 %v15161_v63 }
 0x455   :  { %9061 = vmatpush3.msra.mxu1 %v15162_v55  ;;  %9019 = vmatprep.subr.mxu0 %v15163_v18 }
 0x456   :  { %9062 = vmatprep.subr.mxu1 %v15164_v60  ;;  %9020 = vmatpush3.msra.mxu0 %v15165_v19 }
 0x457   :  { %9063 = vmatpush3.msra.mxu1 %v15166_v7  ;;  %9021 = vmatprep.subr.mxu0 %v15167_v59 }
 0x458   :  { %9064 = vmatprep.subr.mxu1 %v15168_v17  ;;  %9022 = vmatpush3.msra.mxu0 %v15169_v32 }
 0x459   :  { %9065 = vmatpush3.msra.mxu1 %v15170_v54  ;;  %9023 = vmatprep.subr.mxu0 %v15171_v40 }
 0x45a   :  { %9066 = vmatprep.subr.mxu1 %v15172_v27  ;;  %9024 = vmatpush3.msra.mxu0 %v15173_v24 }
 0x45b   :  { %9067 = vmatpush3.msra.mxu1 %v15174_v16  ;;  %9025 = vmatprep.subr.mxu0 %v15175_v51 }
 0x45c   :  { %9068 = vmatprep.subr.mxu1 %v15176_v47  ;;  %9026 = vmatpush3.msra.mxu0 %v15177_v22 }
 0x45d   :  { %9069 = vmatpush3.msra.mxu1 %v15178_v62  ;;  %9027 = vmatprep.subr.mxu0 %v15179_v28 }
 0x45e   :  { %9070 = vmatprep.subr.mxu1 %v15180_v39  ;;  %9028 = vmatpush3.msra.mxu0 %v15181_v12 }
 0x45f   :  { %9071 = vmatpush3.msra.mxu1 %v15182_v34  ;;  %9029 = vmatprep.subr.mxu0 %v15183_v8 }
 0x460   :  { %9072 = vmatprep.subr.mxu1 %v15184_v11  ;;  %9030 = vmatpush3.msra.mxu0 %v15185_v25 }
 0x461   :  { %9073 = vmatpush3.msra.mxu1 %v15186_v33  ;;  %9031 = vmatprep.subr.mxu0 %v15187_v61 }
 0x462   :  { %9112 = vmatprep.subr.mxu1 %v12116_v10  ;;  %9032 = vmatpush3.msra.mxu0 %v15188_v45 }
 0x463   :  { %9033 = vmatprep.subr.mxu0 %v15189_v9 }
 0x464   :  { %9034 = vmatpush3.msra.mxu0 %v15190_v23 }
 0x465   :  { %9035 = vmatprep.subr.mxu0 %v15191_v14 }
 0x466   :  { %9036 = vmatpush3.msra.mxu0 %v15192_v37 }
 0x467   :  { %9037 = vmatprep.subr.mxu0 %v15193_v6 }
 0x468   :  { %9038 = vmatpush3.msra.mxu0 %v15194_v29 }
 0x469   :  { %9077 = vmatprep.subr.mxu0 %v15195_v48 }
 0x4d0   :  { %v6155_v15 = vpop.f32.mrf.mxu1 }
 0x4d2   :  { %v6157_v35 = vpop.f32.mrf.mxu1 }
 0x4d8   :  { %v6326_v36 = vpop.f32.mrf.mxu1 }
 0x4d9   :  { %v6043_v46 = vpop.f32.mrf.mxu0 }
 0x4da   :  { %v6156_v55 = vadd.f32 %v6155_v15, %v6043_v46  ;;  %v6328_v60 = vpop.f32.mrf.mxu1  ;;  %v15197_v46 = vld [vmem:[#allocation23_spill] sm:$0xff] }
 0x4db   :  { %v6045_v44 = vpop.f32.mrf.mxu0 }
 0x4dc   :  { %v6158_v17 = vadd.f32 %v6157_v35, %v6045_v44 }
 0x4e1   :  { %v6244_v3 = vpop.f32.mrf.mxu0 }
 0x4e2   :  { %v6245_v54 = vadd.f32 %v6244_v3, %v6156_v55  ;;  %v6502_v27 = vpop.f32.mrf.mxu1 }
 0x4e3   :  { %v6246_v7 = vpop.f32.mrf.mxu0 }
 0x4e4   :  { %v6247_v16 = vadd.f32 %v6246_v7, %v6158_v17  ;;  %v6504_v47 = vpop.f32.mrf.mxu1  ;;  %v6327_v62 = vadd.f32 %v6326_v36, %v6245_v54 }
 0x4e6   :  { %v6329_v33 = vadd.f32 %v6328_v60, %v6247_v16 }
 0x4eb   :  { %v6422_v39 = vpop.f32.mrf.mxu0 }
 0x4ec   :  { %v6423_v34 = vadd.f32 %v6422_v39, %v6327_v62  ;;  %v6673_v11 = vpop.f32.mrf.mxu1 }
 0x4ed   :  { %v6424_v48 = vpop.f32.mrf.mxu0 }
 0x4ee   :  { %v6503_v49 = vadd.f32 %v6502_v27, %v6423_v34  ;;  %v6425_v1 = vadd.f32 %v6424_v48, %v6329_v33  ;;  %v9562_v30 = vpop.f32.mrf.mxu1  ;;  %v15198_v34 = vld [vmem:[#allocation68_spill] sm:$0xff]  ;;  %v15199_v33 = vld [vmem:[#allocation73_spill] sm:$0xff] }
 0x4ef   :  { %v15200_v48 = vld [vmem:[#allocation76_spill] sm:$0xff] }
 0x4f0   :  { %v6992_v5 = vsub.f32 %v15196_v58, %v6503_v49  ;;  %v6505_v56 = vadd.f32 %v6504_v47, %v6425_v1 }
 0x4f2   :  { %v6995_v15 = vmul.f32 %v6992_v5, %v6992_v5  ;;  %v6993_v43 = vsub.f32 %v15197_v46, %v6505_v56  ;;  %v15202_v46 = vld [vmem:[#allocation90_spill] sm:$0xff] }
 0x4f4   :  { %v13484_v35 = vand.u32 4294901760, %v6995_v15  ;;  %v6996_v44 = vmul.f32 %v6993_v43, %v6993_v43 }
 0x4f5   :  { %v6582_v3 = vpop.f32.mrf.mxu0 }
 0x4f6   :  { %v13487_v36 = vsub.f32 %v6995_v15, %v13484_v35  ;;  %v13489_v55 = vand.u32 4294901760, %v6996_v44  ;;  %v6674_v60 = vadd.f32 %v6673_v11, %v6582_v3  ;;  %v6830_v7 = vpop.f32.mrf.mxu1  ;;  %v15201_v15 = vld [vmem:[#allocation79_spill] sm:$0xff] }
 0x4f7   :  { %v9551_v17 = vpop.f32.mrf.mxu0 }
 0x4f8   :  { %v7098_v30 = vsub.f32 %v6996_v44, %v13489_v55  ;;  %v9584_v54 = vpop.f32.mrf.mxu1  ;;  %7338 = vmatprep.mubr.f32.mxu1 %v13489_v55  ;;  %v7105_v1 = vand.u32 4294901760, %v13487_v36  ;;  %v15203_v44 = vld [vmem:[#allocation124_spill] sm:$0xff] }
 0x4f9   :  { %7340 = vmatmul.mubr.f32.vlgmr.msra.gmra.mxu1 %v13484_v35  ;;  %v15205_v17 = vld [vmem:[#allocation116_spill] sm:$0xff] }
 0x4fa   :  { %9113 = vmatpush3.msra.mxu1 %v12123_v2  ;;  %v7099_v56 = vand.u32 4294901760, %v7098_v30  ;;  %v7106_v58 = vsub.f32 %v13487_v36, %v7105_v1  ;;  %v15206_v54 = vld [vmem:[#allocation8_spill] sm:$0xff] }
 0x4fb   :  { %9114 = vmatprep.subr.mxu1 %v12127_v57 }
 0x4fc   :  { %9115 = vmatpush3.msra.mxu1 %v15145_v31  ;;  %7582 = vmatprep.mubr.f32.mxu1 %v7099_v56  ;;  %v7100_v5 = vsub.f32 %v7098_v30, %v7099_v56  ;;  %v7107_v27 = vand.u32 4294901760, %v7106_v58  ;;  %v15207_v58 = vld [vmem:[#allocation119_spill] sm:$0xff] }
 0x4fd   :  { %9116 = vmatprep.subr.mxu1 %v15147_v4 }
 0x4fe   :  { %9117 = vmatpush3.msra.mxu1 %v15149_v38  ;;  %v7101_v43 = vand.u32 4294901760, %v7100_v5  ;;  %v15208_v5 = vld [vmem:[#allocation122_spill] sm:$0xff] }
 0x4ff   :  { %v6753_v49 = vpop.f32.mrf.mxu0  ;;  %9118 = vmatprep.subr.mxu1 %v15151_v20 }
 0x500   :  { %v6754_v16 = vadd.f32 %v6753_v49, %v6674_v60  ;;  %v6988_v47 = vpop.f32.mrf.mxu1  ;;  %9119 = vmatpush3.msra.mxu1 %v15153_v13  ;;  %7102 = vmatprep.mubr.f32.mxu0 %v7101_v43  ;;  %v15204_v60 = vld [vmem:[#allocation114_spill] sm:$0xff]  ;;  %v15210_v49 = vld [vmem:[#allocation43_spill] sm:$0xff] }
 0x501   :  { %v9573_v62 = vpop.f32.mrf.mxu0  ;;  %9120 = vmatprep.subr.mxu1 %v15155_v42  ;;  %7108 = vmatmul.mubr.f32.vlgmr.msra.gmra.mxu0 %v7107_v27  ;;  %v15209_v43 = vld [vmem:[#allocation130_spill] sm:$0xff]  ;;  %v15211_v27 = vld [vmem:[#allocation55_spill] sm:$0xff] }
 0x502   :  { %v9606_v39 = vpop.f32.mrf.mxu1  ;;  %9078 = vmatpush3.msra.mxu0 %v15198_v34  ;;  %9121 = vmatpush3.msra.mxu1 %v15157_v0  ;;  %v6831_v11 = vadd.f32 %v6830_v7, %v6754_v16  ;;  %v15212_v16 = vld [vmem:[#allocation52_spill] sm:$0xff]  ;;  %v15214_v62 = vld [vmem:[#allocation67_spill] sm:$0xff] }
 0x503   :  { %9079 = vmatprep.subr.mxu0 %v15199_v33  ;;  %7475 = vmatprep.mubr.f32.mxu0 %v7098_v30  ;;  %v15215_v39 = vld [vmem:[#allocation70_spill] sm:$0xff]  ;;  %v15216_v34 = vld [vmem:[#allocation63_spill] sm:$0xff] }
 0x504   :  { %9122 = vmatprep.subr.mxu1 %v15159_v21  ;;  %9080 = vmatpush3.msra.mxu0 %v15200_v48  ;;  %v15218_v33 = vld [vmem:[#allocation99_spill] sm:$0xff]  ;;  %v15219_v48 = vld [vmem:[#allocation108_spill] sm:$0xff] }
 0x505   :  { %9123 = vmatpush3.msra.mxu1 %v15161_v63  ;;  %9081 = vmatprep.subr.mxu0 %v15201_v15  ;;  %v15220_v15 = vld [vmem:[#allocation98_spill] sm:$0xff] }
 0x506   :  { %9124 = vmatprep.subr.mxu1 %v15163_v18  ;;  %9082 = vmatpush3.msra.mxu0 %v15202_v46  ;;  %v15221_v46 = vld [vmem:[#allocation112_spill] sm:$0xff] }
 0x507   :  { %9125 = vmatpush3.msra.mxu1 %v15165_v19  ;;  %9083 = vmatprep.subr.mxu0 %v15203_v44  ;;  %v15222_v44 = vld [vmem:[#allocation104_spill] sm:$0xff] }
 0x508   :  { %v6913_v3 = vpop.f32.mrf.mxu0  ;;  %9126 = vmatprep.subr.mxu1 %v15167_v59  ;;  %9084 = vmatpush3.msra.mxu0 %v15204_v60  ;;  %v15224_v60 = vld [vmem:[#allocation126_spill] sm:$0xff] }
 0x509   :  { %v6914_v7 = vadd.f32 %v6913_v3, %v6831_v11  ;;  %9127 = vmatpush3.msra.mxu1 %v15169_v32  ;;  %9085 = vmatprep.subr.mxu0 %v15205_v17  ;;  %v15217_v11 = vld [vmem:[#allocation72_spill] sm:$0xff]  ;;  %v15259_v17 = vld [vmem:[#allocation154_spill] sm:$0xff] }
 0x50a   :  { %v9595_v30 = vpop.f32.mrf.mxu0  ;;  %9128 = vmatprep.subr.mxu1 %v15171_v40  ;;  %9086 = vmatpush3.msra.mxu0 %v15206_v54  ;;  %v15223_v3 = vld [vmem:[#allocation120_spill] sm:$0xff]  ;;  %v15261_v54 = vld [vmem:[#allocation27_spill] sm:$0xff] }
 0x50b   :  { %v13523_v56 = vadd.f32 %v6988_v47, %v6914_v7  ;;  %9129 = vmatpush3.msra.mxu1 %v15173_v24  ;;  %9087 = vmatprep.subr.mxu0 %v15207_v58  ;;  %v15213_v47 = vld [vmem:[#allocation65_spill] sm:$0xff]  ;;  %v15263_v58 = vld [vmem:[#allocation30_spill] sm:$0xff] }
 0x50c   :  { %9130 = vmatprep.subr.mxu1 %v15175_v51  ;;  %9088 = vmatpush3.msra.mxu0 %v15208_v5  ;;  %v15225_v7 = vld [vmem:[#allocation9_spill] sm:$0xff] }
 0x50d   :  { %9131 = vmatpush3.msra.mxu1 %v15177_v22  ;;  %9089 = vmatprep.subr.mxu0 %v15209_v43  ;;  %v15264_v5 = vld [vmem:[#allocation33_spill] sm:$0xff]  ;;  %v15265_v43 = vld [vmem:[#allocation159_spill] sm:$0xff] }
 0x50e   :  { %9132 = vmatprep.subr.mxu1 %v15179_v28  ;;  %9090 = vmatpush3.msra.mxu0 %v15210_v49 }
 0x50f   :  { %9133 = vmatpush3.msra.mxu1 %v15181_v12  ;;  %9091 = vmatprep.subr.mxu0 %v15211_v27  ;;  %v15266_v27 = vld [vmem:[#allocation161_spill] sm:$0xff] }
 0x510   :  { %9134 = vmatprep.subr.mxu1 %v15183_v8  ;;  %9092 = vmatpush3.msra.mxu0 %v15212_v16  ;;  %v15267_v16 = vld [vmem:[#allocation162_spill] sm:$0xff] }
 0x511   :  { %9135 = vmatpush3.msra.mxu1 %v15185_v25  ;;  %9093 = vmatprep.subr.mxu0 %v15213_v47  ;;  %v15268_v47 = vld [vmem:[#allocation163_spill] sm:$0xff] }
 0x512   :  { %9136 = vmatprep.subr.mxu1 %v15187_v61  ;;  %9094 = vmatpush3.msra.mxu0 %v15214_v62  ;;  %v15269_v62 = vld [vmem:[#allocation138_spill] sm:$0xff] }
 0x513   :  { %9137 = vmatpush3.msra.mxu1 %v15188_v45  ;;  %9095 = vmatprep.subr.mxu0 %v15215_v39  ;;  %v15270_v39 = vld [vmem:[#allocation164_spill] sm:$0xff] }
 0x514   :  { %9138 = vmatprep.subr.mxu1 %v15189_v9  ;;  %9096 = vmatpush3.msra.mxu0 %v15216_v34 }
 0x515   :  { %9139 = vmatpush3.msra.mxu1 %v15190_v23  ;;  %9097 = vmatprep.subr.mxu0 %v15217_v11  ;;  %v15271_v11 = vld [vmem:[#allocation141_spill] sm:$0xff] }
 0x516   :  { %9140 = vmatprep.subr.mxu1 %v15191_v14  ;;  %9098 = vmatpush3.msra.mxu0 %v15218_v33  ;;  %v15272_v33 = vld [vmem:[#allocation144_spill] sm:$0xff] }
 0x517   :  { %9141 = vmatpush3.msra.mxu1 %v15192_v37  ;;  %9099 = vmatprep.subr.mxu0 %v15219_v48 }
 0x518   :  { %9142 = vmatprep.subr.mxu1 %v15193_v6  ;;  %9100 = vmatpush3.msra.mxu0 %v15220_v15  ;;  %v15273_v15 = vld [vmem:[#allocation147_spill] sm:$0xff] }
 0x519   :  { %9143 = vmatpush3.msra.mxu1 %v15194_v29  ;;  %9101 = vmatprep.subr.mxu0 %v15221_v46  ;;  %v15274_v46 = vld [vmem:[#allocation150_spill] sm:$0xff] }
 0x51a   :  { %7586 = vmatmul.mubr.f32.vlgmr.msra.gmra.mxu1 %v7105_v1  ;;  %9182 = vmatprep.subr.mxu1 %v12116_v10  ;;  %v15226_v1 = vld [vmem:[#allocation16_spill] sm:$0xff]  ;;  %v15227_v10 = vld [vmem:[#allocation19_spill] sm:$0xff] }
 0x51b   :  { %9102 = vmatpush3.msra.mxu0 %v15222_v44  ;;  %9183 = vmatpush3.msra.mxu1 %v12123_v2  ;;  %v15228_v2 = vld [vmem:[#allocation21_spill] sm:$0xff] }
 0x51c   :  { %7856 = vmatprep.mubr.f32.mxu1 %v13489_v55  ;;  %9103 = vmatprep.subr.mxu0 %v15223_v3  ;;  %v15275_v3 = vld [vmem:[#allocation17_spill] sm:$0xff] }
 0x51d   :  { %9184 = vmatprep.subr.mxu1 %v12127_v57  ;;  %9104 = vmatpush3.msra.mxu0 %v15224_v60  ;;  %v15229_v57 = vld [vmem:[#allocation80_spill] sm:$0xff]  ;;  %v15276_v60 = vld [vmem:[#allocation15_spill] sm:$0xff] }
 0x51e   :  { %9185 = vmatpush3.msra.mxu1 %v15145_v31  ;;  %9105 = vmatprep.subr.mxu0 %v15225_v7  ;;  %v15230_v31 = vld [vmem:[#allocation82_spill] sm:$0xff]  ;;  %v15277_v7 = vld [vmem:[#allocation140_spill] sm:$0xff] }
 0x51f   :  { %9186 = vmatprep.subr.mxu1 %v15147_v4  ;;  %9106 = vmatpush3.msra.mxu0 %v15226_v1  ;;  %v15231_v4 = vld [vmem:[#allocation85_spill] sm:$0xff]  ;;  %v15278_v1 = vld [vmem:[#allocation143_spill] sm:$0xff] }
 0x520   :  { %9187 = vmatpush3.msra.mxu1 %v15149_v38  ;;  %9107 = vmatprep.subr.mxu0 %v15227_v10  ;;  %v15232_v38 = vld [vmem:[#allocation89_spill] sm:$0xff]  ;;  %v15279_v10 = vld [vmem:[#allocation146_spill] sm:$0xff] }
 0x521   :  { %9188 = vmatprep.subr.mxu1 %v15151_v20  ;;  %9108 = vmatpush3.msra.mxu0 %v15228_v2  ;;  %v15233_v20 = vld [vmem:[#allocation94_spill] sm:$0xff]  ;;  %v15280_v2 = vld [vmem:[#allocation149_spill] sm:$0xff] }
 0x522   :  { %9189 = vmatpush3.msra.mxu1 %v15153_v13  ;;  %7478 = vmatmul.mubr.f32.vlgmr.msra.gmra.mxu0 %v13487_v36  ;;  %v15234_v13 = vld [vmem:[#allocation118_spill] sm:$0xff] }
 0x523   :  { %9147 = vmatprep.subr.mxu0 %v15229_v57  ;;  %9190 = vmatprep.subr.mxu1 %v15155_v42  ;;  %v15235_v42 = vld [vmem:[#allocation129_spill] sm:$0xff] }
 0x524   :  { %9148 = vmatpush3.msra.mxu0 %v15230_v31  ;;  %7752 = vmatprep.mubr.f32.mxu0 %v13489_v55  ;;  %v15255_v55 = vld [vmem:[#allocation137_spill] sm:$0xff] }
 0x525   :  { %9191 = vmatpush3.msra.mxu1 %v15157_v0  ;;  %9149 = vmatprep.subr.mxu0 %v15231_v4  ;;  %v15236_v0 = vld [vmem:[#allocation14_spill] sm:$0xff]  ;;  %v15281_v57 = vld [vmem:[#allocation153_spill] sm:$0xff]  ;;  %v15286_v4 = vld [vmem:[#allocation148_spill] sm:$0xff] }
 0x526   :  { %9192 = vmatprep.subr.mxu1 %v15159_v21  ;;  %9150 = vmatpush3.msra.mxu0 %v15232_v38  ;;  %v15237_v21 = vld [vmem:[#allocation32_spill] sm:$0xff]  ;;  %v15285_v31 = vld [vmem:[#allocation145_spill] sm:$0xff] }
 0x527   :  { %9193 = vmatpush3.msra.mxu1 %v15161_v63  ;;  %9151 = vmatprep.subr.mxu0 %v15233_v20  ;;  %v15238_v63 = vld [vmem:[#allocation38_spill] sm:$0xff]  ;;  %v15287_v38 = vld [vmem:[#allocation152_spill] sm:$0xff]  ;;  %v15288_v20 = vld [vmem:[#allocation155_spill] sm:$0xff] }
 0x528   :  { %9194 = vmatprep.subr.mxu1 %v15163_v18  ;;  %9152 = vmatpush3.msra.mxu0 %v15234_v13  ;;  %v15239_v18 = vld [vmem:[#allocation41_spill] sm:$0xff]  ;;  %v15289_v13 = vld [vmem:[#allocation158_spill] sm:$0xff] }
 0x529   :  { %9195 = vmatpush3.msra.mxu1 %v15165_v19  ;;  %9153 = vmatprep.subr.mxu0 %v15235_v42  ;;  %v15240_v19 = vld [vmem:[#allocation42_spill] sm:$0xff]  ;;  %v15290_v42 = vld [vmem:[#allocation160_spill] sm:$0xff] }
 0x52a   :  { %9196 = vmatprep.subr.mxu1 %v15167_v59  ;;  %9154 = vmatpush3.msra.mxu0 %v15236_v0  ;;  %v15241_v59 = vld [vmem:[#allocation46_spill] sm:$0xff] }
 0x52b   :  { %9197 = vmatpush3.msra.mxu1 %v15169_v32  ;;  %9155 = vmatprep.subr.mxu0 %v15237_v21  ;;  %v15242_v32 = vld [vmem:[#allocation59_spill] sm:$0xff] }
 0x52c   :  { %9198 = vmatprep.subr.mxu1 %v15171_v40  ;;  %9156 = vmatpush3.msra.mxu0 %v15238_v63  ;;  %v15243_v40 = vld [vmem:[#allocation57_spill] sm:$0xff] }
 0x52d   :  { %9199 = vmatpush3.msra.mxu1 %v15173_v24  ;;  %9157 = vmatprep.subr.mxu0 %v15239_v18  ;;  %v15244_v24 = vld [vmem:[#allocation78_spill] sm:$0xff] }
 0x52e   :  { %9200 = vmatprep.subr.mxu1 %v15175_v51  ;;  %9158 = vmatpush3.msra.mxu0 %v15240_v19  ;;  %v15245_v51 = vld [vmem:[#allocation86_spill] sm:$0xff] }
 0x52f   :  { %9201 = vmatpush3.msra.mxu1 %v15177_v22  ;;  %9159 = vmatprep.subr.mxu0 %v15241_v59  ;;  %v15246_v22 = vld [vmem:[#allocation92_spill] sm:$0xff] }
 0x530   :  { %9202 = vmatprep.subr.mxu1 %v15179_v28  ;;  %9160 = vmatpush3.msra.mxu0 %v15242_v32  ;;  %v15247_v28 = vld [vmem:[#allocation95_spill] sm:$0xff] }
 0x531   :  { %9203 = vmatpush3.msra.mxu1 %v15181_v12  ;;  %9161 = vmatprep.subr.mxu0 %v15243_v40  ;;  %v15248_v12 = vld [vmem:[#allocation97_spill] sm:$0xff] }
 0x532   :  { %9204 = vmatprep.subr.mxu1 %v15183_v8  ;;  %9162 = vmatpush3.msra.mxu0 %v15244_v24  ;;  %v15249_v8 = vld [vmem:[#allocation105_spill] sm:$0xff] }
 0x533   :  { %9205 = vmatpush3.msra.mxu1 %v15185_v25  ;;  %9163 = vmatprep.subr.mxu0 %v15245_v51  ;;  %v15250_v25 = vld [vmem:[#allocation115_spill] sm:$0xff] }
 0x534   :  { %9206 = vmatprep.subr.mxu1 %v15187_v61  ;;  %9164 = vmatpush3.msra.mxu0 %v15246_v22  ;;  %v15251_v61 = vmax.f32 %v13048_v41, 0.0  ;;  %v15256_v41 = vld [vmem:[#allocation151_spill] sm:$0xff] }
 0x535   :  { %9207 = vmatpush3.msra.mxu1 %v15188_v45  ;;  %9165 = vmatprep.subr.mxu0 %v15247_v28  ;;  %v15252_v45 = vld [vmem:[#allocation106_spill] sm:$0xff] }
 0x536   :  { %9208 = vmatprep.subr.mxu1 %v15189_v9  ;;  %9166 = vmatpush3.msra.mxu0 %v15248_v12  ;;  %v6994_v36 = vsub.f32 %v15251_v61, %v13523_v56  ;;  %v15253_v9 = vld [vmem:[#allocation125_spill] sm:$0xff] }
 0x537   :  { %9209 = vmatpush3.msra.mxu1 %v15190_v23  ;;  %9167 = vmatprep.subr.mxu0 %v15249_v8  ;;  %v15254_v23 = vld [vmem:[#allocation10_spill] sm:$0xff]  ;;  %v15262_v56 = vld [vmem:[#allocation157_spill] sm:$0xff] }
 0x538   :  { %9210 = vmatprep.subr.mxu1 %v15191_v14  ;;  %9168 = vmatpush3.msra.mxu0 %v15250_v25  ;;  %v6997_v14 = vmul.f32 %v6994_v36, %v6994_v36 }
 0x539   :  { %9211 = vmatpush3.msra.mxu1 %v15192_v37  ;;  %9169 = vmatprep.subr.mxu0 %v15252_v45  ;;  %v15257_v37 = vld [vmem:[#allocation26_spill] sm:$0xff] }
 0x53a   :  { %9212 = vmatprep.subr.mxu1 %v15193_v6  ;;  %9170 = vmatpush3.msra.mxu0 %v15253_v9  ;;  %v15258_v6 = vld [vmem:[#allocation20_spill] sm:$0xff]  ;;  %v6999_v30 = vsel %vm1167_vm3, %v6997_v14, 0 }
 0x53b   :  { %9213 = vmatpush3.msra.mxu1 %v15194_v29  ;;  %9171 = vmatprep.subr.mxu0 %v15254_v23  ;;  %v15260_v29 = vld [vmem:[#allocation24_spill] sm:$0xff]  ;;  %v13646_v49 = vand.u32 4294901760, %v6999_v30 }
 0x53c   :  { %7858 = vmatmul.mubr.f32.vlgmr.msra.gmra.mxu1 %v13484_v35  ;;  %9626 = vmatprep.subr.mxu1 %v15113_v26 }
 0x53d   :  { %9172 = vmatpush3.msra.mxu0 %v15255_v55  ;;  %9627 = vmatpush3.msra.mxu1 %v15256_v41 }
 0x53e   :  { %9173 = vmatprep.subr.mxu0 %v15257_v37  ;;  %9628 = vmatprep.subr.mxu1 %v15113_v26 }
 0x53f   :  { %9174 = vmatpush3.msra.mxu0 %v15258_v6  ;;  %9629 = vmatpush3.msra.mxu1 %v15259_v17 }
 0x540   :  { %9175 = vmatprep.subr.mxu0 %v15260_v29  ;;  %9630 = vmatprep.subr.mxu1 %v15113_v26 }
 0x541   :  { %9176 = vmatpush3.msra.mxu0 %v15261_v54  ;;  %9631 = vmatpush3.msra.mxu1 %v15262_v56 }
 0x542   :  { %9177 = vmatprep.subr.mxu0 %v15263_v58  ;;  %9632 = vmatprep.subr.mxu1 %v15113_v26 }
 0x543   :  { %9178 = vmatpush3.msra.mxu0 %v15264_v5  ;;  %9633 = vmatpush3.msra.mxu1 %v15265_v43 }
 0x544   :  { %7754 = vmatmul.mubr.f32.vlgmr.msra.gmra.mxu0 %v13484_v35  ;;  %9607 = vmatprep.subr.mxu0 %v15113_v26  ;;  %v13657_v35 = vsub.f32 %v6999_v30, %v13646_v49 }
 0x545   :  { %9634 = vmatprep.subr.mxu1 %v15113_v26  ;;  %9608 = vmatpush3.msra.mxu0 %v12848_v52 }
 0x546   :  { %9635 = vmatpush3.msra.mxu1 %v15266_v27  ;;  %9609 = vmatprep.subr.mxu0 %v15113_v26  ;;  %v7938_v34 = vand.u32 4294901760, %v13657_v35 }
 0x547   :  { %9636 = vmatprep.subr.mxu1 %v15113_v26  ;;  %9610 = vmatpush3.msra.mxu0 %v12857_v50 }
 0x548   :  { %9637 = vmatpush3.msra.mxu1 %v15267_v16  ;;  %9611 = vmatprep.subr.mxu0 %v15113_v26  ;;  %v7939_v48 = vsub.f32 %v13657_v35, %v7938_v34 }
 0x549   :  { %9638 = vmatprep.subr.mxu1 %v15113_v26  ;;  %9612 = vmatpush3.msra.mxu0 %v12869_v53 }
 0x54a   :  { %9639 = vmatpush3.msra.mxu1 %v15268_v47  ;;  %9613 = vmatprep.subr.mxu0 %v15113_v26  ;;  %v7940_v44 = vand.u32 4294901760, %v7939_v48 }
 0x54b   :  { %9640 = vmatprep.subr.mxu1 %v15113_v26  ;;  %9614 = vmatpush3.msra.mxu0 %v15269_v62 }
 0x54c   :  { %9641 = vmatpush3.msra.mxu1 %v15270_v39  ;;  %9642 = vmatprep.mubr.msk.f32.mxu1 %vm9779_vm2, %v15113_v26 }
 0x54d   :  { %9615 = vmatprep.subr.mxu0 %v15113_v26  ;;  %9643 = vmatmul.mubr.f32.vlgmr.msra.gmra.mxu1 %v13646_v49 }
 0x54e   :  { %9664 = vmatprep.subr.mxu1 %v15113_v26  ;;  %9616 = vmatpush3.msra.mxu0 %v15271_v11 }
 0x54f   :  { %9665 = vmatpush3.msra.mxu1 %v12848_v52  ;;  %9617 = vmatprep.subr.mxu0 %v15113_v26 }
 0x550   :  { %9666 = vmatprep.subr.mxu1 %v15113_v26  ;;  %9618 = vmatpush3.msra.mxu0 %v15272_v33 }
 0x551   :  { %9667 = vmatpush3.msra.mxu1 %v12857_v50  ;;  %9619 = vmatprep.subr.mxu0 %v15113_v26 }
 0x552   :  { %9668 = vmatprep.subr.mxu1 %v15113_v26  ;;  %9620 = vmatpush3.msra.mxu0 %v15273_v15 }
 0x553   :  { %9669 = vmatpush3.msra.mxu1 %v12869_v53  ;;  %9621 = vmatprep.subr.mxu0 %v15113_v26 }
 0x554   :  { %9670 = vmatprep.subr.mxu1 %v15113_v26  ;;  %9622 = vmatpush3.msra.mxu0 %v15274_v46 }
 0x555   :  { %9623 = vmatprep.mubr.msk.f32.mxu0 %vm9779_vm2, %v15113_v26  ;;  %9671 = vmatpush3.msra.mxu1 %v15269_v62 }
 0x556   :  { %9624 = vmatmul.mubr.f32.vlgmr.msra.gmra.mxu0 %v7940_v44  ;;  %9645 = vmatprep.subr.mxu0 %v15113_v26 }
 0x557   :  { %9672 = vmatprep.subr.mxu1 %v15113_v26  ;;  %9646 = vmatpush3.msra.mxu0 %v15275_v3  ;;  %v15291_v3 = vld [vmem:[#allocation132_spill] sm:$0xff] }
 0x558   :  { %9673 = vmatpush3.msra.mxu1 %v15271_v11  ;;  %9647 = vmatprep.subr.mxu0 %v15113_v26 }
 0x559   :  { %9674 = vmatprep.subr.mxu1 %v15113_v26  ;;  %9648 = vmatpush3.msra.mxu0 %v15276_v60 }
 0x55a   :  { %9675 = vmatpush3.msra.mxu1 %v15272_v33  ;;  %9649 = vmatprep.subr.mxu0 %v15113_v26 }
 0x55b   :  { %9676 = vmatprep.subr.mxu1 %v15113_v26  ;;  %9650 = vmatpush3.msra.mxu0 %v15277_v7 }
 0x55c   :  { %9677 = vmatpush3.msra.mxu1 %v15273_v15  ;;  %9651 = vmatprep.subr.mxu0 %v15113_v26 }
 0x55d   :  { %9678 = vmatprep.subr.mxu1 %v15113_v26  ;;  %9652 = vmatpush3.msra.mxu0 %v15278_v1 }
 0x55e   :  { %9679 = vmatpush3.msra.mxu1 %v15274_v46  ;;  %9680 = vmatprep.mubr.msk.f32.mxu1 %vm9779_vm2, %v15113_v26 }
 0x55f   :  { %9653 = vmatprep.subr.mxu0 %v15113_v26  ;;  %9681 = vmatmul.mubr.f32.vlgmr.msra.gmra.mxu1 %v7938_v34 }
 0x560   :  { %9702 = vmatprep.subr.mxu1 %v15113_v26  ;;  %9654 = vmatpush3.msra.mxu0 %v15279_v10 }
 0x561   :  { %9703 = vmatpush3.msra.mxu1 %v12848_v52  ;;  %9655 = vmatprep.subr.mxu0 %v15113_v26  ;;  %v15282_v52 = vld [vmem:[#allocation156_spill] sm:$0xff] }
 0x562   :  { %9704 = vmatprep.subr.mxu1 %v15113_v26  ;;  %9656 = vmatpush3.msra.mxu0 %v15280_v2 }
 0x563   :  { %9705 = vmatpush3.msra.mxu1 %v12857_v50  ;;  %9657 = vmatprep.subr.mxu0 %v15113_v26  ;;  %v15283_v50 = vld [vmem:[#allocation139_spill] sm:$0xff] }
 0x564   :  { %9706 = vmatprep.subr.mxu1 %v15113_v26  ;;  %9658 = vmatpush3.msra.mxu0 %v15281_v57 }
 0x565   :  { %9707 = vmatpush3.msra.mxu1 %v12869_v53  ;;  %9659 = vmatprep.subr.mxu0 %v15113_v26  ;;  %v15284_v53 = vld [vmem:[#allocation142_spill] sm:$0xff] }
 0x566   :  { %9708 = vmatprep.subr.mxu1 %v15113_v26  ;;  %9660 = vmatpush3.msra.mxu0 %v15282_v52 }
 0x567   :  { %9661 = vmatprep.mubr.msk.f32.mxu0 %vm9779_vm2, %v15113_v26  ;;  %9709 = vmatpush3.msra.mxu1 %v15269_v62 }
 0x568   :  { %9662 = vmatmul.mubr.f32.vlgmr.msra.gmra.mxu0 %v13657_v35  ;;  %9683 = vmatprep.subr.mxu0 %v15113_v26 }
 0x569   :  { %9710 = vmatprep.subr.mxu1 %v15113_v26  ;;  %9684 = vmatpush3.msra.mxu0 %v15283_v50 }
 0x56a   :  { %9711 = vmatpush3.msra.mxu1 %v15271_v11  ;;  %9685 = vmatprep.subr.mxu0 %v15113_v26 }
 0x56b   :  { %9712 = vmatprep.subr.mxu1 %v15113_v26  ;;  %9686 = vmatpush3.msra.mxu0 %v15284_v53 }
 0x56c   :  { %9713 = vmatpush3.msra.mxu1 %v15272_v33  ;;  %9687 = vmatprep.subr.mxu0 %v15113_v26 }
 0x56d   :  { %9714 = vmatprep.subr.mxu1 %v15113_v26  ;;  %9688 = vmatpush3.msra.mxu0 %v15285_v31 }
 0x56e   :  { %9715 = vmatpush3.msra.mxu1 %v15273_v15  ;;  %9689 = vmatprep.subr.mxu0 %v15113_v26 }
 0x56f   :  { %9716 = vmatprep.subr.mxu1 %v15113_v26  ;;  %9690 = vmatpush3.msra.mxu0 %v15286_v4 }
 0x570   :  { %9717 = vmatpush3.msra.mxu1 %v15274_v46  ;;  %9718 = vmatprep.mubr.msk.f32.mxu1 %vm9779_vm2, %v15113_v26 }
 0x571   :  { %9691 = vmatprep.subr.mxu0 %v15113_v26  ;;  %9719 = vmatmul.mubr.f32.vlgmr.msra.gmra.mxu1 %v13646_v49 }
 0x572   :  { %9692 = vmatpush3.msra.mxu0 %v15287_v38  ;;  %9699 = vmatprep.mubr.msk.f32.mxu0 %vm9779_vm2, %v15113_v26 }
 0x573   :  { %9693 = vmatprep.subr.mxu0 %v15113_v26 }
 0x574   :  { %9694 = vmatpush3.msra.mxu0 %v15288_v20 }
 0x575   :  { %9695 = vmatprep.subr.mxu0 %v15113_v26 }
 0x576   :  { %9696 = vmatpush3.msra.mxu0 %v15289_v13 }
 0x577   :  { %9697 = vmatprep.subr.mxu0 %v15113_v26 }
 0x578   :  { %9698 = vmatpush3.msra.mxu0 %v15290_v42 }
 0x579   :  { %9700 = vmatmul.mubr.f32.vlgmr.msra.gmra.mxu0 %v13646_v49 }
 0x5b9   :  { %v9074_v0 = vpop.f32.mrf.mxu1 }
 0x5bb   :  { %v9075_v21 = vpop.f32.mrf.mxu1 }
 0x5bc   :  { %v9076_v36 = vadd.f32 %v9075_v21, %v9074_v0 }
 0x5c1   :  { %v9039_v18 = vpop.f32.mrf.mxu0 }
 0x5c3   :  { %v9040_v32 = vpop.f32.mrf.mxu0 }
 0x5c4   :  { %v9041_v61 = vadd.f32 %v9040_v32, %v9039_v18 }
 0x5c6   :  { %v7342_v23 = vadd.f32 %v9076_v36, %v9041_v61 }
 0x5da   :  { %v9144_v63 = vpop.f32.mrf.mxu1 }
 0x5dc   :  { %v9145_v19 = vpop.f32.mrf.mxu1 }
 0x5dd   :  { %v9146_v41 = vadd.f32 %v9145_v19, %v9144_v63 }
 0x5e2   :  { %v9109_v40 = vpop.f32.mrf.mxu0 }
 0x5e4   :  { %v9110_v22 = vpop.f32.mrf.mxu0 }
 0x5e5   :  { %v9111_v45 = vadd.f32 %v9110_v22, %v9109_v40 }
 0x5e7   :  { %v7480_v55 = vadd.f32 %v9111_v45, %v7342_v23 }
 0x5e9   :  { %v7588_v6 = vadd.f32 %v9146_v41, %v7480_v55 }
 0x5fc   :  { %v9214_v59 = vpop.f32.mrf.mxu1 }
 0x5fe   :  { %v9215_v24 = vpop.f32.mrf.mxu1 }
 0x5ff   :  { %v9216_v30 = vadd.f32 %v9215_v24, %v9214_v59 }
 0x604   :  { %v9179_v12 = vpop.f32.mrf.mxu0 }
 0x606   :  { %v9180_v8 = vpop.f32.mrf.mxu0 }
 0x607   :  { %v9181_v37 = vadd.f32 %v9180_v8, %v9179_v12 }
 0x609   :  { %v7756_v17 = vadd.f32 %v9181_v37, %v7588_v6 }
 0x60b   :  { %v7860_v56 = vadd.f32 %v9216_v30, %v7756_v17 }
 0x60d   :  { %v8053_v51 = vpop.f32.mrf.mxu1 }
 0x60f   :  { %v9644_v28 = vpop.f32.mrf.mxu1 }
 0x616   :  { %v7942_v25 = vpop.f32.mrf.mxu0 }
 0x617   :  { %v7943_v58 = vadd.f32 %v7942_v25, %v7860_v56 }
 0x618   :  { %v9625_v26 = vpop.f32.mrf.mxu0 }
 0x619   :  { %v8054_v43 = vadd.f32 %v8053_v51, %v7943_v58 }
 0x61f   :  { %v8222_v9 = vpop.f32.mrf.mxu1 }
 0x621   :  { %v9682_v14 = vpop.f32.mrf.mxu1 }
 0x628   :  { %v8141_v29 = vpop.f32.mrf.mxu0 }
 0x629   :  { %v8142_v27 = vadd.f32 %v8141_v29, %v8054_v43 }
 0x62a   :  { %v9663_v54 = vpop.f32.mrf.mxu0 }
 0x62b   :  { %v8223_v16 = vadd.f32 %v8222_v9, %v8142_v27 }
 0x631   :  { %v8396_v5 = vpop.f32.mrf.mxu1 }
 0x633   :  { %v9720_v49 = vpop.f32.mrf.mxu1 }
 0x639   :  { %v8317_v35 = vpop.f32.mrf.mxu0 }
 0x63a   :  { %v8318_v47 = vadd.f32 %v8317_v35, %v8223_v16 }
 0x63b   :  { %v9701_v62 = vpop.f32.mrf.mxu0 }
 0x63c   :  { %v8397_v39 = vadd.f32 %v8396_v5, %v8318_v47 }
 0x63e   :  { %v8401_v34 = vmul.f32 0.11111111, %v8397_v39 }
 0x640   :  { %9728 = vrsqrt.f32 %v8401_v34  ;;  %vm8404_vm5 = vcmp.eq.f32.partialorder %v8401_v34, inf  ;;  %v8407_v48 = vand.u32 2147483648, %v8401_v34  ;;  %vm8406_vm6 = vcmp.eq.f32.partialorder %v8401_v34, 0.0 }
 0x64d   :  { %v9729_v11 = vpop.eup %9728 }
 0x64e   :  { %v8403_v33 = vmul.f32 %v9729_v11, %v8401_v34 }
 0x650   :  { %v8405_v15 = vsel %vm8404_vm5, %v8401_v34, %v8403_v33 }
 0x651   :  { %v8408_v46 = vsel %vm8406_vm6, %v8407_v48, %v8405_v15 }
 0x652   :  { %8410 = vrot.lane.b32.xlu0 %v8408_v46, %s9780_s5 }
 0x6c4   :  { %v8411_v44 = vpop.permute.xlu0 %8410 }
 0x6c5   :  { %v8413_v60 = vsel %vm5960_vm4, %v15291_v3, %v8411_v44 }
 0x6c6   :  { %8414 = vst.msk [vmem:[#allocation5] sm:$0xff] %vm1167_vm3, %v8413_v60 }
 0x6c7   :  { %9762 = shalt.err (!%p9759_p9)
}
 0x6c8   :  { %8424 = dma.vmem_to_hbm [thread:$0]  %s8422_s16, 128, %s13768_s6, [#allocation4]  }
 0x6c9   :  { %9773 = dma.done.wait [#allocation4], 128  }
 0x6ca   :  { %9774 = vsyncadd [#allocation4], 4294967168 }
 0x6cb   :  { %8428 = vsyncpa [#allocation3], 1 }
 0x6cc   :  { %8429 = vsyncpa [#allocation4], 1 }

</bundles_post_ra>
